<compile_context>
chip_gen: v7x
topology: tpu7x:2x2x1
jax: 0.10.0
libtpu: 0.0.40
codegen_flags: <defaults>
</compile_context>

<pallas_src>
import functools

import jax
import jax.numpy as jnp
import numpy as np
from jax.experimental import pallas as pl
from jax.experimental.pallas import tpu as pltpu

NUM_CLASSES = 10
_NPAD = 128          # FC output padded to a full lane width
_MAX_BT = 16         # images per grid step (batch tile)
_TAIL = 64           # zero tail so shifted slices never run off the scratch


# ----------------------------- Pallas kernel --------------------------------

def _cnn_kernel(x_ref, w1_ref, b1_ref, w2_ref, b2_ref, s1_ref, s2_ref,
                wfc_ref, bfc_ref, out_ref,
                xp1_ref, ys1_ref, xp2_ref, ys2_ref, p_ref, f_ref, *, bt):
    f32, bf16 = jnp.float32, jnp.bfloat16
    nc1 = bt * 900            # conv1 columns: 30x30 zero-padded 28x28 images
    nc2 = bt * 256            # conv2 columns: 16x16 zero-padded 14x14 images

    # Zero the small tails (shifted slices of the last image read into them;
    # the scratch bodies are fully overwritten every step).
    xp1_ref[:, pl.ds(nc1, _TAIL)] = jnp.zeros((1, _TAIL), f32)
    xp2_ref[:, pl.ds(nc2, _TAIL)] = jnp.zeros((8, _TAIL), f32)

    # Stage 0: lay the zero-padded, flattened images out along one long row.
    for i in range(bt):
        xp1_ref[:, pl.ds(i * 900, 900)] = x_ref[pl.ds(i, 1), :]

    # Stage 1: conv1 (3x3, pad 1, C_in=1) as 9 shifted VPU FMAs + bias + ReLU.
    acc1 = None
    for t in range(9):
        off = (t // 3) * 30 + (t % 3)
        term = w1_ref[t] * xp1_ref[:, pl.ds(off, nc1)]      # (8,1)*(1,nc1)
        acc1 = term if acc1 is None else acc1 + term
    ys1_ref[...] = jnp.maximum(acc1 + b1_ref[...], 0.0)

    # Stage 2: fused 2x2 maxpool of the ReLU'd conv1 output.  Per image: max of
    # the four window corners (shifted slices), then one 0/1 selection matmul
    # that compacts the pooled pixels AND writes them directly into conv2's
    # zero-padded 16x16 layout.
    s1 = s1_ref[...]                                        # (840, 256) bf16
    for i in range(bt):
        base = i * 900
        z = ys1_ref[:, pl.ds(base, 840)]
        z = jnp.maximum(z, ys1_ref[:, pl.ds(base + 1, 840)])
        z = jnp.maximum(z, ys1_ref[:, pl.ds(base + 30, 840)])
        z = jnp.maximum(z, ys1_ref[:, pl.ds(base + 31, 840)])
        xp2_ref[:, pl.ds(i * 256, 256)] = jnp.dot(
            z.astype(bf16), s1, preferred_element_type=f32)

    # Stage 3: conv2 (3x3, pad 1, 8->16) as 9 shifted MXU matmuls
    # (bf16 operands, f32 accumulation) + bias + ReLU.
    acc2 = None
    for t in range(9):
        off = (t // 3) * 16 + (t % 3)
        xs = xp2_ref[:, pl.ds(off, nc2)].astype(bf16)        # (8, nc2)
        term = jnp.dot(w2_ref[t], xs, preferred_element_type=f32)
        acc2 = term if acc2 is None else acc2 + term
    ys2_ref[...] = jnp.maximum(acc2 + b2_ref[...], 0.0)

    # Stage 4: fused 2x2 maxpool + flatten into torch's (C, H, W) order rows.
    s2 = s2_ref[...]                                         # (224, 49) bf16
    for i in range(bt):
        base = i * 256
        z = ys2_ref[:, pl.ds(base, 224)]
        z = jnp.maximum(z, ys2_ref[:, pl.ds(base + 1, 224)])
        z = jnp.maximum(z, ys2_ref[:, pl.ds(base + 16, 224)])
        z = jnp.maximum(z, ys2_ref[:, pl.ds(base + 17, 224)])
        p_ref[...] = jnp.dot(z.astype(bf16), s2, preferred_element_type=f32)
        for c in range(16):                                  # (C,H,W) flatten
            f_ref[pl.ds(i, 1), pl.ds(c * 49, 49)] = p_ref[pl.ds(c, 1), :]

    # Stage 5: FC over the whole batch tile; lane-dense (BT, 128) output.
    logits = jnp.dot(f_ref[...].astype(bf16), wfc_ref[...],
                     preferred_element_type=f32)
    out_ref[...] = (logits + bfc_ref[...]).astype(out_ref.dtype)


# ------------------------------ param prep ----------------------------------

def _selection_matrices():
    # pool1: conv1 pixel (2*h2, 2*w2) lives at flat offset 60*h2 + 2*w2 in the
    # 30-wide row layout  ->  conv2 padded 16x16 position (h2+1, w2+1).
    s1 = np.zeros((840, 256), np.float32)
    for h2 in range(14):
        for w2 in range(14):
            s1[60 * h2 + 2 * w2, (h2 + 1) * 16 + (w2 + 1)] = 1.0
    # pool2: conv2 pixel (2*h3, 2*w3) at flat offset 32*h3 + 2*w3 in the
    # 16-wide row layout  ->  flat 7x7 position h3*7 + w3.
    s2 = np.zeros((224, 49), np.float32)
    for h3 in range(7):
        for w3 in range(7):
            s2[32 * h3 + 2 * w3, 7 * h3 + w3] = 1.0
    return jnp.asarray(s1, jnp.bfloat16), jnp.asarray(s2, jnp.bfloat16)


def init_params(key):
    """Torch-layout params with PyTorch-default U(-1/sqrt(fan_in), ...) init."""
    ks = jax.random.split(key, 6)

    def u(k, shape, fan_in):
        bound = 1.0 / jnp.sqrt(float(fan_in))
        return jax.random.uniform(k, shape, jnp.float32, -bound, bound)

    return {
        "conv1_w": u(ks[0], (8, 1, 3, 3), 1 * 9),
        "conv1_b": u(ks[1], (8,), 1 * 9),
        "conv2_w": u(ks[2], (16, 8, 3, 3), 8 * 9),
        "conv2_b": u(ks[3], (16,), 8 * 9),
        "fc1_w":   u(ks[4], (NUM_CLASSES, 16 * 7 * 7), 16 * 7 * 7),
        "fc1_b":   u(ks[5], (NUM_CLASSES,), 16 * 7 * 7),
    }


def prepare_params(p):
    """One-time repack of torch-layout params into kernel-friendly layouts."""
    s1, s2 = _selection_matrices()
    w1 = p["conv1_w"].reshape(8, 9).T.reshape(9, 8, 1).astype(jnp.float32)
    b1 = p["conv1_b"].reshape(8, 1).astype(jnp.float32)
    w2 = jnp.transpose(p["conv2_w"], (2, 3, 0, 1)).reshape(9, 16, 8)
    w2 = w2.astype(jnp.bfloat16)
    b2 = p["conv2_b"].reshape(16, 1).astype(jnp.float32)
    wfc = jnp.zeros((784, _NPAD), jnp.bfloat16)
    wfc = wfc.at[:, :NUM_CLASSES].set(p["fc1_w"].T.astype(jnp.bfloat16))
    bfc = jnp.zeros((1, _NPAD), jnp.float32).at[0, :NUM_CLASSES].set(p["fc1_b"])
    return dict(w1=w1, b1=b1, w2=w2, b2=b2, s1=s1, s2=s2, wfc=wfc, bfc=bfc)


# ------------------------------ forward pass ---------------------------------

@jax.jit
def cnn_forward(kp, x):
    B = x.shape[0]
    bt = B if B <= _MAX_BT else _MAX_BT
    bp = ((B + bt - 1) // bt) * bt
    # Layout plumbing only (1x the input bytes): zero-pad the 3x3 halo and the
    # batch remainder, then flatten each padded 30x30 image to one 900-row.
    xflat = jnp.pad(x.astype(jnp.float32),
                    ((0, bp - B), (0, 0), (1, 1), (1, 1))).reshape(bp, 900)

    def whole(a):
        nd = a.ndim
        return pl.BlockSpec(a.shape, lambda i, nd=nd: (0,) * nd)

    out = pl.pallas_call(
        functools.partial(_cnn_kernel, bt=bt),
        out_shape=jax.ShapeDtypeStruct((bp, _NPAD), jnp.float32),
        grid=(bp // bt,),
        in_specs=[
            pl.BlockSpec((bt, 900), lambda i: (i, 0)),   # batch tile of images
            whole(kp["w1"]), whole(kp["b1"]),
            whole(kp["w2"]), whole(kp["b2"]),
            whole(kp["s1"]), whole(kp["s2"]),
            whole(kp["wfc"]), whole(kp["bfc"]),
        ],
        out_specs=pl.BlockSpec((bt, _NPAD), lambda i: (i, 0)),
        scratch_shapes=[
            pltpu.VMEM((1, bt * 900 + _TAIL), jnp.float32),   # padded conv1 in
            pltpu.VMEM((8, bt * 900), jnp.float32),           # conv1 out
            pltpu.VMEM((8, bt * 256 + _TAIL), jnp.float32),   # padded conv2 in
            pltpu.VMEM((16, bt * 256), jnp.float32),          # conv2 out
            pltpu.VMEM((16, 49), jnp.float32),                # per-image pooled2
            pltpu.VMEM((bt, 784), jnp.float32),               # flattened features
        ],
        compiler_params=pltpu.CompilerParams(
            dimension_semantics=("parallel",)),
    )(xflat, kp["w1"], kp["b1"], kp["w2"], kp["b2"],
      kp["s1"], kp["s2"], kp["wfc"], kp["bfc"])
    return out[:B, :NUM_CLASSES]


# ------------------------------ reference ------------------------------------

def reference_forward(p, x):
    dn = ("NCHW", "OIHW", "NCHW")
    y = jax.lax.conv_general_dilated(x, p["conv1_w"], (1, 1), ((1, 1), (1, 1)),
                                     dimension_numbers=dn)
    y = jax.nn.relu(y + p["conv1_b"].reshape(1, 8, 1, 1))
    y = jax.lax.reduce_window(y, -jnp.inf, jax.lax.max,
                              (1, 1, 2, 2), (1, 1, 2, 2), "VALID")
    y = jax.lax.conv_general_dilated(y, p["conv2_w"], (1, 1), ((1, 1), (1, 1)),
                                     dimension_numbers=dn)
    y = jax.nn.relu(y + p["conv2_b"].reshape(1, 16, 1, 1))
    y = jax.lax.reduce_window(y, -jnp.inf, jax.lax.max,
                              (1, 1, 2, 2), (1, 1, 2, 2), "VALID")
    y = y.reshape(y.shape[0], -1)
    return y @ p["fc1_w"].T + p["fc1_b"]


if __name__ == "__main__":
    key = jax.random.PRNGKey(0)
    pkey, xkey = jax.random.split(key)
    params = init_params(pkey)
    kparams = prepare_params(params)

    # fc1 (16*7*7) forces 28x28 spatial with in_channels=1; small batch = 2.
    x = jax.random.normal(xkey, (2, 1, 28, 28), dtype=jnp.float32)

    out = cnn_forward(kparams, x)
    jax.block_until_ready(out)
    assert out.shape == (2, NUM_CLASSES) and out.dtype == jnp.float32

    # Loose-tolerance check vs plain-XLA reference (kernel uses bf16 matmul
    # operands with f32 accumulation).
    ref = reference_forward(params, x)
    err = float(jnp.max(jnp.abs(out - ref)))
    assert err < 5e-2, f"kernel/reference mismatch: max abs err = {err}"
    print("KERNEL_OK")
</pallas_src>

<mosaic_0001>
module attributes {stable_mosaic.version = 11 : i64} {
  func.func @_cnn_kernel(%arg0: i32, %arg1: memref<2x900xf32, #tpu.memory_space<vmem>>, %arg2: memref<9x8x1xf32, #tpu.memory_space<vmem>>, %arg3: memref<8x1xf32, #tpu.memory_space<vmem>>, %arg4: memref<9x16x8xbf16, #tpu.memory_space<vmem>>, %arg5: memref<16x1xf32, #tpu.memory_space<vmem>>, %arg6: memref<840x256xbf16, #tpu.memory_space<vmem>>, %arg7: memref<224x49xbf16, #tpu.memory_space<vmem>>, %arg8: memref<784x128xbf16, #tpu.memory_space<vmem>>, %arg9: memref<1x128xf32, #tpu.memory_space<vmem>>, %arg10: memref<2x128xf32, #tpu.memory_space<vmem>>, %arg11: memref<1x1864xf32, #tpu.memory_space<vmem>>, %arg12: memref<8x1800xf32, #tpu.memory_space<vmem>>, %arg13: memref<8x576xf32, #tpu.memory_space<vmem>>, %arg14: memref<16x512xf32, #tpu.memory_space<vmem>>, %arg15: memref<16x49xf32, #tpu.memory_space<vmem>>, %arg16: memref<2x784xf32, #tpu.memory_space<vmem>>) attributes {dimension_semantics = [#tpu.dimension_semantics<parallel>], iteration_bounds = array<i64: 1>, scalar_prefetch = 0 : i64, scratch_operands = 6 : i64, tpu.core_type = #tpu.core_type<tc>, window_params = [{transform_indices = @transform_0, window_bounds = array<i64: 2, 900>}, {pipeline_mode = #tpu.pipeline_mode<synchronous>, transform_indices = @transform_1, window_bounds = array<i64: 9, 8, 1>}, {pipeline_mode = #tpu.pipeline_mode<synchronous>, transform_indices = @transform_2, window_bounds = array<i64: 8, 1>}, {pipeline_mode = #tpu.pipeline_mode<synchronous>, transform_indices = @transform_3, window_bounds = array<i64: 9, 16, 8>}, {pipeline_mode = #tpu.pipeline_mode<synchronous>, transform_indices = @transform_4, window_bounds = array<i64: 16, 1>}, {pipeline_mode = #tpu.pipeline_mode<synchronous>, transform_indices = @transform_5, window_bounds = array<i64: 840, 256>}, {pipeline_mode = #tpu.pipeline_mode<synchronous>, transform_indices = @transform_6, window_bounds = array<i64: 224, 49>}, {pipeline_mode = #tpu.pipeline_mode<synchronous>, transform_indices = @transform_7, window_bounds = array<i64: 784, 128>}, {pipeline_mode = #tpu.pipeline_mode<synchronous>, transform_indices = @transform_8, window_bounds = array<i64: 1, 128>}, {transform_indices = @transform_9, window_bounds = array<i64: 2, 128>}]} {
    %cst = arith.constant 0.000000e+00 : f32
    %0 = vector.broadcast %cst : f32 to vector<1x64xf32>
    %c0 = arith.constant 0 : index
    %c1800 = arith.constant 1800 : index
    %1 = vector.load %arg11[%c0, %c1800] : memref<1x1864xf32, #tpu.memory_space<vmem>>, vector<1x64xf32>
    tpu.vector_store %arg11[%c0, %c1800], %0 {strides = array<i32>} : memref<1x1864xf32, #tpu.memory_space<vmem>>, vector<1x64xf32>,
    %cst_0 = arith.constant 0.000000e+00 : f32
    %2 = vector.broadcast %cst_0 : f32 to vector<8x64xf32>
    %c0_1 = arith.constant 0 : index
    %c512 = arith.constant 512 : index
    %3 = vector.load %arg13[%c0_1, %c512] : memref<8x576xf32, #tpu.memory_space<vmem>>, vector<8x64xf32>
    tpu.vector_store %arg13[%c0_1, %c512], %2 {strides = array<i32>} : memref<8x576xf32, #tpu.memory_space<vmem>>, vector<8x64xf32>,
    %c0_2 = arith.constant 0 : index
    %c0_3 = arith.constant 0 : index
    %4 = vector.load %arg1[%c0_2, %c0_3] : memref<2x900xf32, #tpu.memory_space<vmem>>, vector<1x900xf32>
    %c0_4 = arith.constant 0 : index
    %c0_5 = arith.constant 0 : index
    %5 = vector.load %arg11[%c0_4, %c0_5] : memref<1x1864xf32, #tpu.memory_space<vmem>>, vector<1x900xf32>
    tpu.vector_store %arg11[%c0_4, %c0_5], %4 {strides = array<i32>} : memref<1x1864xf32, #tpu.memory_space<vmem>>, vector<1x900xf32>,
    %c1 = arith.constant 1 : index
    %c0_6 = arith.constant 0 : index
    %6 = vector.load %arg1[%c1, %c0_6] : memref<2x900xf32, #tpu.memory_space<vmem>>, vector<1x900xf32>
    %c0_7 = arith.constant 0 : index
    %c900 = arith.constant 900 : index
    %7 = vector.load %arg11[%c0_7, %c900] : memref<1x1864xf32, #tpu.memory_space<vmem>>, vector<1x900xf32>
    tpu.vector_store %arg11[%c0_7, %c900], %6 {strides = array<i32>} : memref<1x1864xf32, #tpu.memory_space<vmem>>, vector<1x900xf32>,
    %c0_8 = arith.constant 0 : index
    %c0_9 = arith.constant 0 : index
    %c0_10 = arith.constant 0 : index
    %8 = vector.load %arg2[%c0_8, %c0_9, %c0_10] : memref<9x8x1xf32, #tpu.memory_space<vmem>>, vector<1x8x1xf32>
    %9 = vector.shape_cast %8 : vector<1x8x1xf32> to vector<8x1xf32>
    %c0_11 = arith.constant 0 : index
    %c0_12 = arith.constant 0 : index
    %10 = vector.load %arg11[%c0_11, %c0_12] : memref<1x1864xf32, #tpu.memory_space<vmem>>, vector<1x1800xf32>
    %11 = vector.broadcast %9 : vector<8x1xf32> to vector<8x1800xf32>
    %12 = vector.broadcast %10 : vector<1x1800xf32> to vector<8x1800xf32>
    %13 = arith.mulf %11, %12 : vector<8x1800xf32>
    %c1_13 = arith.constant 1 : index
    %c0_14 = arith.constant 0 : index
    %c0_15 = arith.constant 0 : index
    %14 = vector.load %arg2[%c1_13, %c0_14, %c0_15] : memref<9x8x1xf32, #tpu.memory_space<vmem>>, vector<1x8x1xf32>
    %15 = vector.shape_cast %14 : vector<1x8x1xf32> to vector<8x1xf32>
    %c0_16 = arith.constant 0 : index
    %c1_17 = arith.constant 1 : index
    %16 = vector.load %arg11[%c0_16, %c1_17] : memref<1x1864xf32, #tpu.memory_space<vmem>>, vector<1x1800xf32>
    %17 = vector.broadcast %15 : vector<8x1xf32> to vector<8x1800xf32>
    %18 = vector.broadcast %16 : vector<1x1800xf32> to vector<8x1800xf32>
    %19 = arith.mulf %17, %18 : vector<8x1800xf32>
    %20 = arith.addf %13, %19 : vector<8x1800xf32>
    %c2 = arith.constant 2 : index
    %c0_18 = arith.constant 0 : index
    %c0_19 = arith.constant 0 : index
    %21 = vector.load %arg2[%c2, %c0_18, %c0_19] : memref<9x8x1xf32, #tpu.memory_space<vmem>>, vector<1x8x1xf32>
    %22 = vector.shape_cast %21 : vector<1x8x1xf32> to vector<8x1xf32>
    %c0_20 = arith.constant 0 : index
    %c2_21 = arith.constant 2 : index
    %23 = vector.load %arg11[%c0_20, %c2_21] : memref<1x1864xf32, #tpu.memory_space<vmem>>, vector<1x1800xf32>
    %24 = vector.broadcast %22 : vector<8x1xf32> to vector<8x1800xf32>
    %25 = vector.broadcast %23 : vector<1x1800xf32> to vector<8x1800xf32>
    %26 = arith.mulf %24, %25 : vector<8x1800xf32>
    %27 = arith.addf %20, %26 : vector<8x1800xf32>
    %c3 = arith.constant 3 : index
    %c0_22 = arith.constant 0 : index
    %c0_23 = arith.constant 0 : index
    %28 = vector.load %arg2[%c3, %c0_22, %c0_23] : memref<9x8x1xf32, #tpu.memory_space<vmem>>, vector<1x8x1xf32>
    %29 = vector.shape_cast %28 : vector<1x8x1xf32> to vector<8x1xf32>
    %c0_24 = arith.constant 0 : index
    %c30 = arith.constant 30 : index
    %30 = vector.load %arg11[%c0_24, %c30] : memref<1x1864xf32, #tpu.memory_space<vmem>>, vector<1x1800xf32>
    %31 = vector.broadcast %29 : vector<8x1xf32> to vector<8x1800xf32>
    %32 = vector.broadcast %30 : vector<1x1800xf32> to vector<8x1800xf32>
    %33 = arith.mulf %31, %32 : vector<8x1800xf32>
    %34 = arith.addf %27, %33 : vector<8x1800xf32>
    %c4 = arith.constant 4 : index
    %c0_25 = arith.constant 0 : index
    %c0_26 = arith.constant 0 : index
    %35 = vector.load %arg2[%c4, %c0_25, %c0_26] : memref<9x8x1xf32, #tpu.memory_space<vmem>>, vector<1x8x1xf32>
    %36 = vector.shape_cast %35 : vector<1x8x1xf32> to vector<8x1xf32>
    %c0_27 = arith.constant 0 : index
    %c31 = arith.constant 31 : index
    %37 = vector.load %arg11[%c0_27, %c31] : memref<1x1864xf32, #tpu.memory_space<vmem>>, vector<1x1800xf32>
    %38 = vector.broadcast %36 : vector<8x1xf32> to vector<8x1800xf32>
    %39 = vector.broadcast %37 : vector<1x1800xf32> to vector<8x1800xf32>
    %40 = arith.mulf %38, %39 : vector<8x1800xf32>
    %41 = arith.addf %34, %40 : vector<8x1800xf32>
    %c5 = arith.constant 5 : index
    %c0_28 = arith.constant 0 : index
    %c0_29 = arith.constant 0 : index
    %42 = vector.load %arg2[%c5, %c0_28, %c0_29] : memref<9x8x1xf32, #tpu.memory_space<vmem>>, vector<1x8x1xf32>
    %43 = vector.shape_cast %42 : vector<1x8x1xf32> to vector<8x1xf32>
    %c0_30 = arith.constant 0 : index
    %c32 = arith.constant 32 : index
    %44 = vector.load %arg11[%c0_30, %c32] : memref<1x1864xf32, #tpu.memory_space<vmem>>, vector<1x1800xf32>
    %45 = vector.broadcast %43 : vector<8x1xf32> to vector<8x1800xf32>
    %46 = vector.broadcast %44 : vector<1x1800xf32> to vector<8x1800xf32>
    %47 = arith.mulf %45, %46 : vector<8x1800xf32>
    %48 = arith.addf %41, %47 : vector<8x1800xf32>
    %c6 = arith.constant 6 : index
    %c0_31 = arith.constant 0 : index
    %c0_32 = arith.constant 0 : index
    %49 = vector.load %arg2[%c6, %c0_31, %c0_32] : memref<9x8x1xf32, #tpu.memory_space<vmem>>, vector<1x8x1xf32>
    %50 = vector.shape_cast %49 : vector<1x8x1xf32> to vector<8x1xf32>
    %c0_33 = arith.constant 0 : index
    %c60 = arith.constant 60 : index
    %51 = vector.load %arg11[%c0_33, %c60] : memref<1x1864xf32, #tpu.memory_space<vmem>>, vector<1x1800xf32>
    %52 = vector.broadcast %50 : vector<8x1xf32> to vector<8x1800xf32>
    %53 = vector.broadcast %51 : vector<1x1800xf32> to vector<8x1800xf32>
    %54 = arith.mulf %52, %53 : vector<8x1800xf32>
    %55 = arith.addf %48, %54 : vector<8x1800xf32>
    %c7 = arith.constant 7 : index
    %c0_34 = arith.constant 0 : index
    %c0_35 = arith.constant 0 : index
    %56 = vector.load %arg2[%c7, %c0_34, %c0_35] : memref<9x8x1xf32, #tpu.memory_space<vmem>>, vector<1x8x1xf32>
    %57 = vector.shape_cast %56 : vector<1x8x1xf32> to vector<8x1xf32>
    %c0_36 = arith.constant 0 : index
    %c61 = arith.constant 61 : index
    %58 = vector.load %arg11[%c0_36, %c61] : memref<1x1864xf32, #tpu.memory_space<vmem>>, vector<1x1800xf32>
    %59 = vector.broadcast %57 : vector<8x1xf32> to vector<8x1800xf32>
    %60 = vector.broadcast %58 : vector<1x1800xf32> to vector<8x1800xf32>
    %61 = arith.mulf %59, %60 : vector<8x1800xf32>
    %62 = arith.addf %55, %61 : vector<8x1800xf32>
    %c8 = arith.constant 8 : index
    %c0_37 = arith.constant 0 : index
    %c0_38 = arith.constant 0 : index
    %63 = vector.load %arg2[%c8, %c0_37, %c0_38] : memref<9x8x1xf32, #tpu.memory_space<vmem>>, vector<1x8x1xf32>
    %64 = vector.shape_cast %63 : vector<1x8x1xf32> to vector<8x1xf32>
    %c0_39 = arith.constant 0 : index
    %c62 = arith.constant 62 : index
    %65 = vector.load %arg11[%c0_39, %c62] : memref<1x1864xf32, #tpu.memory_space<vmem>>, vector<1x1800xf32>
    %66 = vector.broadcast %64 : vector<8x1xf32> to vector<8x1800xf32>
    %67 = vector.broadcast %65 : vector<1x1800xf32> to vector<8x1800xf32>
    %68 = arith.mulf %66, %67 : vector<8x1800xf32>
    %69 = arith.addf %62, %68 : vector<8x1800xf32>
    %c0_40 = arith.constant 0 : index
    %c0_41 = arith.constant 0 : index
    %70 = vector.load %arg3[%c0_40, %c0_41] : memref<8x1xf32, #tpu.memory_space<vmem>>, vector<8x1xf32>
    %71 = vector.broadcast %70 : vector<8x1xf32> to vector<8x1800xf32>
    %72 = arith.addf %69, %71 : vector<8x1800xf32>
    %cst_42 = arith.constant 0.000000e+00 : f32
    %73 = vector.broadcast %cst_42 : f32 to vector<8x1800xf32>
    %74 = arith.maximumf %72, %73 : vector<8x1800xf32>
    %c0_43 = arith.constant 0 : index
    %c0_44 = arith.constant 0 : index
    %75 = vector.load %arg12[%c0_43, %c0_44] : memref<8x1800xf32, #tpu.memory_space<vmem>>, vector<8x1800xf32>
    tpu.vector_store %arg12[%c0_43, %c0_44], %74 {strides = array<i32>} : memref<8x1800xf32, #tpu.memory_space<vmem>>, vector<8x1800xf32>,
    %c0_45 = arith.constant 0 : index
    %c0_46 = arith.constant 0 : index
    %76 = vector.load %arg6[%c0_45, %c0_46] : memref<840x256xbf16, #tpu.memory_space<vmem>>, vector<840x256xbf16>
    %c0_47 = arith.constant 0 : index
    %c0_48 = arith.constant 0 : index
    %77 = vector.load %arg12[%c0_47, %c0_48] : memref<8x1800xf32, #tpu.memory_space<vmem>>, vector<8x840xf32>
    %c0_49 = arith.constant 0 : index
    %c1_50 = arith.constant 1 : index
    %78 = vector.load %arg12[%c0_49, %c1_50] : memref<8x1800xf32, #tpu.memory_space<vmem>>, vector<8x840xf32>
    %79 = arith.maximumf %77, %78 : vector<8x840xf32>
    %c0_51 = arith.constant 0 : index
    %c30_52 = arith.constant 30 : index
    %80 = vector.load %arg12[%c0_51, %c30_52] : memref<8x1800xf32, #tpu.memory_space<vmem>>, vector<8x840xf32>
    %81 = arith.maximumf %79, %80 : vector<8x840xf32>
    %c0_53 = arith.constant 0 : index
    %c31_54 = arith.constant 31 : index
    %82 = vector.load %arg12[%c0_53, %c31_54] : memref<8x1800xf32, #tpu.memory_space<vmem>>, vector<8x840xf32>
    %83 = arith.maximumf %81, %82 : vector<8x840xf32>
    %84 = arith.truncf %83 : vector<8x840xf32> to vector<8x840xbf16>
    %cst_55 = arith.constant dense<0.000000e+00> : vector<8x256xf32>
    %85 = tpu.matmul %84, %76, %cst_55 {dimension_numbers = #tpu.dot_dimension_numbers<[1], [0], [0], [1], [0, 0, 1, 1], [], []>} : vector<8x840xbf16>, vector<840x256xbf16>, vector<8x256xf32> -> vector<8x256xf32>
    %c0_56 = arith.constant 0 : index
    %c0_57 = arith.constant 0 : index
    %86 = vector.load %arg13[%c0_56, %c0_57] : memref<8x576xf32, #tpu.memory_space<vmem>>, vector<8x256xf32>
    tpu.vector_store %arg13[%c0_56, %c0_57], %85 {strides = array<i32>} : memref<8x576xf32, #tpu.memory_space<vmem>>, vector<8x256xf32>,
    %c0_58 = arith.constant 0 : index
    %c900_59 = arith.constant 900 : index
    %87 = vector.load %arg12[%c0_58, %c900_59] : memref<8x1800xf32, #tpu.memory_space<vmem>>, vector<8x840xf32>
    %c0_60 = arith.constant 0 : index
    %c901 = arith.constant 901 : index
    %88 = vector.load %arg12[%c0_60, %c901] : memref<8x1800xf32, #tpu.memory_space<vmem>>, vector<8x840xf32>
    %89 = arith.maximumf %87, %88 : vector<8x840xf32>
    %c0_61 = arith.constant 0 : index
    %c930 = arith.constant 930 : index
    %90 = vector.load %arg12[%c0_61, %c930] : memref<8x1800xf32, #tpu.memory_space<vmem>>, vector<8x840xf32>
    %91 = arith.maximumf %89, %90 : vector<8x840xf32>
    %c0_62 = arith.constant 0 : index
    %c931 = arith.constant 931 : index
    %92 = vector.load %arg12[%c0_62, %c931] : memref<8x1800xf32, #tpu.memory_space<vmem>>, vector<8x840xf32>
    %93 = arith.maximumf %91, %92 : vector<8x840xf32>
    %94 = arith.truncf %93 : vector<8x840xf32> to vector<8x840xbf16>
    %cst_63 = arith.constant dense<0.000000e+00> : vector<8x256xf32>
    %95 = tpu.matmul %94, %76, %cst_63 {dimension_numbers = #tpu.dot_dimension_numbers<[1], [0], [0], [1], [0, 0, 1, 1], [], []>} : vector<8x840xbf16>, vector<840x256xbf16>, vector<8x256xf32> -> vector<8x256xf32>
    %c0_64 = arith.constant 0 : index
    %c256 = arith.constant 256 : index
    %96 = vector.load %arg13[%c0_64, %c256] : memref<8x576xf32, #tpu.memory_space<vmem>>, vector<8x256xf32>
    tpu.vector_store %arg13[%c0_64, %c256], %95 {strides = array<i32>} : memref<8x576xf32, #tpu.memory_space<vmem>>, vector<8x256xf32>,
    %c0_65 = arith.constant 0 : index
    %c0_66 = arith.constant 0 : index
    %97 = vector.load %arg13[%c0_65, %c0_66] : memref<8x576xf32, #tpu.memory_space<vmem>>, vector<8x512xf32>
    %98 = arith.truncf %97 : vector<8x512xf32> to vector<8x512xbf16>
    %c0_67 = arith.constant 0 : index
    %c0_68 = arith.constant 0 : index
    %c0_69 = arith.constant 0 : index
    %99 = vector.load %arg4[%c0_67, %c0_68, %c0_69] : memref<9x16x8xbf16, #tpu.memory_space<vmem>>, vector<1x16x8xbf16>
    %100 = vector.shape_cast %99 : vector<1x16x8xbf16> to vector<16x8xbf16>
    %cst_70 = arith.constant dense<0.000000e+00> : vector<16x512xf32>
    %101 = tpu.matmul %100, %98, %cst_70 {dimension_numbers = #tpu.dot_dimension_numbers<[1], [0], [0], [1], [0, 0, 1, 1], [], []>} : vector<16x8xbf16>, vector<8x512xbf16>, vector<16x512xf32> -> vector<16x512xf32>
    %c0_71 = arith.constant 0 : index
    %c1_72 = arith.constant 1 : index
    %102 = vector.load %arg13[%c0_71, %c1_72] : memref<8x576xf32, #tpu.memory_space<vmem>>, vector<8x512xf32>
    %103 = arith.truncf %102 : vector<8x512xf32> to vector<8x512xbf16>
    %c1_73 = arith.constant 1 : index
    %c0_74 = arith.constant 0 : index
    %c0_75 = arith.constant 0 : index
    %104 = vector.load %arg4[%c1_73, %c0_74, %c0_75] : memref<9x16x8xbf16, #tpu.memory_space<vmem>>, vector<1x16x8xbf16>
    %105 = vector.shape_cast %104 : vector<1x16x8xbf16> to vector<16x8xbf16>
    %cst_76 = arith.constant dense<0.000000e+00> : vector<16x512xf32>
    %106 = tpu.matmul %105, %103, %cst_76 {dimension_numbers = #tpu.dot_dimension_numbers<[1], [0], [0], [1], [0, 0, 1, 1], [], []>} : vector<16x8xbf16>, vector<8x512xbf16>, vector<16x512xf32> -> vector<16x512xf32>
    %107 = arith.addf %101, %106 : vector<16x512xf32>
    %c0_77 = arith.constant 0 : index
    %c2_78 = arith.constant 2 : index
    %108 = vector.load %arg13[%c0_77, %c2_78] : memref<8x576xf32, #tpu.memory_space<vmem>>, vector<8x512xf32>
    %109 = arith.truncf %108 : vector<8x512xf32> to vector<8x512xbf16>
    %c2_79 = arith.constant 2 : index
    %c0_80 = arith.constant 0 : index
    %c0_81 = arith.constant 0 : index
    %110 = vector.load %arg4[%c2_79, %c0_80, %c0_81] : memref<9x16x8xbf16, #tpu.memory_space<vmem>>, vector<1x16x8xbf16>
    %111 = vector.shape_cast %110 : vector<1x16x8xbf16> to vector<16x8xbf16>
    %cst_82 = arith.constant dense<0.000000e+00> : vector<16x512xf32>
    %112 = tpu.matmul %111, %109, %cst_82 {dimension_numbers = #tpu.dot_dimension_numbers<[1], [0], [0], [1], [0, 0, 1, 1], [], []>} : vector<16x8xbf16>, vector<8x512xbf16>, vector<16x512xf32> -> vector<16x512xf32>
    %113 = arith.addf %107, %112 : vector<16x512xf32>
    %c0_83 = arith.constant 0 : index
    %c16 = arith.constant 16 : index
    %114 = vector.load %arg13[%c0_83, %c16] : memref<8x576xf32, #tpu.memory_space<vmem>>, vector<8x512xf32>
    %115 = arith.truncf %114 : vector<8x512xf32> to vector<8x512xbf16>
    %c3_84 = arith.constant 3 : index
    %c0_85 = arith.constant 0 : index
    %c0_86 = arith.constant 0 : index
    %116 = vector.load %arg4[%c3_84, %c0_85, %c0_86] : memref<9x16x8xbf16, #tpu.memory_space<vmem>>, vector<1x16x8xbf16>
    %117 = vector.shape_cast %116 : vector<1x16x8xbf16> to vector<16x8xbf16>
    %cst_87 = arith.constant dense<0.000000e+00> : vector<16x512xf32>
    %118 = tpu.matmul %117, %115, %cst_87 {dimension_numbers = #tpu.dot_dimension_numbers<[1], [0], [0], [1], [0, 0, 1, 1], [], []>} : vector<16x8xbf16>, vector<8x512xbf16>, vector<16x512xf32> -> vector<16x512xf32>
    %119 = arith.addf %113, %118 : vector<16x512xf32>
    %c0_88 = arith.constant 0 : index
    %c17 = arith.constant 17 : index
    %120 = vector.load %arg13[%c0_88, %c17] : memref<8x576xf32, #tpu.memory_space<vmem>>, vector<8x512xf32>
    %121 = arith.truncf %120 : vector<8x512xf32> to vector<8x512xbf16>
    %c4_89 = arith.constant 4 : index
    %c0_90 = arith.constant 0 : index
    %c0_91 = arith.constant 0 : index
    %122 = vector.load %arg4[%c4_89, %c0_90, %c0_91] : memref<9x16x8xbf16, #tpu.memory_space<vmem>>, vector<1x16x8xbf16>
    %123 = vector.shape_cast %122 : vector<1x16x8xbf16> to vector<16x8xbf16>
    %cst_92 = arith.constant dense<0.000000e+00> : vector<16x512xf32>
    %124 = tpu.matmul %123, %121, %cst_92 {dimension_numbers = #tpu.dot_dimension_numbers<[1], [0], [0], [1], [0, 0, 1, 1], [], []>} : vector<16x8xbf16>, vector<8x512xbf16>, vector<16x512xf32> -> vector<16x512xf32>
    %125 = arith.addf %119, %124 : vector<16x512xf32>
    %c0_93 = arith.constant 0 : index
    %c18 = arith.constant 18 : index
    %126 = vector.load %arg13[%c0_93, %c18] : memref<8x576xf32, #tpu.memory_space<vmem>>, vector<8x512xf32>
    %127 = arith.truncf %126 : vector<8x512xf32> to vector<8x512xbf16>
    %c5_94 = arith.constant 5 : index
    %c0_95 = arith.constant 0 : index
    %c0_96 = arith.constant 0 : index
    %128 = vector.load %arg4[%c5_94, %c0_95, %c0_96] : memref<9x16x8xbf16, #tpu.memory_space<vmem>>, vector<1x16x8xbf16>
    %129 = vector.shape_cast %128 : vector<1x16x8xbf16> to vector<16x8xbf16>
    %cst_97 = arith.constant dense<0.000000e+00> : vector<16x512xf32>
    %130 = tpu.matmul %129, %127, %cst_97 {dimension_numbers = #tpu.dot_dimension_numbers<[1], [0], [0], [1], [0, 0, 1, 1], [], []>} : vector<16x8xbf16>, vector<8x512xbf16>, vector<16x512xf32> -> vector<16x512xf32>
    %131 = arith.addf %125, %130 : vector<16x512xf32>
    %c0_98 = arith.constant 0 : index
    %c32_99 = arith.constant 32 : index
    %132 = vector.load %arg13[%c0_98, %c32_99] : memref<8x576xf32, #tpu.memory_space<vmem>>, vector<8x512xf32>
    %133 = arith.truncf %132 : vector<8x512xf32> to vector<8x512xbf16>
    %c6_100 = arith.constant 6 : index
    %c0_101 = arith.constant 0 : index
    %c0_102 = arith.constant 0 : index
    %134 = vector.load %arg4[%c6_100, %c0_101, %c0_102] : memref<9x16x8xbf16, #tpu.memory_space<vmem>>, vector<1x16x8xbf16>
    %135 = vector.shape_cast %134 : vector<1x16x8xbf16> to vector<16x8xbf16>
    %cst_103 = arith.constant dense<0.000000e+00> : vector<16x512xf32>
    %136 = tpu.matmul %135, %133, %cst_103 {dimension_numbers = #tpu.dot_dimension_numbers<[1], [0], [0], [1], [0, 0, 1, 1], [], []>} : vector<16x8xbf16>, vector<8x512xbf16>, vector<16x512xf32> -> vector<16x512xf32>
    %137 = arith.addf %131, %136 : vector<16x512xf32>
    %c0_104 = arith.constant 0 : index
    %c33 = arith.constant 33 : index
    %138 = vector.load %arg13[%c0_104, %c33] : memref<8x576xf32, #tpu.memory_space<vmem>>, vector<8x512xf32>
    %139 = arith.truncf %138 : vector<8x512xf32> to vector<8x512xbf16>
    %c7_105 = arith.constant 7 : index
    %c0_106 = arith.constant 0 : index
    %c0_107 = arith.constant 0 : index
    %140 = vector.load %arg4[%c7_105, %c0_106, %c0_107] : memref<9x16x8xbf16, #tpu.memory_space<vmem>>, vector<1x16x8xbf16>
    %141 = vector.shape_cast %140 : vector<1x16x8xbf16> to vector<16x8xbf16>
    %cst_108 = arith.constant dense<0.000000e+00> : vector<16x512xf32>
    %142 = tpu.matmul %141, %139, %cst_108 {dimension_numbers = #tpu.dot_dimension_numbers<[1], [0], [0], [1], [0, 0, 1, 1], [], []>} : vector<16x8xbf16>, vector<8x512xbf16>, vector<16x512xf32> -> vector<16x512xf32>
    %143 = arith.addf %137, %142 : vector<16x512xf32>
    %c0_109 = arith.constant 0 : index
    %c34 = arith.constant 34 : index
    %144 = vector.load %arg13[%c0_109, %c34] : memref<8x576xf32, #tpu.memory_space<vmem>>, vector<8x512xf32>
    %145 = arith.truncf %144 : vector<8x512xf32> to vector<8x512xbf16>
    %c8_110 = arith.constant 8 : index
    %c0_111 = arith.constant 0 : index
    %c0_112 = arith.constant 0 : index
    %146 = vector.load %arg4[%c8_110, %c0_111, %c0_112] : memref<9x16x8xbf16, #tpu.memory_space<vmem>>, vector<1x16x8xbf16>
    %147 = vector.shape_cast %146 : vector<1x16x8xbf16> to vector<16x8xbf16>
    %cst_113 = arith.constant dense<0.000000e+00> : vector<16x512xf32>
    %148 = tpu.matmul %147, %145, %cst_113 {dimension_numbers = #tpu.dot_dimension_numbers<[1], [0], [0], [1], [0, 0, 1, 1], [], []>} : vector<16x8xbf16>, vector<8x512xbf16>, vector<16x512xf32> -> vector<16x512xf32>
    %149 = arith.addf %143, %148 : vector<16x512xf32>
    %c0_114 = arith.constant 0 : index
    %c0_115 = arith.constant 0 : index
    %150 = vector.load %arg5[%c0_114, %c0_115] : memref<16x1xf32, #tpu.memory_space<vmem>>, vector<16x1xf32>
    %151 = vector.broadcast %150 : vector<16x1xf32> to vector<16x512xf32>
    %152 = arith.addf %149, %151 : vector<16x512xf32>
    %cst_116 = arith.constant 0.000000e+00 : f32
    %153 = vector.broadcast %cst_116 : f32 to vector<16x512xf32>
    %154 = arith.maximumf %152, %153 : vector<16x512xf32>
    %c0_117 = arith.constant 0 : index
    %c0_118 = arith.constant 0 : index
    %155 = vector.load %arg14[%c0_117, %c0_118] : memref<16x512xf32, #tpu.memory_space<vmem>>, vector<16x512xf32>
    tpu.vector_store %arg14[%c0_117, %c0_118], %154 {strides = array<i32>} : memref<16x512xf32, #tpu.memory_space<vmem>>, vector<16x512xf32>,
    %c0_119 = arith.constant 0 : index
    %c0_120 = arith.constant 0 : index
    %156 = vector.load %arg7[%c0_119, %c0_120] : memref<224x49xbf16, #tpu.memory_space<vmem>>, vector<224x49xbf16>
    %c0_121 = arith.constant 0 : index
    %c0_122 = arith.constant 0 : index
    %157 = vector.load %arg14[%c0_121, %c0_122] : memref<16x512xf32, #tpu.memory_space<vmem>>, vector<16x224xf32>
    %c0_123 = arith.constant 0 : index
    %c1_124 = arith.constant 1 : index
    %158 = vector.load %arg14[%c0_123, %c1_124] : memref<16x512xf32, #tpu.memory_space<vmem>>, vector<16x224xf32>
    %159 = arith.maximumf %157, %158 : vector<16x224xf32>
    %c0_125 = arith.constant 0 : index
    %c16_126 = arith.constant 16 : index
    %160 = vector.load %arg14[%c0_125, %c16_126] : memref<16x512xf32, #tpu.memory_space<vmem>>, vector<16x224xf32>
    %161 = arith.maximumf %159, %160 : vector<16x224xf32>
    %c0_127 = arith.constant 0 : index
    %c17_128 = arith.constant 17 : index
    %162 = vector.load %arg14[%c0_127, %c17_128] : memref<16x512xf32, #tpu.memory_space<vmem>>, vector<16x224xf32>
    %163 = arith.maximumf %161, %162 : vector<16x224xf32>
    %164 = arith.truncf %163 : vector<16x224xf32> to vector<16x224xbf16>
    %cst_129 = arith.constant dense<0.000000e+00> : vector<16x49xf32>
    %165 = tpu.matmul %164, %156, %cst_129 {dimension_numbers = #tpu.dot_dimension_numbers<[1], [0], [0], [1], [0, 0, 1, 1], [], []>} : vector<16x224xbf16>, vector<224x49xbf16>, vector<16x49xf32> -> vector<16x49xf32>
    %c0_130 = arith.constant 0 : index
    %c0_131 = arith.constant 0 : index
    %166 = vector.load %arg15[%c0_130, %c0_131] : memref<16x49xf32, #tpu.memory_space<vmem>>, vector<16x49xf32>
    tpu.vector_store %arg15[%c0_130, %c0_131], %165 {strides = array<i32>} : memref<16x49xf32, #tpu.memory_space<vmem>>, vector<16x49xf32>,
    %c0_132 = arith.constant 0 : index
    %c0_133 = arith.constant 0 : index
    %167 = vector.load %arg15[%c0_132, %c0_133] : memref<16x49xf32, #tpu.memory_space<vmem>>, vector<1x49xf32>
    %c0_134 = arith.constant 0 : index
    %c0_135 = arith.constant 0 : index
    %168 = vector.load %arg16[%c0_134, %c0_135] : memref<2x784xf32, #tpu.memory_space<vmem>>, vector<1x49xf32>
    tpu.vector_store %arg16[%c0_134, %c0_135], %167 {strides = array<i32>} : memref<2x784xf32, #tpu.memory_space<vmem>>, vector<1x49xf32>,
    %c1_136 = arith.constant 1 : index
    %c0_137 = arith.constant 0 : index
    %169 = vector.load %arg15[%c1_136, %c0_137] : memref<16x49xf32, #tpu.memory_space<vmem>>, vector<1x49xf32>
    %c0_138 = arith.constant 0 : index
    %c49 = arith.constant 49 : index
    %170 = vector.load %arg16[%c0_138, %c49] : memref<2x784xf32, #tpu.memory_space<vmem>>, vector<1x49xf32>
    tpu.vector_store %arg16[%c0_138, %c49], %169 {strides = array<i32>} : memref<2x784xf32, #tpu.memory_space<vmem>>, vector<1x49xf32>,
    %c2_139 = arith.constant 2 : index
    %c0_140 = arith.constant 0 : index
    %171 = vector.load %arg15[%c2_139, %c0_140] : memref<16x49xf32, #tpu.memory_space<vmem>>, vector<1x49xf32>
    %c0_141 = arith.constant 0 : index
    %c98 = arith.constant 98 : index
    %172 = vector.load %arg16[%c0_141, %c98] : memref<2x784xf32, #tpu.memory_space<vmem>>, vector<1x49xf32>
    tpu.vector_store %arg16[%c0_141, %c98], %171 {strides = array<i32>} : memref<2x784xf32, #tpu.memory_space<vmem>>, vector<1x49xf32>,
    %c3_142 = arith.constant 3 : index
    %c0_143 = arith.constant 0 : index
    %173 = vector.load %arg15[%c3_142, %c0_143] : memref<16x49xf32, #tpu.memory_space<vmem>>, vector<1x49xf32>
    %c0_144 = arith.constant 0 : index
    %c147 = arith.constant 147 : index
    %174 = vector.load %arg16[%c0_144, %c147] : memref<2x784xf32, #tpu.memory_space<vmem>>, vector<1x49xf32>
    tpu.vector_store %arg16[%c0_144, %c147], %173 {strides = array<i32>} : memref<2x784xf32, #tpu.memory_space<vmem>>, vector<1x49xf32>,
    %c4_145 = arith.constant 4 : index
    %c0_146 = arith.constant 0 : index
    %175 = vector.load %arg15[%c4_145, %c0_146] : memref<16x49xf32, #tpu.memory_space<vmem>>, vector<1x49xf32>
    %c0_147 = arith.constant 0 : index
    %c196 = arith.constant 196 : index
    %176 = vector.load %arg16[%c0_147, %c196] : memref<2x784xf32, #tpu.memory_space<vmem>>, vector<1x49xf32>
    tpu.vector_store %arg16[%c0_147, %c196], %175 {strides = array<i32>} : memref<2x784xf32, #tpu.memory_space<vmem>>, vector<1x49xf32>,
    %c5_148 = arith.constant 5 : index
    %c0_149 = arith.constant 0 : index
    %177 = vector.load %arg15[%c5_148, %c0_149] : memref<16x49xf32, #tpu.memory_space<vmem>>, vector<1x49xf32>
    %c0_150 = arith.constant 0 : index
    %c245 = arith.constant 245 : index
    %178 = vector.load %arg16[%c0_150, %c245] : memref<2x784xf32, #tpu.memory_space<vmem>>, vector<1x49xf32>
    tpu.vector_store %arg16[%c0_150, %c245], %177 {strides = array<i32>} : memref<2x784xf32, #tpu.memory_space<vmem>>, vector<1x49xf32>,
    %c6_151 = arith.constant 6 : index
    %c0_152 = arith.constant 0 : index
    %179 = vector.load %arg15[%c6_151, %c0_152] : memref<16x49xf32, #tpu.memory_space<vmem>>, vector<1x49xf32>
    %c0_153 = arith.constant 0 : index
    %c294 = arith.constant 294 : index
    %180 = vector.load %arg16[%c0_153, %c294] : memref<2x784xf32, #tpu.memory_space<vmem>>, vector<1x49xf32>
    tpu.vector_store %arg16[%c0_153, %c294], %179 {strides = array<i32>} : memref<2x784xf32, #tpu.memory_space<vmem>>, vector<1x49xf32>,
    %c7_154 = arith.constant 7 : index
    %c0_155 = arith.constant 0 : index
    %181 = vector.load %arg15[%c7_154, %c0_155] : memref<16x49xf32, #tpu.memory_space<vmem>>, vector<1x49xf32>
    %c0_156 = arith.constant 0 : index
    %c343 = arith.constant 343 : index
    %182 = vector.load %arg16[%c0_156, %c343] : memref<2x784xf32, #tpu.memory_space<vmem>>, vector<1x49xf32>
    tpu.vector_store %arg16[%c0_156, %c343], %181 {strides = array<i32>} : memref<2x784xf32, #tpu.memory_space<vmem>>, vector<1x49xf32>,
    %c8_157 = arith.constant 8 : index
    %c0_158 = arith.constant 0 : index
    %183 = vector.load %arg15[%c8_157, %c0_158] : memref<16x49xf32, #tpu.memory_space<vmem>>, vector<1x49xf32>
    %c0_159 = arith.constant 0 : index
    %c392 = arith.constant 392 : index
    %184 = vector.load %arg16[%c0_159, %c392] : memref<2x784xf32, #tpu.memory_space<vmem>>, vector<1x49xf32>
    tpu.vector_store %arg16[%c0_159, %c392], %183 {strides = array<i32>} : memref<2x784xf32, #tpu.memory_space<vmem>>, vector<1x49xf32>,
    %c9 = arith.constant 9 : index
    %c0_160 = arith.constant 0 : index
    %185 = vector.load %arg15[%c9, %c0_160] : memref<16x49xf32, #tpu.memory_space<vmem>>, vector<1x49xf32>
    %c0_161 = arith.constant 0 : index
    %c441 = arith.constant 441 : index
    %186 = vector.load %arg16[%c0_161, %c441] : memref<2x784xf32, #tpu.memory_space<vmem>>, vector<1x49xf32>
    tpu.vector_store %arg16[%c0_161, %c441], %185 {strides = array<i32>} : memref<2x784xf32, #tpu.memory_space<vmem>>, vector<1x49xf32>,
    %c10 = arith.constant 10 : index
    %c0_162 = arith.constant 0 : index
    %187 = vector.load %arg15[%c10, %c0_162] : memref<16x49xf32, #tpu.memory_space<vmem>>, vector<1x49xf32>
    %c0_163 = arith.constant 0 : index
    %c490 = arith.constant 490 : index
    %188 = vector.load %arg16[%c0_163, %c490] : memref<2x784xf32, #tpu.memory_space<vmem>>, vector<1x49xf32>
    tpu.vector_store %arg16[%c0_163, %c490], %187 {strides = array<i32>} : memref<2x784xf32, #tpu.memory_space<vmem>>, vector<1x49xf32>,
    %c11 = arith.constant 11 : index
    %c0_164 = arith.constant 0 : index
    %189 = vector.load %arg15[%c11, %c0_164] : memref<16x49xf32, #tpu.memory_space<vmem>>, vector<1x49xf32>
    %c0_165 = arith.constant 0 : index
    %c539 = arith.constant 539 : index
    %190 = vector.load %arg16[%c0_165, %c539] : memref<2x784xf32, #tpu.memory_space<vmem>>, vector<1x49xf32>
    tpu.vector_store %arg16[%c0_165, %c539], %189 {strides = array<i32>} : memref<2x784xf32, #tpu.memory_space<vmem>>, vector<1x49xf32>,
    %c12 = arith.constant 12 : index
    %c0_166 = arith.constant 0 : index
    %191 = vector.load %arg15[%c12, %c0_166] : memref<16x49xf32, #tpu.memory_space<vmem>>, vector<1x49xf32>
    %c0_167 = arith.constant 0 : index
    %c588 = arith.constant 588 : index
    %192 = vector.load %arg16[%c0_167, %c588] : memref<2x784xf32, #tpu.memory_space<vmem>>, vector<1x49xf32>
    tpu.vector_store %arg16[%c0_167, %c588], %191 {strides = array<i32>} : memref<2x784xf32, #tpu.memory_space<vmem>>, vector<1x49xf32>,
    %c13 = arith.constant 13 : index
    %c0_168 = arith.constant 0 : index
    %193 = vector.load %arg15[%c13, %c0_168] : memref<16x49xf32, #tpu.memory_space<vmem>>, vector<1x49xf32>
    %c0_169 = arith.constant 0 : index
    %c637 = arith.constant 637 : index
    %194 = vector.load %arg16[%c0_169, %c637] : memref<2x784xf32, #tpu.memory_space<vmem>>, vector<1x49xf32>
    tpu.vector_store %arg16[%c0_169, %c637], %193 {strides = array<i32>} : memref<2x784xf32, #tpu.memory_space<vmem>>, vector<1x49xf32>,
    %c14 = arith.constant 14 : index
    %c0_170 = arith.constant 0 : index
    %195 = vector.load %arg15[%c14, %c0_170] : memref<16x49xf32, #tpu.memory_space<vmem>>, vector<1x49xf32>
    %c0_171 = arith.constant 0 : index
    %c686 = arith.constant 686 : index
    %196 = vector.load %arg16[%c0_171, %c686] : memref<2x784xf32, #tpu.memory_space<vmem>>, vector<1x49xf32>
    tpu.vector_store %arg16[%c0_171, %c686], %195 {strides = array<i32>} : memref<2x784xf32, #tpu.memory_space<vmem>>, vector<1x49xf32>,
    %c15 = arith.constant 15 : index
    %c0_172 = arith.constant 0 : index
    %197 = vector.load %arg15[%c15, %c0_172] : memref<16x49xf32, #tpu.memory_space<vmem>>, vector<1x49xf32>
    %c0_173 = arith.constant 0 : index
    %c735 = arith.constant 735 : index
    %198 = vector.load %arg16[%c0_173, %c735] : memref<2x784xf32, #tpu.memory_space<vmem>>, vector<1x49xf32>
    tpu.vector_store %arg16[%c0_173, %c735], %197 {strides = array<i32>} : memref<2x784xf32, #tpu.memory_space<vmem>>, vector<1x49xf32>,
    %c0_174 = arith.constant 0 : index
    %c256_175 = arith.constant 256 : index
    %199 = vector.load %arg14[%c0_174, %c256_175] : memref<16x512xf32, #tpu.memory_space<vmem>>, vector<16x224xf32>
    %c0_176 = arith.constant 0 : index
    %c257 = arith.constant 257 : index
    %200 = vector.load %arg14[%c0_176, %c257] : memref<16x512xf32, #tpu.memory_space<vmem>>, vector<16x224xf32>
    %201 = arith.maximumf %199, %200 : vector<16x224xf32>
    %c0_177 = arith.constant 0 : index
    %c272 = arith.constant 272 : index
    %202 = vector.load %arg14[%c0_177, %c272] : memref<16x512xf32, #tpu.memory_space<vmem>>, vector<16x224xf32>
    %203 = arith.maximumf %201, %202 : vector<16x224xf32>
    %c0_178 = arith.constant 0 : index
    %c273 = arith.constant 273 : index
    %204 = vector.load %arg14[%c0_178, %c273] : memref<16x512xf32, #tpu.memory_space<vmem>>, vector<16x224xf32>
    %205 = arith.maximumf %203, %204 : vector<16x224xf32>
    %206 = arith.truncf %205 : vector<16x224xf32> to vector<16x224xbf16>
    %cst_179 = arith.constant dense<0.000000e+00> : vector<16x49xf32>
    %207 = tpu.matmul %206, %156, %cst_179 {dimension_numbers = #tpu.dot_dimension_numbers<[1], [0], [0], [1], [0, 0, 1, 1], [], []>} : vector<16x224xbf16>, vector<224x49xbf16>, vector<16x49xf32> -> vector<16x49xf32>
    %c0_180 = arith.constant 0 : index
    %c0_181 = arith.constant 0 : index
    %208 = vector.load %arg15[%c0_180, %c0_181] : memref<16x49xf32, #tpu.memory_space<vmem>>, vector<16x49xf32>
    tpu.vector_store %arg15[%c0_180, %c0_181], %207 {strides = array<i32>} : memref<16x49xf32, #tpu.memory_space<vmem>>, vector<16x49xf32>,
    %c0_182 = arith.constant 0 : index
    %c0_183 = arith.constant 0 : index
    %209 = vector.load %arg15[%c0_182, %c0_183] : memref<16x49xf32, #tpu.memory_space<vmem>>, vector<1x49xf32>
    %c1_184 = arith.constant 1 : index
    %c0_185 = arith.constant 0 : index
    %210 = vector.load %arg16[%c1_184, %c0_185] : memref<2x784xf32, #tpu.memory_space<vmem>>, vector<1x49xf32>
    tpu.vector_store %arg16[%c1_184, %c0_185], %209 {strides = array<i32>} : memref<2x784xf32, #tpu.memory_space<vmem>>, vector<1x49xf32>,
    %c1_186 = arith.constant 1 : index
    %c0_187 = arith.constant 0 : index
    %211 = vector.load %arg15[%c1_186, %c0_187] : memref<16x49xf32, #tpu.memory_space<vmem>>, vector<1x49xf32>
    %c1_188 = arith.constant 1 : index
    %c49_189 = arith.constant 49 : index
    %212 = vector.load %arg16[%c1_188, %c49_189] : memref<2x784xf32, #tpu.memory_space<vmem>>, vector<1x49xf32>
    tpu.vector_store %arg16[%c1_188, %c49_189], %211 {strides = array<i32>} : memref<2x784xf32, #tpu.memory_space<vmem>>, vector<1x49xf32>,
    %c2_190 = arith.constant 2 : index
    %c0_191 = arith.constant 0 : index
    %213 = vector.load %arg15[%c2_190, %c0_191] : memref<16x49xf32, #tpu.memory_space<vmem>>, vector<1x49xf32>
    %c1_192 = arith.constant 1 : index
    %c98_193 = arith.constant 98 : index
    %214 = vector.load %arg16[%c1_192, %c98_193] : memref<2x784xf32, #tpu.memory_space<vmem>>, vector<1x49xf32>
    tpu.vector_store %arg16[%c1_192, %c98_193], %213 {strides = array<i32>} : memref<2x784xf32, #tpu.memory_space<vmem>>, vector<1x49xf32>,
    %c3_194 = arith.constant 3 : index
    %c0_195 = arith.constant 0 : index
    %215 = vector.load %arg15[%c3_194, %c0_195] : memref<16x49xf32, #tpu.memory_space<vmem>>, vector<1x49xf32>
    %c1_196 = arith.constant 1 : index
    %c147_197 = arith.constant 147 : index
    %216 = vector.load %arg16[%c1_196, %c147_197] : memref<2x784xf32, #tpu.memory_space<vmem>>, vector<1x49xf32>
    tpu.vector_store %arg16[%c1_196, %c147_197], %215 {strides = array<i32>} : memref<2x784xf32, #tpu.memory_space<vmem>>, vector<1x49xf32>,
    %c4_198 = arith.constant 4 : index
    %c0_199 = arith.constant 0 : index
    %217 = vector.load %arg15[%c4_198, %c0_199] : memref<16x49xf32, #tpu.memory_space<vmem>>, vector<1x49xf32>
    %c1_200 = arith.constant 1 : index
    %c196_201 = arith.constant 196 : index
    %218 = vector.load %arg16[%c1_200, %c196_201] : memref<2x784xf32, #tpu.memory_space<vmem>>, vector<1x49xf32>
    tpu.vector_store %arg16[%c1_200, %c196_201], %217 {strides = array<i32>} : memref<2x784xf32, #tpu.memory_space<vmem>>, vector<1x49xf32>,
    %c5_202 = arith.constant 5 : index
    %c0_203 = arith.constant 0 : index
    %219 = vector.load %arg15[%c5_202, %c0_203] : memref<16x49xf32, #tpu.memory_space<vmem>>, vector<1x49xf32>
    %c1_204 = arith.constant 1 : index
    %c245_205 = arith.constant 245 : index
    %220 = vector.load %arg16[%c1_204, %c245_205] : memref<2x784xf32, #tpu.memory_space<vmem>>, vector<1x49xf32>
    tpu.vector_store %arg16[%c1_204, %c245_205], %219 {strides = array<i32>} : memref<2x784xf32, #tpu.memory_space<vmem>>, vector<1x49xf32>,
    %c6_206 = arith.constant 6 : index
    %c0_207 = arith.constant 0 : index
    %221 = vector.load %arg15[%c6_206, %c0_207] : memref<16x49xf32, #tpu.memory_space<vmem>>, vector<1x49xf32>
    %c1_208 = arith.constant 1 : index
    %c294_209 = arith.constant 294 : index
    %222 = vector.load %arg16[%c1_208, %c294_209] : memref<2x784xf32, #tpu.memory_space<vmem>>, vector<1x49xf32>
    tpu.vector_store %arg16[%c1_208, %c294_209], %221 {strides = array<i32>} : memref<2x784xf32, #tpu.memory_space<vmem>>, vector<1x49xf32>,
    %c7_210 = arith.constant 7 : index
    %c0_211 = arith.constant 0 : index
    %223 = vector.load %arg15[%c7_210, %c0_211] : memref<16x49xf32, #tpu.memory_space<vmem>>, vector<1x49xf32>
    %c1_212 = arith.constant 1 : index
    %c343_213 = arith.constant 343 : index
    %224 = vector.load %arg16[%c1_212, %c343_213] : memref<2x784xf32, #tpu.memory_space<vmem>>, vector<1x49xf32>
    tpu.vector_store %arg16[%c1_212, %c343_213], %223 {strides = array<i32>} : memref<2x784xf32, #tpu.memory_space<vmem>>, vector<1x49xf32>,
    %c8_214 = arith.constant 8 : index
    %c0_215 = arith.constant 0 : index
    %225 = vector.load %arg15[%c8_214, %c0_215] : memref<16x49xf32, #tpu.memory_space<vmem>>, vector<1x49xf32>
    %c1_216 = arith.constant 1 : index
    %c392_217 = arith.constant 392 : index
    %226 = vector.load %arg16[%c1_216, %c392_217] : memref<2x784xf32, #tpu.memory_space<vmem>>, vector<1x49xf32>
    tpu.vector_store %arg16[%c1_216, %c392_217], %225 {strides = array<i32>} : memref<2x784xf32, #tpu.memory_space<vmem>>, vector<1x49xf32>,
    %c9_218 = arith.constant 9 : index
    %c0_219 = arith.constant 0 : index
    %227 = vector.load %arg15[%c9_218, %c0_219] : memref<16x49xf32, #tpu.memory_space<vmem>>, vector<1x49xf32>
    %c1_220 = arith.constant 1 : index
    %c441_221 = arith.constant 441 : index
    %228 = vector.load %arg16[%c1_220, %c441_221] : memref<2x784xf32, #tpu.memory_space<vmem>>, vector<1x49xf32>
    tpu.vector_store %arg16[%c1_220, %c441_221], %227 {strides = array<i32>} : memref<2x784xf32, #tpu.memory_space<vmem>>, vector<1x49xf32>,
    %c10_222 = arith.constant 10 : index
    %c0_223 = arith.constant 0 : index
    %229 = vector.load %arg15[%c10_222, %c0_223] : memref<16x49xf32, #tpu.memory_space<vmem>>, vector<1x49xf32>
    %c1_224 = arith.constant 1 : index
    %c490_225 = arith.constant 490 : index
    %230 = vector.load %arg16[%c1_224, %c490_225] : memref<2x784xf32, #tpu.memory_space<vmem>>, vector<1x49xf32>
    tpu.vector_store %arg16[%c1_224, %c490_225], %229 {strides = array<i32>} : memref<2x784xf32, #tpu.memory_space<vmem>>, vector<1x49xf32>,
    %c11_226 = arith.constant 11 : index
    %c0_227 = arith.constant 0 : index
    %231 = vector.load %arg15[%c11_226, %c0_227] : memref<16x49xf32, #tpu.memory_space<vmem>>, vector<1x49xf32>
    %c1_228 = arith.constant 1 : index
    %c539_229 = arith.constant 539 : index
    %232 = vector.load %arg16[%c1_228, %c539_229] : memref<2x784xf32, #tpu.memory_space<vmem>>, vector<1x49xf32>
    tpu.vector_store %arg16[%c1_228, %c539_229], %231 {strides = array<i32>} : memref<2x784xf32, #tpu.memory_space<vmem>>, vector<1x49xf32>,
    %c12_230 = arith.constant 12 : index
    %c0_231 = arith.constant 0 : index
    %233 = vector.load %arg15[%c12_230, %c0_231] : memref<16x49xf32, #tpu.memory_space<vmem>>, vector<1x49xf32>
    %c1_232 = arith.constant 1 : index
    %c588_233 = arith.constant 588 : index
    %234 = vector.load %arg16[%c1_232, %c588_233] : memref<2x784xf32, #tpu.memory_space<vmem>>, vector<1x49xf32>
    tpu.vector_store %arg16[%c1_232, %c588_233], %233 {strides = array<i32>} : memref<2x784xf32, #tpu.memory_space<vmem>>, vector<1x49xf32>,
    %c13_234 = arith.constant 13 : index
    %c0_235 = arith.constant 0 : index
    %235 = vector.load %arg15[%c13_234, %c0_235] : memref<16x49xf32, #tpu.memory_space<vmem>>, vector<1x49xf32>
    %c1_236 = arith.constant 1 : index
    %c637_237 = arith.constant 637 : index
    %236 = vector.load %arg16[%c1_236, %c637_237] : memref<2x784xf32, #tpu.memory_space<vmem>>, vector<1x49xf32>
    tpu.vector_store %arg16[%c1_236, %c637_237], %235 {strides = array<i32>} : memref<2x784xf32, #tpu.memory_space<vmem>>, vector<1x49xf32>,
    %c14_238 = arith.constant 14 : index
    %c0_239 = arith.constant 0 : index
    %237 = vector.load %arg15[%c14_238, %c0_239] : memref<16x49xf32, #tpu.memory_space<vmem>>, vector<1x49xf32>
    %c1_240 = arith.constant 1 : index
    %c686_241 = arith.constant 686 : index
    %238 = vector.load %arg16[%c1_240, %c686_241] : memref<2x784xf32, #tpu.memory_space<vmem>>, vector<1x49xf32>
    tpu.vector_store %arg16[%c1_240, %c686_241], %237 {strides = array<i32>} : memref<2x784xf32, #tpu.memory_space<vmem>>, vector<1x49xf32>,
    %c15_242 = arith.constant 15 : index
    %c0_243 = arith.constant 0 : index
    %239 = vector.load %arg15[%c15_242, %c0_243] : memref<16x49xf32, #tpu.memory_space<vmem>>, vector<1x49xf32>
    %c1_244 = arith.constant 1 : index
    %c735_245 = arith.constant 735 : index
    %240 = vector.load %arg16[%c1_244, %c735_245] : memref<2x784xf32, #tpu.memory_space<vmem>>, vector<1x49xf32>
    tpu.vector_store %arg16[%c1_244, %c735_245], %239 {strides = array<i32>} : memref<2x784xf32, #tpu.memory_space<vmem>>, vector<1x49xf32>,
    %c0_246 = arith.constant 0 : index
    %c0_247 = arith.constant 0 : index
    %241 = vector.load %arg16[%c0_246, %c0_247] : memref<2x784xf32, #tpu.memory_space<vmem>>, vector<2x784xf32>
    %242 = arith.truncf %241 : vector<2x784xf32> to vector<2x784xbf16>
    %c0_248 = arith.constant 0 : index
    %c0_249 = arith.constant 0 : index
    %243 = vector.load %arg8[%c0_248, %c0_249] : memref<784x128xbf16, #tpu.memory_space<vmem>>, vector<784x128xbf16>
    %cst_250 = arith.constant dense<0.000000e+00> : vector<2x128xf32>
    %244 = tpu.matmul %242, %243, %cst_250 {dimension_numbers = #tpu.dot_dimension_numbers<[1], [0], [0], [1], [0, 0, 1, 1], [], []>} : vector<2x784xbf16>, vector<784x128xbf16>, vector<2x128xf32> -> vector<2x128xf32>
    %c0_251 = arith.constant 0 : index
    %c0_252 = arith.constant 0 : index
    %245 = vector.load %arg9[%c0_251, %c0_252] : memref<1x128xf32, #tpu.memory_space<vmem>>, vector<1x128xf32>
    %246 = vector.broadcast %245 : vector<1x128xf32> to vector<2x128xf32>
    %247 = arith.addf %244, %246 : vector<2x128xf32>
    %c0_253 = arith.constant 0 : index
    %c0_254 = arith.constant 0 : index
    %248 = vector.load %arg10[%c0_253, %c0_254] : memref<2x128xf32, #tpu.memory_space<vmem>>, vector<2x128xf32>
    tpu.vector_store %arg10[%c0_253, %c0_254], %247 {strides = array<i32>} : memref<2x128xf32, #tpu.memory_space<vmem>>, vector<2x128xf32>,
    return
  }
  func.func @transform_0(%arg0: i32) -> (i32, i32) {
    %c0_i32 = arith.constant 0 : i32
    %c0_i32_0 = arith.constant 0 : i32
    return %arg0, %c0_i32 : i32, i32
  }
  func.func @transform_1(%arg0: i32) -> (i32, i32, i32) {
    %c0_i32 = arith.constant 0 : i32
    %c0_i32_0 = arith.constant 0 : i32
    %c0_i32_1 = arith.constant 0 : i32
    %c0_i32_2 = arith.constant 0 : i32
    return %c0_i32, %c0_i32_0, %c0_i32_1 : i32, i32, i32
  }
  func.func @transform_2(%arg0: i32) -> (i32, i32) {
    %c0_i32 = arith.constant 0 : i32
    %c0_i32_0 = arith.constant 0 : i32
    %c0_i32_1 = arith.constant 0 : i32
    return %c0_i32, %c0_i32_0 : i32, i32
  }
  func.func @transform_3(%arg0: i32) -> (i32, i32, i32) {
    %c0_i32 = arith.constant 0 : i32
    %c0_i32_0 = arith.constant 0 : i32
    %c0_i32_1 = arith.constant 0 : i32
    %c0_i32_2 = arith.constant 0 : i32
    return %c0_i32, %c0_i32_0, %c0_i32_1 : i32, i32, i32
  }
  func.func @transform_4(%arg0: i32) -> (i32, i32) {
    %c0_i32 = arith.constant 0 : i32
    %c0_i32_0 = arith.constant 0 : i32
    %c0_i32_1 = arith.constant 0 : i32
    return %c0_i32, %c0_i32_0 : i32, i32
  }
  func.func @transform_5(%arg0: i32) -> (i32, i32) {
    %c0_i32 = arith.constant 0 : i32
    %c0_i32_0 = arith.constant 0 : i32
    %c0_i32_1 = arith.constant 0 : i32
    return %c0_i32, %c0_i32_0 : i32, i32
  }
  func.func @transform_6(%arg0: i32) -> (i32, i32) {
    %c0_i32 = arith.constant 0 : i32
    %c0_i32_0 = arith.constant 0 : i32
    %c0_i32_1 = arith.constant 0 : i32
    return %c0_i32, %c0_i32_0 : i32, i32
  }
  func.func @transform_7(%arg0: i32) -> (i32, i32) {
    %c0_i32 = arith.constant 0 : i32
    %c0_i32_0 = arith.constant 0 : i32
    %c0_i32_1 = arith.constant 0 : i32
    return %c0_i32, %c0_i32_0 : i32, i32
  }
  func.func @transform_8(%arg0: i32) -> (i32, i32) {
    %c0_i32 = arith.constant 0 : i32
    %c0_i32_0 = arith.constant 0 : i32
    %c0_i32_1 = arith.constant 0 : i32
    return %c0_i32, %c0_i32_0 : i32, i32
  }
  func.func @transform_9(%arg0: i32) -> (i32, i32) {
    %c0_i32 = arith.constant 0 : i32
    %c0_i32_0 = arith.constant 0 : i32
    return %arg0, %c0_i32 : i32, i32
  }
}

</mosaic_0001>

<bundles_post_ra>
// kernel: cnn_forward.1
= control target key start
LH: loop header
LB: loop body
LE: loop exit
PB: predicated region body
PF: predicated region fallthrough
CT: control target
= control target key end

     0   :  { %14 = vsyncpa [#allocation9], 0  ;;  %s8123_s0 = inlined_call_operand.vmem [shape: f32[2,900], index: 0, kind: input, shape index: {}]   ;;  %s8124_s1 = inlined_call_operand.vmem [shape: f32[9,8,1], index: 1, kind: input, shape index: {}]   ;;  %s8125_s2 = inlined_call_operand.vmem [shape: f32[8,1], index: 2, kind: input, shape index: {}]   ;;  %s8126_s3 = inlined_call_operand.vmem [shape: bf16[9,16,8], index: 3, kind: input, shape index: {}]   ;;  %s8127_s4 = inlined_call_operand.vmem [shape: f32[16,1], index: 4, kind: input, shape index: {}]   ;;  %s8128_s5 = inlined_call_operand.hbm [shape: bf16[840,256], index: 5, kind: input, shape index: {}]   ;;  %s8129_s6 = inlined_call_operand.vmem [shape: bf16[224,49], index: 6, kind: input, shape index: {}]   ;;  %s8130_s7 = inlined_call_operand.vmem [shape: bf16[784,128], index: 7, kind: input, shape index: {}]   ;;  %s8131_s8 = inlined_call_operand.vmem [shape: f32[1,128], index: 8, kind: input, shape index: {}]   ;;  %s8132_s9 = inlined_call_operand.hbm [shape: f32[2,128], index: 9, kind: output, shape index: {}]  }
   0x1   :  { %15 = vsyncpa [#allocation10], 0  ;;  %s5904_s30 = smov [#allocation8]   ;;  %s5856_s13 = scalar_lea.hbm %s8128_s5, 13440 }
   0x2   :  { %s31_s10 = sshll.u32 %s5904_s30, 4  ;;  %p5857_p0 = scmp.ne.s32.totalorder %s8128_s5, %s5856_s13  ;;  %s32_s10 = int_to_ptr.vmem [resolvable:$true] %s31_s10 }
   0x3   :  { %p5860_p1 = scmp.lt.u32.totalorder %s5856_s13, %s8128_s5 }
   0x5   :  { %p5862_p2 = pnand %p5860_p1, %p5857_p0 }
   0x7   :  { %5865 = shalt.err (!%p5862_p2)
}
   0x8   :  { %s5866_s18 = scalar_lea.vmem %s32_s10, 13440  ;;  %p5871_p4 = scmp.lt.s32.totalorder %s32_s10, %s32_s10 }
   0x9   :  { %p5867_p3 = scmp.ne.s32.totalorder %s32_s10, %s5866_s18  ;;  %p5872_p5 = scmp.lt.s32.totalorder %s5866_s18, %s5866_s18 }
   0xb   :  { %p5873_p6 = por %p5872_p5, %p5871_p4 }
   0xd   :  { %p5874_p7 = pnand %p5873_p6, %p5867_p3 }
   0xf   :  { %5877 = shalt.err (!%p5874_p7)
}
  0x10   :  { %s5905_s19 = smov 128   ;;  %s5906_s20 = smov 8  }
  0x11   :  { %37 = dma.hbm_to_vmem [thread:$0]  %s8128_s5, 13440, %s32_s10, [#allocation9], %s5905_s19, %s5905_s19, %s5906_s20  }
  0x12   :  { %5900 = dma.done.wait [#allocation9], 13440  }
  0x13   :  { %5901 = vsyncadd [#allocation9], 4294953856  ;;  %v48_v0 = vlaneseq  ;;  %vm53_vm0 = vcmask 523264   ;;  %v8135_v1 = vmov 0   ;;  %v8133_v2 = vmov 0.0   ;;  %v5002_v3 = vld [vmem:[%s8124_s1 + $0x10] sm:$0xff] }
  0x14   :  { %5474 = vset.pattern.permute.xlu1 %v8135_v1  ;;  %5473 = vset.pattern.permute.xlu0 %v8135_v1  ;;  %54 = vst.msk [vmem:[#allocation4 + $0x20] sm:$0xff] %vm53_vm0, %v8133_v2  ;;  %v5000_v4 = vld [vmem:[%s8123_s0 + $0x1] ss:$2 sm:$0xff]  ;;  %s5909_s26 = smov 4   ;;  %v5003_v5 = vld [vmem:[%s8124_s1 + $0x18] sm:$0xff]  ;;  %v5006_v10 = vld [vmem:[%s8124_s1 + $0x30] sm:$0xff] }
  0x15   :  { %vm49_vm1 = vcmp.ge.s32.totalorder %v48_v0, 8  ;;  %vm50_vm2 = vcmp.lt.s32.totalorder %v48_v0, 72  ;;  %289 = vperm.xlu1 %5474, %v5002_v3   ;;  %63 = vrot.lane.b32.xlu0 %v5000_v4, %s5909_s26  ;;  %vm57_vm4 = vcmp.lt.s32.totalorder %v48_v0, 900  ;;  %v5001_v6 = vld [vmem:[%s8124_s1 + $0x8] sm:$0xff]  ;;  %v5004_v8 = vld [vmem:[%s8124_s1 + $0x20] sm:$0xff]  ;;  %v5007_v11 = vld [vmem:[%s8124_s1 + $0x38] sm:$0xff] }
  0x16   :  { %vm51_vm3 = vmand %vm49_vm1, %vm50_vm2  ;;  %v55_v7 = vld [vmem:[%s8123_s0] ss:$2 sm:$0xff]  ;;  %vm69_vm5 = vcmp.ge.s32.totalorder %v48_v0, 4  ;;  %vm70_vm6 = vcmp.lt.s32.totalorder %v48_v0, 904  ;;  %vm66_vm7 = vcmask 31744   ;;  %v6041_v18 = vshrl.u32 %v48_v0, 7 }
  0x17   :  { %52 = vst.msk [vmem:[#allocation2 + $0xe] sm:$0x1] %vm51_vm3, %v8133_v2  ;;  %v5005_v9 = vld [vmem:[%s8124_s1 + $0x28] sm:$0xff]  ;;  %v5008_v12 = vld [vmem:[%s8124_s1 + $0x40] sm:$0xff]  ;;  %vm71_vm8 = vmand %vm69_vm5, %vm70_vm6  ;;  %s5912_s25 = smov 98   ;;  %s5913_s26 = smov 97  }
  0x18   :  { %59 = vst.msk [vmem:[#allocation2] sm:$0xff] %vm57_vm4, %v55_v7  ;;  %v73_v13 = vld [vmem:[%s8124_s1] sm:$0xff]  ;;  %8166 = vst [vmem:[#allocation14_spill] sm:$0xff] %v6041_v18  ;;  %v89_v19 = vsub.s32 1, %v6041_v18  ;;  %v97_v20 = vsub.s32 3, %v6041_v18  ;;  %v93_v21 = vsub.s32 2, %v6041_v18 }
  0x19   :  { %401 = vperm.xlu1 %5474, %v5003_v5   ;;  %177 = vperm.xlu0 %5473, %v5001_v6   ;;  %v1069_v14 = vld [vmem:[%s8125_s2] sm:$0xff]  ;;  %v85_v23 = vsub.s32 0, %v6041_v18  ;;  %v101_v24 = vsub.s32 4, %v6041_v18  ;;  %v105_v25 = vsub.s32 5, %v6041_v18  ;;  %v8137_v30 = vsub.s32 6, %v6041_v18  ;;  %s5910_s1 = smov 127  }
  0x1a   :  { %v113_v42 = vsub.s32 7, %v6041_v18  ;;  %s5911_s2 = smov 126   ;;  %s5914_s27 = smov 96   ;;  %vm240_vm9 = vcmask 1039360   ;;  %vm352_vm10 = vcmask 1031168   ;;  %vm464_vm11 = vcmask 801792  }
  0x1b   :  { %s5915_s28 = smov 68   ;;  %s5916_s29 = smov 67   ;;  %vm576_vm12 = vcmask 793600   ;;  %vm688_vm13 = vcmask 785408   ;;  %vm800_vm14 = vcmask 556032   ;;  %vm912_vm15 = vcmask 547840  }
  0x1c   :  { %s5917_s30 = smov 66   ;;  %vm1024_vm0 = vcmask 539648   ;;  %s5918_s10 = smov 124   ;;  %vm1119_vm1 = vcmask 64512   ;;  %vm2195_vm2 = vcmask 1014784   ;;  %vm1878_vm3 = vcmask 1043456  }
  0x1d   :  { %513 = vperm.xlu1 %5474, %v5004_v8   ;;  %625 = vperm.xlu0 %5473, %v5005_v9   ;;  %vm1874_vm4 = vcmask 588800   ;;  %s5919_s13 = smov 112   ;;  %s5920_s14 = smov 111   ;;  %vm2774_vm5 = vcmask 916480   ;;  %vm2906_vm6 = vcmask 908288  }
  0x1e   :  { %s5921_s15 = smov 110   ;;  %s5922_s16 = smov 95  }
  0x1f   :  { %s5923_s17 = smov 94   ;;  %s5928_s5 = smov 38  }
  0x21   :  { %737 = vperm.xlu1 %5474, %v5006_v10   ;;  %849 = vperm.xlu0 %5473, %v5007_v11  }
  0x25   :  { %961 = vperm.xlu1 %5474, %v5008_v12   ;;  %78 = vperm.xlu0 %5473, %v73_v13  }
  0x29   :  { %1072 = vperm.xlu0 %5473, %v1069_v14  }
  0x87   :  { %v64_v15 = vpop.permute.xlu0 %63 }
  0x88   :  { %v65_v16 = vrot.slane %v64_v15, 7 }
  0x8a   :  { %v67_v17 = vsel %vm66_vm7, %v65_v16, %v64_v15  ;;  %vm3038_vm7 = vcmask 900096  }
  0x8b   :  { %72 = vst.msk [vmem:[#allocation2 + $0x7] sm:$0xff] %vm71_vm8, %v67_v17  ;;  %vm3302_vm8 = vcmask 777216  }
  0x92   :  { %v74_v22 = vld [vmem:[#allocation2] sm:$0xff]  ;;  %v6049_v26 = vld [vmem:[#allocation2 + $0x8] sm:$0x7f] }
  0x93   :  { %v6051_v27 = vrot.slane %v74_v22, %v89_v19  ;;  %v6053_v28 = vrot.slane %v74_v22, %v97_v20  ;;  %v6055_v29 = vrot.slane %v74_v22, %v93_v21  ;;  %v6058_v31 = vrot.slane %v74_v22, %v85_v23 }
  0x94   :  { %v6061_v32 = vrot.slane %v6049_v26, %v89_v19  ;;  %v6064_v33 = vrot.slane %v6049_v26, %v85_v23  ;;  %v6068_v34 = vrot.slane %v74_v22, %v101_v24  ;;  %v6074_v36 = vrot.slane %v74_v22, %v105_v25  ;;  %v6097_v45 = vpop.permute.xlu1 %289 }
  0x95   :  { %8167 = vst [vmem:[#allocation15_spill] sm:$0xff] %v6053_v28  ;;  %v6078_v37 = vrot.slane %v74_v22, %v8137_v30  ;;  %v6087_v40 = vrot.slane %v6049_v26, %v97_v20  ;;  %v6090_v41 = vrot.slane %v6049_v26, %v93_v21  ;;  %v6101_v46 = vrot.slane %v74_v22, %v113_v42 }
  0x96   :  { %8168 = vst [vmem:[#allocation16_spill] sm:$0xff] %v6068_v34  ;;  %8169 = vst [vmem:[#allocation17_spill] sm:$0xff] %v6074_v36  ;;  %v300_v47 = vmul.f32 %v6097_v45, %v6064_v33  ;;  %v301_v50 = vmul.f32 %v6097_v45, %v6061_v32 }
  0x97   :  { %8170 = vst [vmem:[#allocation18_spill] sm:$0xff] %v6078_v37  ;;  %v302_v49 = vmul.f32 %v6097_v45, %v6090_v41  ;;  %v299_v51 = vmul.f32 %v6097_v45, %v6101_v46  ;;  %v303_v52 = vmul.f32 %v6097_v45, %v6087_v40 }
  0x98   :  { %v6070_v35 = vpop.permute.xlu0 %177  ;;  %v6119_v53 = vpop.permute.xlu1 %401 }
  0x99   :  { %v189_v38 = vmul.f32 %v6070_v35, %v6061_v32  ;;  %v188_v39 = vmul.f32 %v6070_v35, %v6064_v33  ;;  %v191_v43 = vmul.f32 %v6070_v35, %v6087_v40  ;;  %v190_v44 = vmul.f32 %v6070_v35, %v6090_v41 }
  0x9a   :  { %v187_v48 = vmul.f32 %v6070_v35, %v6101_v46  ;;  %v413_v54 = vmul.f32 %v6119_v53, %v6061_v32  ;;  %v412_v55 = vmul.f32 %v6119_v53, %v6064_v33  ;;  %v415_v56 = vmul.f32 %v6119_v53, %v6087_v40 }
  0x9b   :  { %228 = vrot.lane.b32.xlu0 %v189_v38, %s5910_s1  ;;  %226 = vrot.lane.b32.xlu1 %v188_v39, %s5910_s1  ;;  %v414_v57 = vmul.f32 %v6119_v53, %v6090_v41  ;;  %v411_v60 = vmul.f32 %v6119_v53, %v6101_v46 }
  0x9c   :  { %v6133_v58 = vpop.permute.xlu1 %513  ;;  %v6153_v3 = vpop.permute.xlu0 %625 }
  0x9d   :  { %8171 = vst [vmem:[#allocation19_spill] sm:$0xff] %v6133_v58  ;;  %v524_v59 = vmul.f32 %v6133_v58, %v6064_v33  ;;  %v526_v61 = vmul.f32 %v6133_v58, %v6090_v41  ;;  %v525_v62 = vmul.f32 %v6133_v58, %v6061_v32  ;;  %v523_v63 = vmul.f32 %v6133_v58, %v6101_v46 }
  0x9e   :  { %v527_v0 = vmul.f32 %v6133_v58, %v6087_v40  ;;  %8172 = vst [vmem:[#allocation20_spill] sm:$0xff] %v6153_v3  ;;  %v637_v4 = vmul.f32 %v6153_v3, %v6061_v32  ;;  %v636_v5 = vmul.f32 %v6153_v3, %v6064_v33  ;;  %v639_v6 = vmul.f32 %v6153_v3, %v6087_v40 }
  0x9f   :  { %232 = vrot.lane.b32.xlu0 %v191_v43, %s5910_s1  ;;  %230 = vrot.lane.b32.xlu1 %v190_v44, %s5910_s1  ;;  %v638_v7 = vmul.f32 %v6153_v3, %v6090_v41  ;;  %v635_v10 = vmul.f32 %v6153_v3, %v6101_v46  ;;  %v181_v43 = vmul.f32 %v6070_v35, %v6051_v27 }
  0xa0   :  { %v6167_v8 = vpop.permute.xlu1 %737  ;;  %v6181_v13 = vpop.permute.xlu0 %849 }
  0xa1   :  { %8173 = vst [vmem:[#allocation21_spill] sm:$0xff] %v6167_v8  ;;  %v748_v9 = vmul.f32 %v6167_v8, %v6064_v33  ;;  %v750_v11 = vmul.f32 %v6167_v8, %v6090_v41  ;;  %v749_v12 = vmul.f32 %v6167_v8, %v6061_v32  ;;  %8174 = vst [vmem:[#allocation22_spill] sm:$0xff] %v6181_v13 }
  0xa2   :  { %v860_v14 = vmul.f32 %v6181_v13, %v6064_v33  ;;  %v751_v15 = vmul.f32 %v6167_v8, %v6087_v40  ;;  %v862_v16 = vmul.f32 %v6181_v13, %v6090_v41  ;;  %v747_v17 = vmul.f32 %v6167_v8, %v6101_v46 }
  0xa3   :  { %338 = vrot.lane.b32.xlu0 %v300_v47, %s5911_s2  ;;  %224 = vrot.lane.b32.xlu1 %v187_v48, %s5910_s1  ;;  %v859_v19 = vmul.f32 %v6181_v13, %v6101_v46  ;;  %v861_v20 = vmul.f32 %v6181_v13, %v6061_v32  ;;  %v863_v23 = vmul.f32 %v6181_v13, %v6087_v40 }
  0xa4   :  { %v6201_v21 = vpop.permute.xlu1 %961  ;;  %v183_v47 = vmul.f32 %v6070_v35, %v6053_v28  ;;  %v182_v48 = vmul.f32 %v6070_v35, %v6055_v29 }
  0xa5   :  { %8175 = vst [vmem:[#allocation23_spill] sm:$0xff] %v6201_v21  ;;  %v973_v22 = vmul.f32 %v6201_v21, %v6061_v32  ;;  %v975_v38 = vmul.f32 %v6201_v21, %v6087_v40  ;;  %v972_v39 = vmul.f32 %v6201_v21, %v6064_v33  ;;  %v974_v42 = vmul.f32 %v6201_v21, %v6090_v41 }
  0xa6   :  { %v971_v44 = vmul.f32 %v6201_v21, %v6101_v46 }
  0xa7   :  { %342 = vrot.lane.b32.xlu0 %v302_v49, %s5911_s2  ;;  %340 = vrot.lane.b32.xlu1 %v301_v50, %s5911_s2  ;;  %v293_v49 = vmul.f32 %v6097_v45, %v6051_v27  ;;  %v295_v50 = vmul.f32 %v6097_v45, %v6053_v28 }
  0xab   :  { %336 = vrot.lane.b32.xlu0 %v299_v51, %s5911_s2  ;;  %344 = vrot.lane.b32.xlu1 %v303_v52, %s5911_s2  ;;  %v180_v51 = vmul.f32 %v6070_v35, %v6058_v31  ;;  %v405_v52 = vmul.f32 %v6119_v53, %v6051_v27 }
  0xaf   :  { %452 = vrot.lane.b32.xlu0 %v413_v54, %s5912_s25  ;;  %450 = vrot.lane.b32.xlu1 %v412_v55, %s5912_s25  ;;  %v294_v54 = vmul.f32 %v6097_v45, %v6055_v29  ;;  %v407_v55 = vmul.f32 %v6119_v53, %v6053_v28 }
  0xb3   :  { %456 = vrot.lane.b32.xlu0 %v415_v56, %s5912_s25  ;;  %454 = vrot.lane.b32.xlu1 %v414_v57, %s5912_s25  ;;  %v292_v56 = vmul.f32 %v6097_v45, %v6058_v31  ;;  %v6256_v57 = vrot.slane %v6049_v26, %v101_v24  ;;  %v6275_v24 = vrot.slane %v6049_v26, %v105_v25 }
  0xb5   :  { %8176 = vst [vmem:[#allocation24_spill] sm:$0xff] %v6256_v57  ;;  %8177 = vst [vmem:[#allocation25_spill] sm:$0xff] %v6275_v24 }
  0xb7   :  { %562 = vrot.lane.b32.xlu0 %v524_v59, %s5913_s26  ;;  %448 = vrot.lane.b32.xlu1 %v411_v60, %s5912_s25  ;;  %v192_v59 = vmul.f32 %v6070_v35, %v6256_v57  ;;  %v406_v60 = vmul.f32 %v6119_v53, %v6055_v29 }
  0xbb   :  { %566 = vrot.lane.b32.xlu0 %v526_v61, %s5913_s26  ;;  %564 = vrot.lane.b32.xlu1 %v525_v62, %s5913_s26  ;;  %v517_v61 = vmul.f32 %v6133_v58, %v6051_v27  ;;  %v404_v62 = vmul.f32 %v6119_v53, %v6058_v31 }
  0xbf   :  { %560 = vrot.lane.b32.xlu0 %v523_v63, %s5913_s26  ;;  %568 = vrot.lane.b32.xlu1 %v527_v0, %s5913_s26  ;;  %v6268_v63 = vpop.permute.xlu0 %78  ;;  %v519_v0 = vmul.f32 %v6133_v58, %v6053_v28 }
  0xc0   :  { %v168_v2 = vmul.f32 %v6090_v41, %v6268_v63 }
  0xc3   :  { %676 = vrot.lane.b32.xlu0 %v637_v4, %s5914_s27  ;;  %674 = vrot.lane.b32.xlu1 %v636_v5, %s5914_s27  ;;  %v193_v4 = vmul.f32 %v6070_v35, %v6275_v24  ;;  %v6283_v5 = vpop.permute.xlu0 %1072 }
  0xc7   :  { %680 = vrot.lane.b32.xlu0 %v639_v6, %s5914_s27  ;;  %678 = vrot.lane.b32.xlu1 %v638_v7, %s5914_s27  ;;  %v304_v6 = vmul.f32 %v6097_v45, %v6256_v57  ;;  %v518_v7 = vmul.f32 %v6133_v58, %v6055_v29 }
  0xcb   :  { %786 = vrot.lane.b32.xlu0 %v748_v9, %s5915_s28  ;;  %672 = vrot.lane.b32.xlu1 %v635_v10, %s5914_s27  ;;  %v629_v10 = vmul.f32 %v6153_v3, %v6051_v27 }
  0xcf   :  { %790 = vrot.lane.b32.xlu0 %v750_v11, %s5915_s28  ;;  %788 = vrot.lane.b32.xlu1 %v749_v12, %s5915_s28  ;;  %v516_v11 = vmul.f32 %v6133_v58, %v6058_v31 }
  0xd3   :  { %898 = vrot.lane.b32.xlu0 %v860_v14, %s5916_s29  ;;  %792 = vrot.lane.b32.xlu1 %v751_v15, %s5915_s28  ;;  %v631_v15 = vmul.f32 %v6153_v3, %v6053_v28 }
  0xd7   :  { %902 = vrot.lane.b32.xlu0 %v862_v16, %s5916_s29  ;;  %784 = vrot.lane.b32.xlu1 %v747_v17, %s5915_s28  ;;  %v305_v16 = vmul.f32 %v6097_v45, %v6275_v24 }
  0xdb   :  { %896 = vrot.lane.b32.xlu0 %v859_v19, %s5916_s29  ;;  %900 = vrot.lane.b32.xlu1 %v861_v20, %s5916_s29  ;;  %v416_v20 = vmul.f32 %v6119_v53, %v6256_v57 }
  0xdf   :  { %1012 = vrot.lane.b32.xlu0 %v973_v22, %s5917_s30  ;;  %904 = vrot.lane.b32.xlu1 %v863_v23, %s5916_s29  ;;  %v630_v22 = vmul.f32 %v6153_v3, %v6055_v29 }
  0xe3   :  { %1016 = vrot.lane.b32.xlu0 %v975_v38, %s5917_s30  ;;  %1010 = vrot.lane.b32.xlu1 %v972_v39, %s5917_s30  ;;  %v741_v39 = vmul.f32 %v6167_v8, %v6051_v27 }
  0xe7   :  { %1014 = vrot.lane.b32.xlu1 %v974_v42, %s5917_s30  ;;  %212 = vrot.lane.b32.xlu0 %v181_v43, %s5910_s1  ;;  %v628_v42 = vmul.f32 %v6153_v3, %v6058_v31 }
  0xeb   :  { %1008 = vrot.lane.b32.xlu1 %v971_v44, %s5917_s30  ;;  %216 = vrot.lane.b32.xlu0 %v183_v47, %s5910_s1  ;;  %v743_v47 = vmul.f32 %v6167_v8, %v6053_v28 }
  0xef   :  { %214 = vrot.lane.b32.xlu1 %v182_v48, %s5910_s1  ;;  %324 = vrot.lane.b32.xlu0 %v293_v49, %s5911_s2  ;;  %v417_v48 = vmul.f32 %v6119_v53, %v6275_v24 }
  0xf3   :  { %328 = vrot.lane.b32.xlu0 %v295_v50, %s5911_s2  ;;  %210 = vrot.lane.b32.xlu1 %v180_v51, %s5910_s1  ;;  %v528_v51 = vmul.f32 %v6133_v58, %v6256_v57 }
  0xf7   :  { %436 = vrot.lane.b32.xlu0 %v405_v52, %s5912_s25  ;;  %326 = vrot.lane.b32.xlu1 %v294_v54, %s5911_s2  ;;  %v742_v52 = vmul.f32 %v6167_v8, %v6055_v29 }
  0xfb   :  { %440 = vrot.lane.b32.xlu0 %v407_v55, %s5912_s25  ;;  %322 = vrot.lane.b32.xlu1 %v292_v56, %s5911_s2  ;;  %v853_v56 = vmul.f32 %v6181_v13, %v6051_v27 }
  0xff   :  { %234 = vrot.lane.b32.xlu0 %v192_v59, %s5910_s1  ;;  %438 = vrot.lane.b32.xlu1 %v406_v60, %s5912_s25  ;;  %v740_v59 = vmul.f32 %v6167_v8, %v6058_v31 }
 0x103   :  { %548 = vrot.lane.b32.xlu0 %v517_v61, %s5913_s26  ;;  %434 = vrot.lane.b32.xlu1 %v404_v62, %s5912_s25  ;;  %v855_v62 = vmul.f32 %v6181_v13, %v6053_v28 }
 0x107   :  { %552 = vrot.lane.b32.xlu0 %v519_v0, %s5913_s26  ;;  %236 = vrot.lane.b32.xlu1 %v193_v4, %s5910_s1  ;;  %v529_v0 = vmul.f32 %v6133_v58, %v6275_v24 }
 0x10b   :  { %346 = vrot.lane.b32.xlu0 %v304_v6, %s5911_s2  ;;  %550 = vrot.lane.b32.xlu1 %v518_v7, %s5913_s26  ;;  %v640_v7 = vmul.f32 %v6153_v3, %v6256_v57 }
 0x10d   :  { %v6291_v25 = vpop.permute.xlu0 %228  ;;  %v6293_v9 = vpop.permute.xlu1 %226 }
 0x10f   :  { %660 = vrot.lane.b32.xlu0 %v629_v10, %s5914_s27  ;;  %546 = vrot.lane.b32.xlu1 %v516_v11, %s5913_s26  ;;  %v854_v10 = vmul.f32 %v6181_v13, %v6055_v29 }
 0x111   :  { %v6301_v12 = vpop.permute.xlu0 %232  ;;  %v6303_v14 = vpop.permute.xlu1 %230 }
 0x112   :  { %8178 = vst [vmem:[#allocation26_spill] sm:$0xff] %v6301_v12  ;;  %v251_v41 = vsel %vm240_vm9, %v6303_v14, %v6301_v12 }
 0x113   :  { %664 = vrot.lane.b32.xlu0 %v631_v15, %s5914_s27  ;;  %348 = vrot.lane.b32.xlu1 %v305_v16, %s5911_s2  ;;  %v965_v16 = vmul.f32 %v6201_v21, %v6051_v27 }
 0x115   :  { %v6311_v17 = vpop.permute.xlu0 %338  ;;  %v6313_v19 = vpop.permute.xlu1 %224 }
 0x116   :  { %8179 = vst [vmem:[#allocation27_spill] sm:$0xff] %v6313_v19 }
 0x117   :  { %458 = vrot.lane.b32.xlu0 %v416_v20, %s5912_s25  ;;  %662 = vrot.lane.b32.xlu1 %v630_v22, %s5914_s27  ;;  %v852_v20 = vmul.f32 %v6181_v13, %v6058_v31 }
 0x119   :  { %v6321_v23 = vpop.permute.xlu0 %342  ;;  %v6323_v38 = vpop.permute.xlu1 %340 }
 0x11a   :  { %v361_v1 = vsel %vm352_vm10, %v6311_v17, %v6323_v38 }
 0x11b   :  { %772 = vrot.lane.b32.xlu0 %v741_v39, %s5915_s28  ;;  %658 = vrot.lane.b32.xlu1 %v628_v42, %s5914_s27  ;;  %v967_v42 = vmul.f32 %v6201_v21, %v6053_v28 }
 0x11d   :  { %v6331_v43 = vpop.permute.xlu0 %336  ;;  %v6333_v44 = vpop.permute.xlu1 %344 }
 0x11e   :  { %8180 = vst [vmem:[#allocation28_spill] sm:$0xff] %v6331_v43  ;;  %8181 = vst [vmem:[#allocation29_spill] sm:$0xff] %v6333_v44 }
 0x11f   :  { %776 = vrot.lane.b32.xlu0 %v743_v47, %s5915_s28  ;;  %460 = vrot.lane.b32.xlu1 %v417_v48, %s5912_s25  ;;  %v641_v47 = vmul.f32 %v6153_v3, %v6275_v24 }
 0x121   :  { %v6341_v49 = vpop.permute.xlu0 %452  ;;  %v6343_v50 = vpop.permute.xlu1 %450 }
 0x123   :  { %570 = vrot.lane.b32.xlu0 %v528_v51, %s5913_s26  ;;  %774 = vrot.lane.b32.xlu1 %v742_v52, %s5915_s28  ;;  %v752_v52 = vmul.f32 %v6167_v8, %v6256_v57 }
 0x125   :  { %v6351_v54 = vpop.permute.xlu0 %456  ;;  %v6353_v55 = vpop.permute.xlu1 %454 }
 0x127   :  { %884 = vrot.lane.b32.xlu0 %v853_v56, %s5916_s29  ;;  %770 = vrot.lane.b32.xlu1 %v740_v59, %s5915_s28  ;;  %v966_v56 = vmul.f32 %v6201_v21, %v6055_v29 }
 0x129   :  { %v6361_v60 = vpop.permute.xlu0 %562  ;;  %v6363_v61 = vpop.permute.xlu1 %448 }
 0x12a   :  { %8182 = vst [vmem:[#allocation30_spill] sm:$0xff] %v6363_v61 }
 0x12b   :  { %888 = vrot.lane.b32.xlu0 %v855_v62, %s5916_s29  ;;  %572 = vrot.lane.b32.xlu1 %v529_v0, %s5913_s26  ;;  %v864_v0 = vmul.f32 %v6181_v13, %v6256_v57 }
 0x12d   :  { %v6371_v4 = vpop.permute.xlu0 %566  ;;  %v6373_v6 = vpop.permute.xlu1 %564 }
 0x12f   :  { %682 = vrot.lane.b32.xlu0 %v640_v7, %s5914_s27  ;;  %886 = vrot.lane.b32.xlu1 %v854_v10, %s5916_s29  ;;  %v964_v7 = vmul.f32 %v6201_v21, %v6058_v31 }
 0x131   :  { %v6381_v11 = vpop.permute.xlu0 %560  ;;  %v6383_v15 = vpop.permute.xlu1 %568 }
 0x132   :  { %8183 = vst [vmem:[#allocation31_spill] sm:$0xff] %v6381_v11 }
 0x133   :  { %996 = vrot.lane.b32.xlu0 %v965_v16, %s5917_s30  ;;  %882 = vrot.lane.b32.xlu1 %v852_v20, %s5916_s29  ;;  %v976_v20 = vmul.f32 %v6201_v21, %v6256_v57 }
 0x135   :  { %v6391_v22 = vpop.permute.xlu0 %676  ;;  %v6393_v39 = vpop.permute.xlu1 %674 }
 0x137   :  { %1000 = vrot.lane.b32.xlu0 %v967_v42, %s5917_s30  ;;  %684 = vrot.lane.b32.xlu1 %v641_v47, %s5914_s27  ;;  %v753_v42 = vmul.f32 %v6167_v8, %v6275_v24 }
 0x139   :  { %v6401_v48 = vpop.permute.xlu0 %680  ;;  %v6403_v51 = vpop.permute.xlu1 %678 }
 0x13b   :  { %794 = vrot.lane.b32.xlu0 %v752_v52, %s5915_s28  ;;  %998 = vrot.lane.b32.xlu1 %v966_v56, %s5917_s30  ;;  %v184_v56 = vmul.f32 %v6070_v35, %v6068_v34 }
 0x13d   :  { %v6411_v59 = vpop.permute.xlu0 %786  ;;  %v6413_v62 = vpop.permute.xlu1 %672 }
 0x13e   :  { %8184 = vst [vmem:[#allocation32_spill] sm:$0xff] %v6413_v62 }
 0x13f   :  { %906 = vrot.lane.b32.xlu0 %v864_v0, %s5916_s29  ;;  %994 = vrot.lane.b32.xlu1 %v964_v7, %s5917_s30  ;;  %v865_v0 = vmul.f32 %v6181_v13, %v6275_v24  ;;  %v249_v7 = vsel %vm240_vm9, %v6293_v9, %v6291_v25 }
 0x141   :  { %v6421_v10 = vpop.permute.xlu0 %790  ;;  %v6423_v16 = vpop.permute.xlu1 %788 }
 0x143   :  { %1018 = vrot.lane.b32.xlu0 %v976_v20, %s5917_s30  ;;  %796 = vrot.lane.b32.xlu1 %v753_v42, %s5915_s28  ;;  %v166_v20 = vmul.f32 %v6064_v33, %v6268_v63  ;;  %v167_v42 = vmul.f32 %v6061_v32, %v6268_v63  ;;  %v250_v32 = vsel %vm240_vm9, %v6291_v25, %v6303_v14 }
 0x144   :  { %v185_v25 = vmul.f32 %v6070_v35, %v6074_v36  ;;  %v363_v14 = vsel %vm352_vm10, %v6321_v23, %v6333_v44  ;;  %v475_v44 = vsel %vm464_vm11, %v6353_v55, %v6351_v54 }
 0x145   :  { %v6431_v47 = vpop.permute.xlu0 %898  ;;  %v6433_v52 = vpop.permute.xlu1 %792  ;;  %v278_v30 = vadd.f32 %v249_v7, %v166_v20  ;;  %v165_v7 = vmul.f32 %v6101_v46, %v6268_v63  ;;  %v473_v20 = vsel %vm464_vm11, %v6343_v50, %v6341_v49  ;;  %v362_v46 = vsel %vm352_vm10, %v6323_v38, %v6321_v23 }
 0x146   :  { %v248_v38 = vsel %vm240_vm9, %v6313_v19, %v6293_v9  ;;  %v474_v23 = vsel %vm464_vm11, %v6341_v49, %v6353_v55  ;;  %v360_v9 = vsel %vm352_vm10, %v6331_v43, %v6311_v17  ;;  %v586_v49 = vsel %vm576_vm12, %v6373_v6, %v6371_v4  ;;  %v5633_v19 = vld [vmem:[#allocation8 + $0x34] ss:$8 sps:$4 sm:$0xff]  }
 0x147   :  { %218 = vrot.lane.b32.xlu0 %v184_v56, %s5910_s1  ;;  %908 = vrot.lane.b32.xlu1 %v865_v0, %s5916_s29  ;;  %v296_v56 = vmul.f32 %v6097_v45, %v6068_v34  ;;  %v977_v0 = vmul.f32 %v6201_v21, %v6275_v24  ;;  %v390_v37 = vadd.f32 %v361_v1, %v278_v30 }
 0x148   :  { %v297_v24 = vmul.f32 %v6097_v45, %v6074_v36  ;;  %v585_v1 = vsel %vm576_vm12, %v6361_v60, %v6373_v6  ;;  %v279_v30 = vadd.f32 %v250_v32, %v167_v42  ;;  %v587_v55 = vsel %vm576_vm12, %v6371_v4, %v6383_v15 }
 0x149   :  { %v6453_v28 = vpop.permute.xlu0 %902  ;;  %v6455_v33 = vpop.permute.xlu1 %784  ;;  %v472_v17 = vsel %vm464_vm11, %v6363_v61, %v6343_v50  ;;  %v698_v6 = vsel %vm688_vm13, %v6391_v22, %v6403_v51  ;;  %v699_v4 = vsel %vm688_vm13, %v6403_v51, %v6401_v48  ;;  %v584_v50 = vsel %vm576_vm12, %v6381_v11, %v6361_v60  ;;  %v5631_v11 = vld [vmem:[#allocation8 + $0x24] ss:$8 sps:$4 sm:$0xff]  }
 0x14a   :  { %8185 = vst [vmem:[#allocation33_spill] sm:$0xff] %v6455_v33  ;;  %v811_v51 = vsel %vm800_vm14, %v6421_v10, %v6433_v52  ;;  %v1125_v61 = vld [vmem:[#allocation8 + $0x20] sm:$0xff] }
 0x14b   :  { %330 = vrot.lane.b32.xlu0 %v296_v56, %s5911_s2  ;;  %1020 = vrot.lane.b32.xlu1 %v977_v0, %s5917_s30  ;;  %v280_v56 = vadd.f32 %v251_v41, %v168_v2  ;;  %v502_v0 = vadd.f32 %v473_v20, %v390_v37  ;;  %v697_v2 = vsel %vm688_vm13, %v6393_v39, %v6391_v22 }
 0x14c   :  { %v391_v37 = vadd.f32 %v362_v46, %v279_v30  ;;  %v809_v41 = vsel %vm800_vm14, %v6411_v59, %v6423_v16  ;;  %v277_v20 = vadd.f32 %v248_v38, %v165_v7  ;;  %v810_v22 = vsel %vm800_vm14, %v6423_v16, %v6421_v10 }
 0x14d   :  { %v6487_v57 = vpop.permute.xlu0 %896  ;;  %v901_v12 = vpop.permute.xlu1 %900  ;;  %v392_v42 = vadd.f32 %v363_v14, %v280_v56  ;;  %v614_v32 = vadd.f32 %v585_v1, %v502_v0 }
 0x14e   :  { %8186 = vst [vmem:[#allocation34_spill] sm:$0xff] %v6487_v57  ;;  %v503_v46 = vadd.f32 %v474_v23, %v391_v37  ;;  %v921_v7 = vsel %vm912_vm15, %v6431_v47, %v901_v12  ;;  %v922_v60 = vsel %vm912_vm15, %v901_v12, %v6453_v28 }
 0x14f   :  { %220 = vrot.lane.b32.xlu1 %v185_v25, %s5910_s1  ;;  %v504_v25 = vadd.f32 %v475_v44, %v392_v42  ;;  %v726_v14 = vadd.f32 %v697_v2, %v614_v32  ;;  %v389_v44 = vadd.f32 %v360_v9, %v277_v20 }
 0x150   :  { %v615_v56 = vadd.f32 %v586_v49, %v503_v46  ;;  %v808_v46 = vsel %vm800_vm14, %v6455_v33, %v6411_v59  ;;  %v969_v33 = vmul.f32 %v6201_v21, %v6074_v36 }
 0x151   :  { %v1013_v1 = vpop.permute.xlu0 %1012  ;;  %v6514_v30 = vpop.permute.xlu1 %904  ;;  %v616_v0 = vadd.f32 %v587_v55, %v504_v25  ;;  %v838_v38 = vadd.f32 %v809_v41, %v726_v14  ;;  %v501_v23 = vadd.f32 %v472_v17, %v389_v44 }
 0x152   :  { %v727_v2 = vadd.f32 %v698_v6, %v615_v56  ;;  %v923_v16 = vsel %vm912_vm15, %v6453_v28, %v6514_v30  ;;  %v920_v28 = vsel %vm912_vm15, %v6487_v57, %v6431_v47 }
 0x153   :  { %332 = vrot.lane.b32.xlu1 %v297_v24, %s5911_s2  ;;  %v728_v37 = vadd.f32 %v699_v4, %v616_v0  ;;  %v950_v42 = vadd.f32 %v921_v7, %v838_v38  ;;  %v696_v24 = vsel %vm688_vm13, %v6413_v62, %v6393_v39  ;;  %v613_v49 = vadd.f32 %v584_v50, %v501_v23 }
 0x154   :  { %v839_v55 = vadd.f32 %v810_v22, %v727_v2  ;;  %v968_v62 = vmul.f32 %v6201_v21, %v6068_v34 }
 0x155   :  { %v6537_v32 = vpop.permute.xlu0 %1016  ;;  %v1011_v9 = vpop.permute.xlu1 %1010  ;;  %v840_v41 = vadd.f32 %v811_v51, %v728_v37  ;;  %v725_v25 = vadd.f32 %v696_v24, %v613_v49 }
 0x156   :  { %v1033_v10 = vsel %vm1024_vm0, %v1011_v9, %v1013_v1  ;;  %v951_v14 = vadd.f32 %v922_v60, %v839_v55 }
 0x157   :  { %v1062_v20 = vadd.f32 %v1033_v10, %v950_v42  ;;  %v952_v39 = vadd.f32 %v923_v16, %v840_v41  ;;  %v837_v44 = vadd.f32 %v808_v46, %v725_v25 }
 0x159   :  { %v6552_v17 = vadd.f32 %v6283_v5, %v1062_v20  ;;  %v1015_v12 = vpop.permute.xlu1 %1014  ;;  %v6554_v6 = vpop.permute.xlu0 %212  ;;  %v949_v38 = vadd.f32 %v920_v28, %v837_v44  ;;  %v409_v44 = vmul.f32 %v6119_v53, %v6074_v36 }
 0x15a   :  { %v1034_v4 = vsel %vm1024_vm0, %v1013_v1, %v1015_v12  ;;  %v1035_v7 = vsel %vm1024_vm0, %v1015_v12, %v6537_v32 }
 0x15b   :  { %v8147_v59 = vmax.f32 %v6552_v17, 0.0  ;;  %v1063_v56 = vadd.f32 %v1034_v4, %v951_v14  ;;  %v1064_v0 = vadd.f32 %v1035_v7, %v952_v39  ;;  %v408_v14 = vmul.f32 %v6119_v53, %v6068_v34 }
 0x15c   :  { %v8190_v39 = vsub.s32 6, %v6041_v18  ;;  %v5627_v18 = vld [vmem:[#allocation8] ss:$8 sps:$4 sm:$0xff]  }
 0x15d   :  { %v6564_v50 = vadd.f32 %v6283_v5, %v1063_v56  ;;  %v6567_v22 = vadd.f32 %v6283_v5, %v1064_v0  ;;  %v6569_v51 = vpop.permute.xlu1 %1008  ;;  %v6571_v47 = vpop.permute.xlu0 %216 }
 0x15e   :  { %8188 = vst [vmem:[#allocation36_spill] sm:$0xff] %v6569_v51  ;;  %8189 = vst [vmem:[#allocation37_spill] sm:$0xff] %v6571_v47  ;;  %v1032_v1 = vsel %vm1024_vm0, %v6569_v51, %v1011_v9  ;;  %v6617_v12 = vrot.slane %v6049_v26, %v8190_v39  ;;  %v521_v26 = vmul.f32 %v6133_v58, %v6074_v36  ;;  %v5628_v51 = vld [vmem:[#allocation8 + $0x14] ss:$8 sps:$4 sm:$0xff]  }
 0x15f   :  { %8187 = vst [vmem:[#allocation35_spill] sm:$0xff] %v6567_v22  ;;  %v8146_v23 = vmax.f32 %v6564_v50, 0.0  ;;  %v8144_v2 = vmax.f32 %v6567_v22, 0.0  ;;  %v1061_v37 = vadd.f32 %v1032_v1, %v949_v38  ;;  %v520_v38 = vmul.f32 %v6133_v58, %v6068_v34 }
 0x160   :  { %v194_v7 = vmul.f32 %v6070_v35, %v6617_v12  ;;  %v866_v43 = vmul.f32 %v6181_v13, %v6617_v12  ;;  %v978_v22 = vmul.f32 %v6201_v21, %v6617_v12  ;;  %v158_v21 = vmul.f32 %v6058_v31, %v6268_v63 }
 0x161   :  { %v6578_v42 = vadd.f32 %v6283_v5, %v1061_v37  ;;  %v6580_v24 = vpop.permute.xlu1 %214  ;;  %v6582_v60 = vpop.permute.xlu0 %324  ;;  %v5475_v16 = vpack.i.bf16 %v8146_v23, %v8147_v59  ;;  %v530_v23 = vmul.f32 %v6133_v58, %v6617_v12 }
 0x163   :  { %v8145_v10 = vmax.f32 %v6578_v42, 0.0  ;;  %5476 = vrot.lane.b32.xlu0 %v5475_v16, %s5910_s1 }
 0x165   :  { %v6590_v9 = vpop.permute.xlu0 %328  ;;  %v6592_v49 = vpop.permute.xlu1 %210  ;;  %v5480_v55 = vpack.i.bf16 %v8145_v10, %v8144_v2  ;;  %v744_v2 = vmul.f32 %v6167_v8, %v6068_v34  ;;  %v856_v10 = vmul.f32 %v6181_v13, %v6068_v34 }
 0x167   :  { %5486 = vrot.lane.b32.xlu0 %v5475_v16, %s5912_s25  ;;  %5481 = vrot.lane.b32.xlu1 %v5480_v55, %s5910_s1 }
 0x169   :  { %v6600_v41 = vpop.permute.xlu0 %436  ;;  %v6602_v20 = vpop.permute.xlu1 %326 }
 0x16b   :  { %5496 = vrot.lane.b32.xlu0 %v5475_v16, %s5913_s26  ;;  %5491 = vrot.lane.b32.xlu1 %v5480_v55, %s5912_s25  ;;  %v632_v16 = vmul.f32 %v6153_v3, %v6068_v34  ;;  %v5645_v34 = vld [vmem:[#allocation8 + $0x74] ss:$8 sps:$4 sm:$0xff]  }
 0x16d   :  { %v6606_v46 = vpop.permute.xlu0 %440  ;;  %v6608_v25 = vpop.permute.xlu1 %322 }
 0x16f   :  { %442 = vrot.lane.b32.xlu0 %v408_v14, %s5912_s25  ;;  %5501 = vrot.lane.b32.xlu1 %v5480_v55, %s5913_s26  ;;  %v306_v55 = vmul.f32 %v6097_v45, %v6617_v12 }
 0x171   :  { %v6619_v28 = vpop.permute.xlu0 %234  ;;  %v6621_v4 = vpop.permute.xlu1 %438 }
 0x173   :  { %238 = vrot.lane.b32.xlu0 %v194_v7, %s5910_s1  ;;  %444 = vrot.lane.b32.xlu1 %v409_v44, %s5912_s25  ;;  %v418_v7 = vmul.f32 %v6119_v53, %v6617_v12  ;;  %v633_v44 = vmul.f32 %v6153_v3, %v6074_v36 }
 0x175   :  { %v6629_v56 = vpop.permute.xlu0 %548  ;;  %v6631_v0 = vpop.permute.xlu1 %434 }
 0x177   :  { %556 = vrot.lane.b32.xlu0 %v521_v26, %s5913_s26  ;;  %554 = vrot.lane.b32.xlu1 %v520_v38, %s5913_s26  ;;  %v5625_v26 = vld [vmem:[#allocation8 + $0x4] ss:$8 sps:$4 sm:$0xff]  }
 0x178   :  { %1885 = vmatprep.subr.bf16.mxu0 %v5625_v26  ;;  %2211 = vmatprep.subr.bf16.mxu1 %v5625_v26 }
 0x179   :  { %v6639_v1 = vpop.permute.xlu0 %552  ;;  %v6641_v37 = vpop.permute.xlu1 %236  ;;  %1886 = vmatpush1.bf16.msra.mxu0 %v5627_v18  ;;  %2212 = vmatpush1.bf16.msra.mxu1 %v5627_v18 }
 0x17a   :  { %1887 = vmatprep.subr.bf16.mxu0 %v5628_v51  ;;  %2213 = vmatprep.subr.bf16.mxu1 %v5628_v51 }
 0x17b   :  { %666 = vrot.lane.b32.xlu0 %v632_v16, %s5914_s27  ;;  %350 = vrot.lane.b32.xlu1 %v306_v55, %s5911_s2  ;;  %v745_v55 = vmul.f32 %v6167_v8, %v6074_v36 }
 0x17d   :  { %v6649_v14 = vpop.permute.xlu0 %346  ;;  %v6651_v39 = vpop.permute.xlu1 %550 }
 0x17f   :  { %462 = vrot.lane.b32.xlu0 %v418_v7, %s5912_s25  ;;  %668 = vrot.lane.b32.xlu1 %v633_v44, %s5914_s27 }
 0x181   :  { %v6659_v38 = vpop.permute.xlu0 %660  ;;  %v6661_v16 = vpop.permute.xlu1 %546 }
 0x183   :  { %780 = vrot.lane.b32.xlu0 %v745_v55, %s5915_s28  ;;  %778 = vrot.lane.b32.xlu1 %v744_v2, %s5915_s28  ;;  %v642_v2 = vmul.f32 %v6153_v3, %v6617_v12  ;;  %v857_v55 = vmul.f32 %v6181_v13, %v6074_v36  ;;  %v754_v36 = vmul.f32 %v6167_v8, %v6617_v12  ;;  %v5636_v8 = vld [vmem:[#allocation8 + $0x44] ss:$8 sps:$4 sm:$0xff]  }
 0x184   :  { %v354_v13 = vsel %vm352_vm10, %v6582_v60, %v6602_v20 }
 0x185   :  { %v6669_v7 = vpop.permute.xlu0 %664  ;;  %v6671_v44 = vpop.permute.xlu1 %348 }
 0x187   :  { %890 = vrot.lane.b32.xlu0 %v856_v10, %s5916_s29  ;;  %574 = vrot.lane.b32.xlu1 %v530_v23, %s5913_s26  ;;  %v5630_v10 = vld [vmem:[#allocation8 + $0x10] ss:$8 sps:$4 sm:$0xff]  }
 0x188   :  { %1888 = vmatpush1.bf16.msra.mxu0 %v5630_v10  ;;  %2214 = vmatpush1.bf16.msra.mxu1 %v5630_v10 }
 0x189   :  { %v6679_v59 = vpop.permute.xlu0 %458  ;;  %v6681_v26 = vpop.permute.xlu1 %662  ;;  %1889 = vmatprep.subr.bf16.mxu0 %v5631_v11  ;;  %2215 = vmatprep.subr.bf16.mxu1 %v5631_v11  ;;  %v5639_v11 = vld [vmem:[#allocation8 + $0x54] ss:$8 sps:$4 sm:$0xff]  }
 0x18b   :  { %686 = vrot.lane.b32.xlu0 %v642_v2, %s5914_s27  ;;  %892 = vrot.lane.b32.xlu1 %v857_v55, %s5916_s29  ;;  %v1126_v2 = vld [vmem:[#allocation8 + $0x28] sm:$0xff] }
 0x18c   :  { %v5013_v51 = vcombine.low %v1125_v61, %v1126_v2  ;;  %v5638_v61 = vld [vmem:[#allocation8 + $0x40] ss:$8 sps:$4 sm:$0xff]   ;;  %v5641_v2 = vld [vmem:[#allocation8 + $0x50] ss:$8 sps:$4 sm:$0xff]  }
 0x18d   :  { %v6689_v23 = vpop.permute.xlu0 %772  ;;  %v6691_v57 = vpop.permute.xlu1 %658 }
 0x18e   :  { %1890 = vmatpush1.bf16.msra.mxu0 %v5013_v51  ;;  %2216 = vmatpush1.bf16.msra.mxu1 %v5013_v51 }
 0x18f   :  { %1004 = vrot.lane.b32.xlu0 %v969_v33, %s5917_s30  ;;  %1002 = vrot.lane.b32.xlu1 %v968_v62, %s5917_s30  ;;  %v5635_v62 = vld [vmem:[#allocation8 + $0x30] ss:$8 sps:$4 sm:$0xff]  }
 0x190   :  { %1891 = vmatprep.subr.bf16.mxu0 %v5633_v19  ;;  %2217 = vmatprep.subr.bf16.mxu1 %v5633_v19  ;;  %v5642_v19 = vld [vmem:[#allocation8 + $0x64] ss:$8 sps:$4 sm:$0xff]  }
 0x191   :  { %v6699_v18 = vpop.permute.xlu0 %776  ;;  %v6701_v55 = vpop.permute.xlu1 %460 }
 0x192   :  { %1892 = vmatpush1.bf16.msra.mxu0 %v5635_v62  ;;  %2218 = vmatpush1.bf16.msra.mxu1 %v5635_v62  ;;  %v243_v62 = vsel %vm240_vm9, %v6580_v24, %v6571_v47 }
 0x193   :  { %910 = vrot.lane.b32.xlu0 %v866_v43, %s5916_s29  ;;  %798 = vrot.lane.b32.xlu1 %v754_v36, %s5915_s28 }
 0x194   :  { %1893 = vmatprep.subr.bf16.mxu0 %v5636_v8  ;;  %2219 = vmatprep.subr.bf16.mxu1 %v5636_v8  ;;  %v159_v8 = vmul.f32 %v6051_v27, %v6268_v63  ;;  %v169_v27 = vmul.f32 %v6087_v40, %v6268_v63 }
 0x195   :  { %v6709_v33 = vpop.permute.xlu0 %570  ;;  %v6711_v10 = vpop.permute.xlu1 %774 }
 0x196   :  { %1894 = vmatpush1.bf16.msra.mxu0 %v5638_v61  ;;  %2220 = vmatpush1.bf16.msra.mxu1 %v5638_v61  ;;  %v160_v61 = vmul.f32 %v6055_v29, %v6268_v63  ;;  %v5644_v29 = vld [vmem:[#allocation8 + $0x60] ss:$8 sps:$4 sm:$0xff]  }
 0x197   :  { %1022 = vrot.lane.b32.xlu1 %v978_v22, %s5917_s30  ;;  %1895 = vmatprep.subr.bf16.mxu0 %v5639_v11  ;;  %v242_v22 = vsel %vm240_vm9, %v6554_v6, %v6580_v24  ;;  %v355_v24 = vsel %vm352_vm10, %v6602_v20, %v6590_v9  ;;  %v8191_v20 = vld [vmem:[#allocation26_spill] sm:$0xff] }
 0x198   :  { %2221 = vmatprep.subr.bf16.mxu1 %v5639_v11  ;;  %v241_v11 = vsel %vm240_vm9, %v6592_v49, %v6554_v6  ;;  %v271_v58 = vadd.f32 %v242_v22, %v159_v8  ;;  %v272_v31 = vadd.f32 %v243_v62, %v160_v61  ;;  %v353_v6 = vsel %vm352_vm10, %v6608_v25, %v6582_v60 }
 0x199   :  { %v6716_v43 = vpop.permute.xlu0 %884  ;;  %v6718_v36 = vpop.permute.xlu1 %770  ;;  %v270_v47 = vadd.f32 %v241_v11, %v158_v21  ;;  %v252_v40 = vsel %vm240_vm9, %v8191_v20, %v6619_v28  ;;  %v467_v22 = vsel %vm464_vm11, %v6621_v4, %v6606_v46  ;;  %v465_v62 = vsel %vm464_vm11, %v6631_v0, %v6600_v41  ;;  %v8192_v21 = vld [vmem:[#allocation24_spill] sm:$0xff]  ;;  %v5648_v0 = vld [vmem:[#allocation8 + $0x84] ss:$8 sps:$4 sm:$0xff]  }
 0x19a   :  { %1896 = vmatpush1.bf16.msra.mxu0 %v5641_v2  ;;  %2222 = vmatpush1.bf16.msra.mxu1 %v5641_v2  ;;  %v466_v2 = vsel %vm464_vm11, %v6600_v41, %v6621_v4  ;;  %v383_v60 = vadd.f32 %v354_v13, %v271_v58  ;;  %v384_v25 = vadd.f32 %v355_v24, %v272_v31  ;;  %v5647_v4 = vld [vmem:[#allocation8 + $0x70] ss:$8 sps:$4 sm:$0xff]  }
 0x19b   :  { %1897 = vmatprep.subr.bf16.mxu0 %v5642_v19  ;;  %2223 = vmatprep.subr.bf16.mxu1 %v5642_v19  ;;  %v170_v19 = vmul.f32 %v8192_v21, %v6268_v63  ;;  %v382_v8 = vadd.f32 %v353_v6, %v270_v47  ;;  %v578_v61 = vsel %vm576_vm12, %v6629_v56, %v6651_v39  ;;  %v5651_v21 = vld [vmem:[#allocation8 + $0x94] ss:$8 sps:$4 sm:$0xff]  }
 0x19c   :  { %v579_v11 = vsel %vm576_vm12, %v6651_v39, %v6639_v1  ;;  %v281_v58 = vadd.f32 %v252_v40, %v169_v27  ;;  %v495_v13 = vadd.f32 %v466_v2, %v383_v60  ;;  %v496_v24 = vadd.f32 %v467_v22, %v384_v25  ;;  %v5650_v60 = vld [vmem:[#allocation8 + $0x80] ss:$8 sps:$4 sm:$0xff]  }
 0x19d   :  { %v6720_v51 = vpop.permute.xlu0 %888  ;;  %v6722_v12 = vpop.permute.xlu1 %572  ;;  %v494_v47 = vadd.f32 %v465_v62, %v382_v8  ;;  %v253_v6 = vsel %vm240_vm9, %v6619_v28, %v6641_v37  ;;  %v690_v39 = vsel %vm688_vm13, %v6659_v38, %v6681_v26  ;;  %v691_v27 = vsel %vm688_vm13, %v6681_v26, %v6669_v7 }
 0x19e   :  { %1898 = vmatpush1.bf16.msra.mxu0 %v5644_v29  ;;  %2224 = vmatpush1.bf16.msra.mxu1 %v5644_v29  ;;  %v8193_v29 = vld [vmem:[#allocation29_spill] sm:$0xff]  ;;  %v607_v40 = vadd.f32 %v578_v61, %v495_v13  ;;  %v608_v2 = vadd.f32 %v579_v11, %v496_v24  ;;  %v476_v28 = vsel %vm464_vm11, %v6351_v54, %v6679_v59 }
 0x19f   :  { %1899 = vmatprep.subr.bf16.mxu0 %v5645_v34  ;;  %2225 = vmatprep.subr.bf16.mxu1 %v5645_v34  ;;  %v364_v20 = vsel %vm352_vm10, %v8193_v29, %v6649_v14  ;;  %v577_v34 = vsel %vm576_vm12, %v6661_v16, %v6629_v56  ;;  %v802_v22 = vsel %vm800_vm14, %v6689_v23, %v6711_v10 }
 0x1a0   :  { %v803_v26 = vsel %vm800_vm14, %v6711_v10, %v6699_v18  ;;  %v719_v25 = vadd.f32 %v690_v39, %v607_v40  ;;  %v720_v62 = vadd.f32 %v691_v27, %v608_v2  ;;  %v689_v56 = vsel %vm688_vm13, %v6691_v57, %v6659_v38 }
 0x1a1   :  { %v6750_v49 = vpop.permute.xlu0 %682  ;;  %v887_v3 = vpop.permute.xlu1 %886  ;;  %v393_v8 = vadd.f32 %v364_v20, %v281_v58  ;;  %v606_v61 = vadd.f32 %v577_v34, %v494_v47  ;;  %v588_v57 = vsel %vm576_vm12, %v6383_v15, %v6709_v33  ;;  %v801_v58 = vsel %vm800_vm14, %v6718_v36, %v6689_v23  ;;  %v5654_v15 = vld [vmem:[#allocation8 + $0xa4] ss:$8 sps:$4 sm:$0xff]  }
 0x1a2   :  { %1900 = vmatpush1.bf16.msra.mxu0 %v5647_v4  ;;  %2226 = vmatpush1.bf16.msra.mxu1 %v5647_v4  ;;  %v914_v10 = vsel %vm912_vm15, %v6716_v43, %v887_v3  ;;  %v915_v11 = vsel %vm912_vm15, %v887_v3, %v6720_v51  ;;  %v282_v4 = vadd.f32 %v253_v6, %v170_v19 }
 0x1a3   :  { %1901 = vmatprep.subr.bf16.mxu0 %v5648_v0  ;;  %2227 = vmatprep.subr.bf16.mxu1 %v5648_v0  ;;  %v831_v38 = vadd.f32 %v802_v22, %v719_v25  ;;  %v832_v13 = vadd.f32 %v803_v26, %v720_v62  ;;  %v505_v24 = vadd.f32 %v476_v28, %v393_v8  ;;  %v5653_v0 = vld [vmem:[#allocation8 + $0x90] ss:$8 sps:$4 sm:$0xff]  }
 0x1a4   :  { %v718_v39 = vadd.f32 %v689_v56, %v606_v61  ;;  %v700_v3 = vsel %vm688_vm13, %v6401_v48, %v6750_v49  ;;  %v365_v48 = vsel %vm352_vm10, %v6649_v14, %v6671_v44  ;;  %v477_v28 = vsel %vm464_vm11, %v6679_v59, %v6701_v55  ;;  %v5657_v56 = vld [vmem:[#allocation8 + $0xb4] ss:$8 sps:$4 sm:$0xff]  }
 0x1a5   :  { %v6772_v31 = vpop.permute.xlu0 %996  ;;  %v883_v41 = vpop.permute.xlu1 %882  ;;  %v943_v19 = vadd.f32 %v914_v10, %v831_v38  ;;  %v944_v47 = vadd.f32 %v915_v11, %v832_v13  ;;  %v617_v29 = vadd.f32 %v588_v57, %v505_v24  ;;  %v394_v59 = vadd.f32 %v365_v48, %v282_v4  ;;  %v5659_v13 = vld [vmem:[#allocation8 + $0xb0] ss:$8 sps:$4 sm:$0xff]  }
 0x1a6   :  { %1902 = vmatpush1.bf16.msra.mxu0 %v5650_v60  ;;  %2228 = vmatpush1.bf16.msra.mxu1 %v5650_v60  ;;  %v913_v20 = vsel %vm912_vm15, %v883_v41, %v6716_v43  ;;  %v830_v40 = vadd.f32 %v801_v58, %v718_v39  ;;  %v5656_v41 = vld [vmem:[#allocation8 + $0xa0] ss:$8 sps:$4 sm:$0xff]   ;;  %v589_v38 = vsel %vm576_vm12, %v6709_v33, %v6722_v12  ;;  %v5660_v58 = vld [vmem:[#allocation8 + $0xc4] ss:$8 sps:$4 sm:$0xff]  }
 0x1a7   :  { %1903 = vmatprep.subr.bf16.mxu0 %v5651_v21  ;;  %2229 = vmatprep.subr.bf16.mxu1 %v5651_v21  ;;  %v729_v22 = vadd.f32 %v700_v3, %v617_v29  ;;  %v506_v57 = vadd.f32 %v477_v28, %v394_v59  ;;  %v5666_v28 = vld [vmem:[#allocation8 + $0xe4] ss:$8 sps:$4 sm:$0xff]  }
 0x1a8   :  { %v942_v26 = vadd.f32 %v913_v20, %v830_v40  ;;  %v5674_v59 = vld [vmem:[#allocation8 + $0x104] ss:$8 sps:$4 sm:$0xff]  }
 0x1a9   :  { %v6801_v16 = vpop.permute.xlu0 %1000  ;;  %v6803_v54 = vpop.permute.xlu1 %684  ;;  %v618_v3 = vadd.f32 %v589_v38, %v506_v57 }
 0x1aa   :  { %1904 = vmatpush1.bf16.msra.mxu0 %v5653_v0  ;;  %2230 = vmatpush1.bf16.msra.mxu1 %v5653_v0  ;;  %v701_v33 = vsel %vm688_vm13, %v6750_v49, %v6803_v54 }
 0x1ab   :  { %1905 = vmatprep.subr.bf16.mxu0 %v5654_v15  ;;  %2231 = vmatprep.subr.bf16.mxu1 %v5654_v15  ;;  %v5662_v15 = vld [vmem:[#allocation8 + $0xc0] ss:$8 sps:$4 sm:$0xff]   ;;  %v730_v29 = vadd.f32 %v701_v33, %v618_v3 }
 0x1ad   :  { %v795_v6 = vpop.permute.xlu0 %794  ;;  %v999_v27 = vpop.permute.xlu1 %998 }
 0x1ae   :  { %v1026_v23 = vsel %vm1024_vm0, %v6772_v31, %v999_v27  ;;  %v1027_v36 = vsel %vm1024_vm0, %v999_v27, %v6801_v16  ;;  %v812_v43 = vsel %vm800_vm14, %v6433_v52, %v795_v6  ;;  %1906 = vmatpush1.bf16.msra.mxu0 %v5656_v41  ;;  %2232 = vmatpush1.bf16.msra.mxu1 %v5656_v41  ;;  %v5668_v41 = vld [vmem:[#allocation8 + $0xe0] ss:$8 sps:$4 sm:$0xff]  }
 0x1af   :  { %v1055_v2 = vadd.f32 %v1026_v23, %v943_v19  ;;  %v1056_v34 = vadd.f32 %v1027_v36, %v944_v47  ;;  %v841_v8 = vadd.f32 %v812_v43, %v729_v22  ;;  %1907 = vmatprep.subr.bf16.mxu0 %v5657_v56  ;;  %2233 = vmatprep.subr.bf16.mxu1 %v5657_v56  ;;  %v5671_v56 = vld [vmem:[#allocation8 + $0xf0] ss:$8 sps:$4 sm:$0xff]  }
 0x1b1   :  { %v6833_v60 = vadd.f32 %v6283_v5, %v1055_v2  ;;  %v6836_v14 = vadd.f32 %v6283_v5, %v1056_v34  ;;  %v907_v25 = vpop.permute.xlu0 %906  ;;  %v995_v62 = vpop.permute.xlu1 %994 }
 0x1b2   :  { %v924_v21 = vsel %vm912_vm15, %v6514_v30, %v907_v25  ;;  %v1025_v52 = vsel %vm1024_vm0, %v995_v62, %v6772_v31  ;;  %1908 = vmatpush1.bf16.msra.mxu0 %v5659_v13  ;;  %2234 = vmatpush1.bf16.msra.mxu1 %v5659_v13 }
 0x1b3   :  { %v1091_v61 = vmax.f32 %v6833_v60, 0.0  ;;  %v1092_v10 = vmax.f32 %v6836_v14, 0.0  ;;  %v1054_v11 = vadd.f32 %v1025_v52, %v942_v26  ;;  %v953_v4 = vadd.f32 %v924_v21, %v841_v8  ;;  %1909 = vmatprep.subr.bf16.mxu0 %v5660_v58  ;;  %2235 = vmatprep.subr.bf16.mxu1 %v5660_v58 }
 0x1b5   :  { %v6848_v30 = vadd.f32 %v6283_v5, %v1054_v11  ;;  %v1019_v24 = vpop.permute.xlu0 %1018  ;;  %v6850_v31 = vpop.permute.xlu1 %796  ;;  %v5505_v39 = vpack.i.bf16 %v1092_v10, %v1091_v61 }
 0x1b6   :  { %v1036_v0 = vsel %vm1024_vm0, %v6537_v32, %v1019_v24  ;;  %v813_v27 = vsel %vm800_vm14, %v795_v6, %v6850_v31  ;;  %v5663_v32 = vld [vmem:[#allocation8 + $0xd4] ss:$8 sps:$4 sm:$0xff]   ;;  %1910 = vmatpush1.bf16.msra.mxu0 %v5662_v15  ;;  %v5665_v6 = vld [vmem:[#allocation8 + $0xd0] ss:$8 sps:$4 sm:$0xff]   ;;  %2236 = vmatpush1.bf16.msra.mxu1 %v5662_v15 }
 0x1b7   :  { %v1090_v19 = vmax.f32 %v6848_v30, 0.0  ;;  %v1065_v47 = vadd.f32 %v1036_v0, %v953_v4  ;;  %5506 = vrot.lane.b32.xlu0 %v5505_v39, %s5910_s1  ;;  %v842_v48 = vadd.f32 %v813_v27, %v730_v29  ;;  %1911 = vmatprep.subr.bf16.mxu0 %v5663_v32  ;;  %v8194_v27 = vmax.f32 %v6552_v17, 0.0  ;;  %v7100_v30 = vld [vmem:[#allocation8 + $0x110] ss:$8 sps:$4 sm:$0xff]  }
 0x1b8   :  { %2237 = vmatprep.subr.bf16.mxu1 %v5663_v32 }
 0x1b9   :  { %v6866_v20 = vadd.f32 %v6283_v5, %v1065_v47  ;;  %v6868_v49 = vpop.permute.xlu1 %908  ;;  %v6891_v21 = vpop.permute.xlu0 %218 }
 0x1ba   :  { %v925_v23 = vsel %vm912_vm15, %v907_v25, %v6868_v49  ;;  %1912 = vmatpush1.bf16.msra.mxu0 %v5665_v6  ;;  %2238 = vmatpush1.bf16.msra.mxu1 %v5665_v6  ;;  %v5669_v25 = vld [vmem:[#allocation8 + $0xf4] ss:$8 sps:$4 sm:$0xff]  }
 0x1bb   :  { %v1101_v36 = vmax.f32 %v6866_v20, 0.0  ;;  %5516 = vrot.lane.b32.xlu0 %v5505_v39, %s5912_s25  ;;  %v954_v40 = vadd.f32 %v925_v23, %v842_v48  ;;  %1913 = vmatprep.subr.bf16.mxu0 %v5666_v28 }
 0x1bc   :  { %2239 = vmatprep.subr.bf16.mxu1 %v5666_v28 }
 0x1bd   :  { %v6874_v2 = vpop.permute.xlu1 %1020  ;;  %v5510_v34 = vpack.i.bf16 %v1101_v36, %v1090_v19  ;;  %v6897_v8 = vpop.permute.xlu0 %330 }
 0x1be   :  { %v1037_v22 = vsel %vm1024_vm0, %v1019_v24, %v6874_v2  ;;  %1914 = vmatpush1.bf16.msra.mxu0 %v5668_v41  ;;  %2240 = vmatpush1.bf16.msra.mxu1 %v5668_v41  ;;  %v8195_v41 = vmax.f32 %v6564_v50, 0.0 }
 0x1bf   :  { %v1066_v43 = vadd.f32 %v1037_v22, %v954_v40  ;;  %5526 = vrot.lane.b32.xlu0 %v5505_v39, %s5913_s26  ;;  %5511 = vrot.lane.b32.xlu1 %v5510_v34, %s5910_s1 }
 0x1c0   :  { %1915 = vmatprep.subr.bf16.mxu0 %v5669_v25  ;;  %2241 = vmatprep.subr.bf16.mxu1 %v5669_v25 }
 0x1c1   :  { %v1087_v26 = vadd.f32 %v6283_v5, %v1066_v43  ;;  %v6895_v52 = vpop.permute.xlu1 %220 }
 0x1c2   :  { %1916 = vmatpush1.bf16.msra.mxu0 %v5671_v56  ;;  %2242 = vmatpush1.bf16.msra.mxu1 %v5671_v56 }
 0x1c3   :  { %v6885_v62 = vmax.f32 %v1087_v26, 0.0  ;;  %5521 = vrot.lane.b32.xlu1 %v5510_v34, %s5912_s25  ;;  %1926 = vmatprep.subr.bf16.mxu0 %v5674_v59 }
 0x1c4   :  { %2252 = vmatprep.subr.bf16.mxu1 %v5674_v59 }
 0x1c5   :  { %2075 = vrot.lane.b32.xlu0 %v6885_v62, %s5910_s1  ;;  %v6899_v11 = vpop.permute.xlu1 %332 }
 0x1c7   :  { %5531 = vrot.lane.b32.xlu1 %v5510_v34, %s5913_s26 }
 0x1cb   :  { %2109 = vrot.lane.b32.xlu1 %v6885_v62, %s5912_s25 }
 0x1d5   :  { %v5477_v57 = vpop.permute.xlu0 %5476 }
 0x1d6   :  { %v5479_v38 = vunpack.i.h.bf16 %v5477_v57  ;;  %v5478_v13 = vunpack.i.l.bf16 %v5477_v57 }
 0x1d8   :  { %v2080_v39 = vsel %vm240_vm9, %v5478_v13, %v5479_v38 }
 0x1d9   :  { %v5487_v4 = vpop.permute.xlu0 %5486  ;;  %v6901_v24 = vpop.permute.xlu1 %5481  ;;  %v2093_v15 = vmax.f32 %v8194_v27, %v2080_v39 }
 0x1da   :  { %v5489_v58 = vunpack.i.h.bf16 %v5487_v4  ;;  %v5488_v33 = vunpack.i.l.bf16 %v5487_v4  ;;  %v5483_v0 = vunpack.i.l.bf16 %v6901_v24  ;;  %v5484_v47 = vunpack.i.h.bf16 %v6901_v24 }
 0x1dc   :  { %v2114_v3 = vsel %vm464_vm11, %v5488_v33, %v5489_v58  ;;  %v2081_v29 = vsel %vm240_vm9, %v5479_v38, %v5483_v0  ;;  %v2079_v22 = vsel %vm240_vm9, %v5484_v47, %v5478_v13  ;;  %v8196_v13 = vmax.f32 %v6578_v42, 0.0 }
 0x1dd   :  { %v5497_v32 = vpop.permute.xlu0 %5496  ;;  %v6912_v23 = vpop.permute.xlu1 %5491  ;;  %v2127_v28 = vmax.f32 %v2093_v15, %v2114_v3  ;;  %v2094_v26 = vmax.f32 %v8195_v41, %v2081_v29 }
 0x1de   :  { %v5499_v48 = vunpack.i.h.bf16 %v5497_v32  ;;  %v5498_v6 = vunpack.i.l.bf16 %v5497_v32  ;;  %v5494_v40 = vunpack.i.h.bf16 %v6912_v23  ;;  %v5493_v34 = vunpack.i.l.bf16 %v6912_v23 }
 0x1df   :  { %v2092_v39 = vmax.f32 %v8196_v13, %v2079_v22  ;;  %v245_v13 = vsel %vm240_vm9, %v6891_v21, %v6895_v52 }
 0x1e0   :  { %v2148_v43 = vsel %vm576_vm12, %v5498_v6, %v5499_v48  ;;  %v2115_v17 = vsel %vm464_vm11, %v5489_v58, %v5493_v34  ;;  %v2113_v57 = vsel %vm464_vm11, %v5494_v40, %v5488_v33 }
 0x1e1   :  { %v443_v25 = vpop.permute.xlu0 %442  ;;  %v6923_v56 = vpop.permute.xlu1 %5501  ;;  %v2161_v59 = vmax.f32 %v2127_v28, %v2148_v43  ;;  %v2128_v3 = vmax.f32 %v2094_v26, %v2115_v17  ;;  %v2126_v27 = vmax.f32 %v2092_v39, %v2113_v57  ;;  %v8197_v28 = vld [vmem:[#allocation18_spill] sm:$0xff] }
 0x1e2   :  { %v5504_v38 = vunpack.i.h.bf16 %v6923_v56  ;;  %v5503_v4 = vunpack.i.l.bf16 %v6923_v56  ;;  %v410_v41 = vmul.f32 %v6119_v53, %v8197_v28  ;;  %v298_v26 = vmul.f32 %v6097_v45, %v8197_v28  ;;  %v8199_v53 = vld [vmem:[#allocation15_spill] sm:$0xff]  ;;  %v8200_v45 = vld [vmem:[#allocation16_spill] sm:$0xff] }
 0x1e3   :  { %v2168_v47 = vpack.c.bf16 %v2161_v59, %v2161_v59  ;;  %v161_v39 = vmul.f32 %v8199_v53, %v6268_v63  ;;  %v8203_v53 = vld [vmem:[#allocation22_spill] sm:$0xff] }
 0x1e4   :  { %v2147_v58 = vsel %vm576_vm12, %v5504_v38, %v5498_v6  ;;  %v2149_v50 = vsel %vm576_vm12, %v5499_v48, %v5503_v4  ;;  %v186_v48 = vmul.f32 %v6070_v35, %v8197_v28  ;;  %v8198_v35 = vld [vmem:[#allocation37_spill] sm:$0xff] }
 0x1e5   :  { %v239_v15 = vpop.permute.xlu0 %238  ;;  %2183 = vrot.lane.b32.xlu0 %v2168_v47, %s5918_s10  ;;  %v6935_v33 = vpop.permute.xlu1 %444  ;;  %v2162_v29 = vmax.f32 %v2128_v3, %v2149_v50  ;;  %v2160_v40 = vmax.f32 %v2126_v27, %v2147_v58  ;;  %v244_v38 = vsel %vm240_vm9, %v8198_v35, %v6891_v21  ;;  %v162_v3 = vmul.f32 %v8200_v45, %v6268_v63  ;;  %v8201_v47 = vld [vmem:[#allocation20_spill] sm:$0xff]  ;;  %v8202_v50 = vld [vmem:[#allocation19_spill] sm:$0xff] }
 0x1e6   :  { %v634_v58 = vmul.f32 %v8201_v47, %v8197_v28  ;;  %v522_v27 = vmul.f32 %v8202_v50, %v8197_v28  ;;  %v357_v21 = vsel %vm352_vm10, %v6897_v8, %v6899_v11  ;;  %v7108_v56 = vld [vmem:[#allocation8 + $0x120] ss:$8 sps:$4 sm:$0xff]  }
 0x1e7   :  { %v2169_v32 = vpack.c.bf16 %v2162_v29, %v2162_v29  ;;  %v2167_v22 = vpack.c.bf16 %v2160_v40, %v2160_v40  ;;  %v356_v29 = vsel %vm352_vm10, %v6590_v9, %v6897_v8  ;;  %v274_v40 = vadd.f32 %v245_v13, %v162_v3 }
 0x1e8   :  { %v858_v8 = vmul.f32 %v8203_v53, %v8197_v28 }
 0x1e9   :  { %v6937_v42 = vpop.permute.xlu0 %556  ;;  %2143 = vrot.lane.b32.xlu0 %v6885_v62, %s5913_s26  ;;  %v555_v6 = vpop.permute.xlu1 %554  ;;  %2185 = vrot.lane.b32.xlu1 %v2169_v32, %s5918_s10  ;;  %v273_v32 = vadd.f32 %v244_v38, %v161_v39  ;;  %v386_v35 = vadd.f32 %v357_v21, %v274_v40  ;;  %v8204_v38 = vld [vmem:[#allocation21_spill] sm:$0xff] }
 0x1ea   :  { %v746_v13 = vmul.f32 %v8204_v38, %v8197_v28  ;;  %v580_v39 = vsel %vm576_vm12, %v6639_v1, %v555_v6  ;;  %v581_v45 = vsel %vm576_vm12, %v555_v6, %v6937_v42 }
 0x1eb   :  { %v385_v9 = vadd.f32 %v356_v29, %v273_v32  ;;  %v8206_v32 = vld [vmem:[#allocation23_spill] sm:$0xff] }
 0x1ec   :  { %v970_v40 = vmul.f32 %v8206_v32, %v8197_v28 }
 0x1ed   :  { %v667_v43 = vpop.permute.xlu0 %666  ;;  %222 = vrot.lane.b32.xlu0 %v186_v48, %s5910_s1  ;;  %v351_v17 = vpop.permute.xlu1 %350  ;;  %2181 = vrot.lane.b32.xlu1 %v2167_v22, %s5918_s10 }
 0x1ee   :  { %v692_v50 = vsel %vm688_vm13, %v6669_v7, %v667_v43 }
 0x1f1   :  { %v463_v59 = vpop.permute.xlu0 %462  ;;  %446 = vrot.lane.b32.xlu0 %v410_v41, %s5912_s25  ;;  %v6951_v57 = vpop.permute.xlu1 %668  ;;  %334 = vrot.lane.b32.xlu1 %v298_v26, %s5911_s2  ;;  %v468_v41 = vsel %vm464_vm11, %v6606_v46, %v443_v25  ;;  %v469_v26 = vsel %vm464_vm11, %v443_v25, %v6935_v33 }
 0x1f2   :  { %v497_v3 = vadd.f32 %v468_v41, %v385_v9  ;;  %v498_v47 = vadd.f32 %v469_v26, %v386_v35  ;;  %v693_v1 = vsel %vm688_vm13, %v667_v43, %v6951_v57  ;;  %v366_v41 = vsel %vm352_vm10, %v6671_v44, %v351_v17 }
 0x1f3   :  { %v478_v53 = vsel %vm464_vm11, %v6701_v55, %v463_v59 }
 0x1f4   :  { %v609_v29 = vadd.f32 %v580_v39, %v497_v3  ;;  %v610_v21 = vadd.f32 %v581_v45, %v498_v47 }
 0x1f5   :  { %v6974_v48 = vpop.permute.xlu0 %780  ;;  %670 = vrot.lane.b32.xlu0 %v634_v58, %s5914_s27  ;;  %v779_v22 = vpop.permute.xlu1 %778  ;;  %558 = vrot.lane.b32.xlu1 %v522_v27, %s5913_s26  ;;  %v254_v58 = vsel %vm240_vm9, %v6641_v37, %v239_v15  ;;  %v8205_v27 = vld [vmem:[#allocation25_spill] sm:$0xff] }
 0x1f6   :  { %v171_v6 = vmul.f32 %v8205_v27, %v6268_v63  ;;  %v804_v37 = vsel %vm800_vm14, %v6699_v18, %v779_v22  ;;  %v805_v7 = vsel %vm800_vm14, %v779_v22, %v6974_v48  ;;  %v721_v26 = vadd.f32 %v692_v50, %v609_v29 }
 0x1f7   :  { %v722_v43 = vadd.f32 %v693_v1, %v610_v21 }
 0x1f8   :  { %v283_v15 = vadd.f32 %v254_v58, %v171_v6 }
 0x1f9   :  { %v891_v46 = vpop.permute.xlu0 %890  ;;  %894 = vrot.lane.b32.xlu0 %v858_v8, %s5916_s29  ;;  %v575_v25 = vpop.permute.xlu1 %574  ;;  %782 = vrot.lane.b32.xlu1 %v746_v13, %s5915_s28  ;;  %v833_v8 = vadd.f32 %v804_v37, %v721_v26  ;;  %v834_v22 = vadd.f32 %v805_v7, %v722_v43 }
 0x1fa   :  { %v916_v44 = vsel %vm912_vm15, %v6720_v51, %v891_v46  ;;  %v395_v17 = vadd.f32 %v366_v41, %v283_v15  ;;  %v590_v38 = vsel %vm576_vm12, %v6722_v12, %v575_v25 }
 0x1fb   :  { %v945_v39 = vadd.f32 %v916_v44, %v833_v8 }
 0x1fc   :  { %v507_v13 = vadd.f32 %v478_v53, %v395_v17 }
 0x1fd   :  { %v687_v9 = vpop.permute.xlu0 %686  ;;  %v7008_v35 = vpop.permute.xlu1 %892  ;;  %1006 = vrot.lane.b32.xlu1 %v970_v40, %s5917_s30  ;;  %s5930_s30 = smov 57  }
 0x1fe   :  { %v917_v18 = vsel %vm912_vm15, %v891_v46, %v7008_v35  ;;  %v702_v55 = vsel %vm688_vm13, %v6803_v54, %v687_v9  ;;  %v619_v46 = vadd.f32 %v590_v38, %v507_v13 }
 0x1ff   :  { %v946_v45 = vadd.f32 %v917_v18, %v834_v22 }
 0x200   :  { %v731_v1 = vadd.f32 %v702_v55, %v619_v46 }
 0x201   :  { %v7019_v3 = vpop.permute.xlu0 %1004  ;;  %v1003_v47 = vpop.permute.xlu1 %1002 }
 0x202   :  { %v1028_v51 = vsel %vm1024_vm0, %v6801_v16, %v1003_v47  ;;  %v1029_v59 = vsel %vm1024_vm0, %v1003_v47, %v7019_v3 }
 0x203   :  { %v1057_v58 = vadd.f32 %v1028_v51, %v945_v39  ;;  %v1058_v50 = vadd.f32 %v1029_v59, %v946_v45 }
 0x205   :  { %v7028_v12 = vadd.f32 %v6283_v5, %v1057_v58  ;;  %v7031_v25 = vadd.f32 %v6283_v5, %v1058_v50  ;;  %v911_v27 = vpop.permute.xlu0 %910  ;;  %v799_v6 = vpop.permute.xlu1 %798 }
 0x206   :  { %v814_v54 = vsel %vm800_vm14, %v6850_v31, %v799_v6  ;;  %v926_v32 = vsel %vm912_vm15, %v6868_v49, %v911_v27 }
 0x207   :  { %v1093_v16 = vmax.f32 %v7028_v12, 0.0  ;;  %v1094_v29 = vmax.f32 %v7031_v25, 0.0  ;;  %v843_v21 = vadd.f32 %v814_v54, %v731_v1  ;;  %v8207_v54 = vld [vmem:[#allocation35_spill] sm:$0xff] }
 0x209   :  { %v955_v40 = vadd.f32 %v926_v32, %v843_v21  ;;  %v1023_v41 = vpop.permute.xlu1 %1022  ;;  %v5535_v37 = vpack.i.bf16 %v1094_v29, %v1093_v16  ;;  %v8208_v21 = vmax.f32 %v8207_v54, 0.0  ;;  %v7148_v54 = vld [vmem:[#allocation8 + $0x170] ss:$8 sps:$4 sm:$0xff]  }
 0x20a   :  { %v1038_v7 = vsel %vm1024_vm0, %v6874_v2, %v1023_v41 }
 0x20b   :  { %v1067_v15 = vadd.f32 %v1038_v7, %v955_v40  ;;  %5536 = vrot.lane.b32.xlu0 %v5535_v37, %s5910_s1  ;;  %5541 = vrot.lane.b32.xlu1 %v5535_v37, %s5912_s25 }
 0x20d   :  { %v1088_v31 = vadd.f32 %v6283_v5, %v1067_v15 }
 0x20f   :  { %v7048_v26 = vmax.f32 %v1088_v31, 0.0  ;;  %5546 = vrot.lane.b32.xlu0 %v5535_v37, %s5913_s26 }
 0x211   :  { %2077 = vrot.lane.b32.xlu1 %v7048_v26, %s5910_s1 }
 0x213   :  { %2111 = vrot.lane.b32.xlu0 %v7048_v26, %s5912_s25 }
 0x229   :  { %v7055_v49 = vpop.permute.xlu0 %5506 }
 0x22a   :  { %v5509_v2 = vunpack.i.h.bf16 %v7055_v49  ;;  %v5508_v43 = vunpack.i.l.bf16 %v7055_v49 }
 0x22c   :  { %v1255_v18 = vsel %vm240_vm9, %v5508_v43, %v5509_v2 }
 0x22d   :  { %v7059_v9 = vpop.permute.xlu0 %5516  ;;  %v1268_v38 = vmax.f32 %v1091_v61, %v1255_v18 }
 0x22e   :  { %v5519_v53 = vunpack.i.h.bf16 %v7059_v9  ;;  %v5518_v44 = vunpack.i.l.bf16 %v7059_v9 }
 0x230   :  { %v1289_v17 = vsel %vm464_vm11, %v5518_v44, %v5519_v53 }
 0x231   :  { %v7069_v8 = vpop.permute.xlu0 %5526  ;;  %v5512_v22 = vpop.permute.xlu1 %5511  ;;  %v1302_v55 = vmax.f32 %v1268_v38, %v1289_v17  ;;  %v7096_v17 = vld [vmem:[#allocation8 + $0x114] ss:$8 sps:$4 sm:$0xff]   ;;  %v7117_v38 = vld [vmem:[#allocation8 + $0x144] ss:$8 sps:$4 sm:$0xff]  }
 0x232   :  { %v5529_v13 = vunpack.i.h.bf16 %v7069_v8  ;;  %v5528_v39 = vunpack.i.l.bf16 %v7069_v8  ;;  %v5514_v45 = vunpack.i.h.bf16 %v5512_v22  ;;  %v5513_v47 = vunpack.i.l.bf16 %v5512_v22  ;;  %v7114_v22 = vld [vmem:[#allocation8 + $0x130] ss:$8 sps:$4 sm:$0xff]  }
 0x233   :  { %v7325_v8 = vld [vmem:[#allocation8 + $0x210] ss:$8 sps:$4 sm:$0xff]  }
 0x234   :  { %v1323_v51 = vsel %vm576_vm12, %v5528_v39, %v5529_v13  ;;  %v2082_v58 = vsel %vm240_vm9, %v5483_v0, %v5514_v45  ;;  %v1254_v60 = vsel %vm240_vm9, %v5513_v47, %v5508_v43  ;;  %v7094_v43 = vld [vmem:[#allocation8 + $0x100] ss:$8 sps:$4 sm:$0xff]   ;;  %v7123_v47 = vld [vmem:[#allocation8 + $0x154] ss:$8 sps:$4 sm:$0xff]  }
 0x235   :  { %v5522_v59 = vpop.permute.xlu1 %5521  ;;  %v1336_v46 = vmax.f32 %v1302_v55, %v1323_v51  ;;  %v2095_v32 = vmax.f32 %v8208_v21, %v2082_v58  ;;  %v1267_v24 = vmax.f32 %v1090_v19, %v1254_v60  ;;  %v7103_v19 = vld [vmem:[#allocation8 + $0x124] ss:$8 sps:$4 sm:$0xff]   ;;  %v7126_v55 = vld [vmem:[#allocation8 + $0x150] ss:$8 sps:$4 sm:$0xff]   ;;  %v7138_v60 = vld [vmem:[#allocation8 + $0x160] ss:$8 sps:$4 sm:$0xff]  }
 0x236   :  { %v5524_v61 = vunpack.i.h.bf16 %v5522_v59  ;;  %v5523_v50 = vunpack.i.l.bf16 %v5522_v59  ;;  %v7131_v59 = vld [vmem:[#allocation8 + $0x164] ss:$8 sps:$4 sm:$0xff]  }
 0x237   :  { %v1343_v1 = vpack.c.bf16 %v1336_v46, %v1336_v46  ;;  %v7128_v51 = vpop.permute.xlu0 %2075 }
 0x238   :  { %v2116_v27 = vsel %vm464_vm11, %v5493_v34, %v5524_v61  ;;  %v1288_v6 = vsel %vm464_vm11, %v5523_v50, %v5518_v44  ;;  %v2083_v58 = vsel %vm240_vm9, %v5514_v45, %v7128_v51 }
 0x239   :  { %1917 = vmatprep.mubr.bf16.mxu0 %v1343_v1  ;;  %v5532_v40 = vpop.permute.xlu1 %5531  ;;  %v2129_v37 = vmax.f32 %v2095_v32, %v2116_v27  ;;  %v1301_v7 = vmax.f32 %v1267_v24, %v1288_v6  ;;  %v7141_v1 = vld [vmem:[#allocation8 + $0x174] ss:$8 sps:$4 sm:$0xff]   ;;  %v2096_v6 = vmax.f32 %v1101_v36, %v2083_v58  ;;  %v7162_v24 = vld [vmem:[#allocation8 + $0x180] ss:$8 sps:$4 sm:$0xff]   ;;  %v164_v58 = vmul.f32 %v8197_v28, %v6268_v63 }
 0x23a   :  { %v5534_v0 = vunpack.i.h.bf16 %v5532_v40  ;;  %v5533_v41 = vunpack.i.l.bf16 %v5532_v40  ;;  %v7155_v40 = vld [vmem:[#allocation8 + $0x184] ss:$8 sps:$4 sm:$0xff]   ;;  %v8211_v28 = vld [vmem:[#allocation28_spill] sm:$0xff] }
 0x23c   :  { %v2150_v23 = vsel %vm576_vm12, %v5503_v4, %v5534_v0  ;;  %v1322_v34 = vsel %vm576_vm12, %v5533_v41, %v5528_v39  ;;  %v7111_v4 = vld [vmem:[#allocation8 + $0x134] ss:$8 sps:$4 sm:$0xff]   ;;  %v7120_v39 = vld [vmem:[#allocation8 + $0x140] ss:$8 sps:$4 sm:$0xff]  }
 0x23d   :  { %v2163_v15 = vmax.f32 %v2129_v37, %v2150_v23  ;;  %v1335_v31 = vmax.f32 %v1301_v7, %v1322_v34  ;;  %v7133_v46 = vpop.permute.xlu1 %2109  ;;  %v7165_v23 = vld [vmem:[#allocation8 + $0x194] ss:$8 sps:$4 sm:$0xff]  }
 0x23e   :  { %v2117_v27 = vsel %vm464_vm11, %v5524_v61, %v7133_v46 }
 0x23f   :  { %v2170_v44 = vpack.c.bf16 %v2163_v15, %v2163_v15  ;;  %v1342_v18 = vpack.c.bf16 %v1335_v31, %v1335_v31  ;;  %v2130_v45 = vmax.f32 %v2096_v6, %v2117_v27  ;;  %v7178_v27 = vld [vmem:[#allocation8 + $0x190] ss:$8 sps:$4 sm:$0xff]  }
 0x241   :  { %2187 = vrot.lane.b32.xlu1 %v2170_v44, %s5918_s10  ;;  %1918 = vmatmul.mubr.bf16.vlgmr.msra.gmra.mrb[0].mxu0 %v1342_v18  ;;  %v8210_v44 = vld [vmem:[#allocation17_spill] sm:$0xff] }
 0x242   :  { %1927 = vmatpush1.bf16.msra.mxu0 %v7094_v43  ;;  %v163_v18 = vmul.f32 %v8210_v44, %v6268_v63  ;;  %v8213_v44 = vld [vmem:[#allocation31_spill] sm:$0xff] }
 0x243   :  { %1928 = vmatprep.subr.bf16.mxu0 %v7096_v17 }
 0x245   :  { %2145 = vrot.lane.b32.xlu1 %v7048_v26, %s5913_s26 }
 0x246   :  { %1929 = vmatpush1.bf16.msra.mxu0 %v7100_v30 }
 0x247   :  { %1930 = vmatprep.subr.bf16.mxu0 %v7103_v19 }
 0x24a   :  { %1931 = vmatpush1.bf16.msra.mxu0 %v7108_v56 }
 0x24b   :  { %1932 = vmatprep.subr.bf16.mxu0 %v7111_v4 }
 0x24e   :  { %1933 = vmatpush1.bf16.msra.mxu0 %v7114_v22 }
 0x24f   :  { %1934 = vmatprep.subr.bf16.mxu0 %v7117_v38 }
 0x252   :  { %1935 = vmatpush1.bf16.msra.mxu0 %v7120_v39 }
 0x253   :  { %1936 = vmatprep.subr.bf16.mxu0 %v7123_v47 }
 0x256   :  { %1937 = vmatpush1.bf16.msra.mxu0 %v7126_v55 }
 0x257   :  { %v2184_v50 = vpop.permute.xlu0 %2183  ;;  %1938 = vmatprep.subr.bf16.mxu0 %v7131_v59 }
 0x25a   :  { %1939 = vmatpush1.bf16.msra.mxu0 %v7138_v60 }
 0x25b   :  { %v7150_v21 = vpop.permute.xlu0 %2143  ;;  %v7152_v32 = vpop.permute.xlu1 %2185  ;;  %1940 = vmatprep.subr.bf16.mxu0 %v7141_v1 }
 0x25c   :  { %v2151_v61 = vsel %vm576_vm12, %v5534_v0, %v7150_v21  ;;  %v2197_v20 = vsel %vm2195_vm2, %v2184_v50, %v7152_v32  ;;  %v8209_v0 = vld [vmem:[#allocation27_spill] sm:$0xff] }
 0x25d   :  { %v2164_v36 = vmax.f32 %v2130_v45, %v2151_v61  ;;  %2243 = vmatprep.mubr.bf16.mxu1 %v2197_v20 }
 0x25e   :  { %1941 = vmatpush1.bf16.msra.mxu0 %v7148_v54 }
 0x25f   :  { %v2171_v41 = vpack.c.bf16 %v2164_v36, %v2164_v36  ;;  %v223_v37 = vpop.permute.xlu0 %222  ;;  %v2182_v7 = vpop.permute.xlu1 %2181  ;;  %1942 = vmatprep.subr.bf16.mxu0 %v7155_v40 }
 0x260   :  { %v246_v34 = vsel %vm240_vm9, %v6895_v52, %v223_v37  ;;  %v247_v15 = vsel %vm240_vm9, %v223_v37, %v8209_v0  ;;  %v2196_v31 = vsel %vm2195_vm2, %v2182_v7, %v2184_v50  ;;  %v7182_v50 = vld [vmem:[#allocation8 + $0x1a4] ss:$8 sps:$4 sm:$0xff]  }
 0x261   :  { %2244 = vmatmul.mubr.bf16.vlgmr.msra.gmra.mrb[0].mxu1 %v2196_v31  ;;  %2189 = vrot.lane.b32.xlu0 %v2171_v41, %s5918_s10  ;;  %v275_v52 = vadd.f32 %v246_v34, %v163_v18  ;;  %v276_v6 = vadd.f32 %v247_v15, %v164_v58  ;;  %v8212_v37 = vld [vmem:[#allocation30_spill] sm:$0xff]  ;;  %v7198_v31 = vld [vmem:[#allocation8 + $0x1b4] ss:$8 sps:$4 sm:$0xff]  }
 0x262   :  { %1943 = vmatpush1.bf16.msra.mxu0 %v7162_v24  ;;  %2253 = vmatpush1.bf16.msra.mxu1 %v7094_v43  ;;  %v7194_v34 = vld [vmem:[#allocation8 + $0x1a0] ss:$8 sps:$4 sm:$0xff]  }
 0x263   :  { %v447_v45 = vpop.permute.xlu0 %446  ;;  %v335_v61 = vpop.permute.xlu1 %334  ;;  %1944 = vmatprep.subr.bf16.mxu0 %v7165_v23  ;;  %2254 = vmatprep.subr.bf16.mxu1 %v7096_v17 }
 0x264   :  { %v358_v63 = vsel %vm352_vm10, %v6899_v11, %v335_v61  ;;  %v359_v20 = vsel %vm352_vm10, %v335_v61, %v8211_v28  ;;  %v470_v43 = vsel %vm464_vm11, %v6935_v33, %v447_v45  ;;  %v471_v7 = vsel %vm464_vm11, %v447_v45, %v8212_v37  ;;  %v7210_v61 = vld [vmem:[#allocation8 + $0x1b0] ss:$8 sps:$4 sm:$0xff]  }
 0x265   :  { %v387_v36 = vadd.f32 %v358_v63, %v275_v52  ;;  %v388_v41 = vadd.f32 %v359_v20, %v276_v6  ;;  %v8214_v6 = vld [vmem:[#allocation32_spill] sm:$0xff]  ;;  %v7214_v20 = vld [vmem:[#allocation8 + $0x1c4] ss:$8 sps:$4 sm:$0xff]  }
 0x266   :  { %1945 = vmatpush1.bf16.msra.mxu0 %v7178_v27  ;;  %2255 = vmatpush1.bf16.msra.mxu1 %v7100_v30 }
 0x267   :  { %v671_v17 = vpop.permute.xlu0 %670  ;;  %v499_v0 = vadd.f32 %v470_v43, %v387_v36  ;;  %v500_v11 = vadd.f32 %v471_v7, %v388_v41  ;;  %v559_v15 = vpop.permute.xlu1 %558  ;;  %1946 = vmatprep.subr.bf16.mxu0 %v7182_v50  ;;  %2256 = vmatprep.subr.bf16.mxu1 %v7103_v19  ;;  %v8215_v36 = vld [vmem:[#allocation33_spill] sm:$0xff]  ;;  %v8216_v7 = vld [vmem:[#allocation34_spill] sm:$0xff] }
 0x268   :  { %v582_v33 = vsel %vm576_vm12, %v6937_v42, %v559_v15  ;;  %v583_v18 = vsel %vm576_vm12, %v559_v15, %v8213_v44  ;;  %v694_v30 = vsel %vm688_vm13, %v6951_v57, %v671_v17  ;;  %v695_v45 = vsel %vm688_vm13, %v671_v17, %v8214_v6  ;;  %v7230_v15 = vld [vmem:[#allocation8 + $0x1d4] ss:$8 sps:$4 sm:$0xff]  }
 0x269   :  { %v611_v58 = vadd.f32 %v582_v33, %v499_v0  ;;  %v612_v52 = vadd.f32 %v583_v18, %v500_v11  ;;  %v7226_v0 = vld [vmem:[#allocation8 + $0x1c0] ss:$8 sps:$4 sm:$0xff]  }
 0x26a   :  { %1947 = vmatpush1.bf16.msra.mxu0 %v7194_v34  ;;  %2257 = vmatpush1.bf16.msra.mxu1 %v7108_v56  ;;  %v8217_v33 = vld [vmem:[#allocation36_spill] sm:$0xff] }
 0x26b   :  { %v895_v19 = vpop.permute.xlu0 %894  ;;  %v723_v63 = vadd.f32 %v694_v30, %v611_v58  ;;  %v724_v42 = vadd.f32 %v695_v45, %v612_v52  ;;  %v783_v28 = vpop.permute.xlu1 %782  ;;  %1948 = vmatprep.subr.bf16.mxu0 %v7198_v31  ;;  %2258 = vmatprep.subr.bf16.mxu1 %v7111_v4  ;;  %v7254_v45 = vld [vmem:[#allocation8 + $0x1e0] ss:$8 sps:$4 sm:$0xff]  }
 0x26c   :  { %v806_v57 = vsel %vm800_vm14, %v6974_v48, %v783_v28  ;;  %v807_v41 = vsel %vm800_vm14, %v783_v28, %v8215_v36  ;;  %v918_v56 = vsel %vm912_vm15, %v7008_v35, %v895_v19  ;;  %v919_v17 = vsel %vm912_vm15, %v895_v19, %v8216_v7  ;;  %v7320_v7 = vld [vmem:[#allocation8 + $0x214] ss:$8 sps:$4 sm:$0xff]  }
 0x26d   :  { %v835_v43 = vadd.f32 %v806_v57, %v723_v63  ;;  %v836_v37 = vadd.f32 %v807_v41, %v724_v42  ;;  %vm3841_vm14 = vcmask 149506   ;;  %vm3824_vm15 = vcmask 795016  }
 0x26e   :  { %1949 = vmatpush1.bf16.msra.mxu0 %v7210_v61  ;;  %2259 = vmatpush1.bf16.msra.mxu1 %v7114_v22  ;;  %v7238_v22 = vld [vmem:[#allocation8 + $0x1d0] ss:$8 sps:$4 sm:$0xff]  }
 0x26f   :  { %v947_v4 = vadd.f32 %v918_v56, %v835_v43  ;;  %v948_v11 = vadd.f32 %v919_v17, %v836_v37  ;;  %v1007_v48 = vpop.permute.xlu1 %1006  ;;  %1950 = vmatprep.subr.bf16.mxu0 %v7214_v20  ;;  %2260 = vmatprep.subr.bf16.mxu1 %v7117_v38  ;;  %v7360_v17 = vld [vmem:[#allocation8 + $0x264] ss:$8 sps:$4 sm:$0xff]  }
 0x270   :  { %v1030_v35 = vsel %vm1024_vm0, %v7019_v3, %v1007_v48  ;;  %v1031_v44 = vsel %vm1024_vm0, %v1007_v48, %v8217_v33  ;;  %v7248_v3 = vld [vmem:[#allocation8 + $0x1e4] ss:$8 sps:$4 sm:$0xff]   ;;  %v7383_v33 = vld [vmem:[#allocation8 + $0x290] ss:$8 sps:$4 sm:$0xff]  }
 0x271   :  { %v1059_v18 = vadd.f32 %v1030_v35, %v947_v4  ;;  %v1060_v58 = vadd.f32 %v1031_v44, %v948_v11  ;;  %v7368_v4 = vld [vmem:[#allocation8 + $0x274] ss:$8 sps:$4 sm:$0xff]   ;;  %v7371_v11 = vld [vmem:[#allocation8 + $0x270] ss:$8 sps:$4 sm:$0xff]   ;;  %v7374_v48 = vld [vmem:[#allocation8 + $0x284] ss:$8 sps:$4 sm:$0xff]  }
 0x272   :  { %1951 = vmatpush1.bf16.msra.mxu0 %v7226_v0  ;;  %2261 = vmatpush1.bf16.msra.mxu1 %v7120_v39  ;;  %v7262_v39 = vld [vmem:[#allocation8 + $0x1f4] ss:$8 sps:$4 sm:$0xff]   ;;  %v7386_v44 = vld [vmem:[#allocation8 + $0x2a4] ss:$8 sps:$4 sm:$0xff]  }
 0x273   :  { %v7242_v52 = vadd.f32 %v6283_v5, %v1059_v18  ;;  %v7245_v30 = vadd.f32 %v6283_v5, %v1060_v58  ;;  %1952 = vmatprep.subr.bf16.mxu0 %v7230_v15  ;;  %2262 = vmatprep.subr.bf16.mxu1 %v7123_v47  ;;  %v7268_v47 = vld [vmem:[#allocation8 + $0x1f0] ss:$8 sps:$4 sm:$0xff]   ;;  %v7380_v35 = vld [vmem:[#allocation8 + $0x294] ss:$8 sps:$4 sm:$0xff]   ;;  %v7389_v58 = vld [vmem:[#allocation8 + $0x2a0] ss:$8 sps:$4 sm:$0xff]  }
 0x275   :  { %v1095_v38 = vmax.f32 %v7242_v52, 0.0  ;;  %v1096_v6 = vmax.f32 %v7245_v30, 0.0 }
 0x276   :  { %1953 = vmatpush1.bf16.msra.mxu0 %v7238_v22  ;;  %2263 = vmatpush1.bf16.msra.mxu1 %v7126_v55  ;;  %v7273_v55 = vld [vmem:[#allocation8 + $0x204] ss:$8 sps:$4 sm:$0xff]  }
 0x277   :  { %v5550_v5 = vpack.i.bf16 %v1096_v6, %v1095_v38  ;;  %1954 = vmatprep.subr.bf16.mxu0 %v7248_v3  ;;  %2264 = vmatprep.subr.bf16.mxu1 %v7131_v59 }
 0x279   :  { %5551 = vrot.lane.b32.xlu0 %v5550_v5, %s5910_s1  ;;  %5556 = vrot.lane.b32.xlu1 %v5550_v5, %s5912_s25 }
 0x27a   :  { %1955 = vmatpush1.bf16.msra.mxu0 %v7254_v45  ;;  %2265 = vmatpush1.bf16.msra.mxu1 %v7138_v60 }
 0x27b   :  { %1956 = vmatprep.subr.bf16.mxu0 %v7262_v39  ;;  %2266 = vmatprep.subr.bf16.mxu1 %v7141_v1 }
 0x27d   :  { %v7275_v19 = vpop.permute.xlu0 %5536  ;;  %v7277_v63 = vpop.permute.xlu1 %5541  ;;  %5561 = vrot.lane.b32.xlu0 %v5550_v5, %s5913_s26 }
 0x27e   :  { %v5539_v59 = vunpack.i.h.bf16 %v7275_v19  ;;  %v5538_v42 = vunpack.i.l.bf16 %v7275_v19  ;;  %v5544_v28 = vunpack.i.h.bf16 %v7277_v63  ;;  %v5543_v60 = vunpack.i.l.bf16 %v7277_v63  ;;  %1957 = vmatpush1.bf16.msra.mxu0 %v7268_v47  ;;  %2267 = vmatpush1.bf16.msra.mxu1 %v7148_v54 }
 0x27f   :  { %2268 = vmatprep.subr.bf16.mxu1 %v7155_v40  ;;  %1967 = vmatprep.subr.bf16.mxu0 %v7273_v55 }
 0x280   :  { %v1256_v1 = vsel %vm240_vm9, %v5509_v2, %v5538_v42  ;;  %v1257_v57 = vsel %vm240_vm9, %v5538_v42, %v5539_v59  ;;  %v1290_v54 = vsel %vm464_vm11, %v5519_v53, %v5543_v60  ;;  %v1291_v49 = vsel %vm464_vm11, %v5543_v60, %v5544_v28 }
 0x281   :  { %v1269_v36 = vmax.f32 %v1092_v10, %v1256_v1  ;;  %v1270_v41 = vmax.f32 %v1093_v16, %v1257_v57  ;;  %v7298_v43 = vpop.permute.xlu0 %5546 }
 0x282   :  { %v5549_v2 = vunpack.i.h.bf16 %v7298_v43  ;;  %v5548_v40 = vunpack.i.l.bf16 %v7298_v43  ;;  %2269 = vmatpush1.bf16.msra.mxu1 %v7162_v24  ;;  %v7318_v24 = vld [vmem:[#allocation8 + $0x200] ss:$8 sps:$4 sm:$0xff]   ;;  %v5771_v43 = vld [vmem:[#allocation8 + $0x310] ss:$8 sps:$4 sm:$0xff]  }
 0x283   :  { %v1303_v14 = vmax.f32 %v1269_v36, %v1290_v54  ;;  %v1304_v10 = vmax.f32 %v1270_v41, %v1291_v49  ;;  %2270 = vmatprep.subr.bf16.mxu1 %v7165_v23  ;;  %v7333_v23 = vld [vmem:[#allocation8 + $0x220] ss:$8 sps:$4 sm:$0xff]   ;;  %v2078_v18 = vpop.permute.xlu1 %2077  ;;  %v7412_v41 = vld [vmem:[#allocation8 + $0x2d4] ss:$8 sps:$4 sm:$0xff]  }
 0x284   :  { %v1324_v12 = vsel %vm576_vm12, %v5529_v13, %v5548_v40  ;;  %v1325_v16 = vsel %vm576_vm12, %v5548_v40, %v5549_v2  ;;  %v7328_v13 = vld [vmem:[#allocation8 + $0x224] ss:$8 sps:$4 sm:$0xff]   ;;  %v2098_v5 = vmax.f32 %v7048_v26, %v2078_v18  ;;  %v7407_v26 = vld [vmem:[#allocation8 + $0x2c0] ss:$8 sps:$4 sm:$0xff]   ;;  %v7415_v40 = vld [vmem:[#allocation8 + $0x2d0] ss:$8 sps:$4 sm:$0xff]  }
 0x285   :  { %v1337_v9 = vmax.f32 %v1303_v14, %v1324_v12  ;;  %v1338_v53 = vmax.f32 %v1304_v10, %v1325_v16  ;;  %v7419_v14 = vld [vmem:[#allocation8 + $0x2e4] ss:$8 sps:$4 sm:$0xff]   ;;  %v7426_v10 = vld [vmem:[#allocation8 + $0x2f4] ss:$8 sps:$4 sm:$0xff]   ;;  %v7429_v12 = vld [vmem:[#allocation8 + $0x2f0] ss:$8 sps:$4 sm:$0xff]  }
 0x286   :  { %2271 = vmatpush1.bf16.msra.mxu1 %v7178_v27  ;;  %v7336_v27 = vld [vmem:[#allocation8 + $0x234] ss:$8 sps:$4 sm:$0xff]   ;;  %v7432_v16 = vld [vmem:[#allocation8 + $0x304] ss:$8 sps:$4 sm:$0xff]  }
 0x287   :  { %v1345_v37 = vpack.c.bf16 %v1338_v53, %v1338_v53  ;;  %v1344_v56 = vpack.c.bf16 %v1337_v9, %v1337_v9  ;;  %2272 = vmatprep.subr.bf16.mxu1 %v7182_v50  ;;  %v7341_v50 = vld [vmem:[#allocation8 + $0x230] ss:$8 sps:$4 sm:$0xff]  }
 0x289   :  { %1958 = vmatprep.mubr.bf16.mxu0 %v1345_v37 }
 0x28a   :  { %1959 = vmatmul.mubr.bf16.vlgmr.msra.gmra.mrb[0].mxu0 %v1344_v56  ;;  %2273 = vmatpush1.bf16.msra.mxu1 %v7194_v34  ;;  %v7344_v34 = vld [vmem:[#allocation8 + $0x244] ss:$8 sps:$4 sm:$0xff]  }
 0x28b   :  { %1968 = vmatpush1.bf16.msra.mxu0 %v7318_v24  ;;  %2274 = vmatprep.subr.bf16.mxu1 %v7198_v31  ;;  %v7349_v31 = vld [vmem:[#allocation8 + $0x240] ss:$8 sps:$4 sm:$0xff]  }
 0x28c   :  { %1969 = vmatprep.subr.bf16.mxu0 %v7320_v7 }
 0x28e   :  { %2275 = vmatpush1.bf16.msra.mxu1 %v7210_v61  ;;  %v7352_v61 = vld [vmem:[#allocation8 + $0x254] ss:$8 sps:$4 sm:$0xff]  }
 0x28f   :  { %1970 = vmatpush1.bf16.msra.mxu0 %v7325_v8  ;;  %2276 = vmatprep.subr.bf16.mxu1 %v7214_v20  ;;  %v7357_v20 = vld [vmem:[#allocation8 + $0x250] ss:$8 sps:$4 sm:$0xff]  }
 0x290   :  { %1971 = vmatprep.subr.bf16.mxu0 %v7328_v13 }
 0x292   :  { %2277 = vmatpush1.bf16.msra.mxu1 %v7226_v0  ;;  %v7364_v0 = vld [vmem:[#allocation8 + $0x260] ss:$8 sps:$4 sm:$0xff]  }
 0x293   :  { %1972 = vmatpush1.bf16.msra.mxu0 %v7333_v23  ;;  %2278 = vmatprep.subr.bf16.mxu1 %v7230_v15  ;;  %v7377_v15 = vld [vmem:[#allocation8 + $0x280] ss:$8 sps:$4 sm:$0xff]  }
 0x294   :  { %1973 = vmatprep.subr.bf16.mxu0 %v7336_v27 }
 0x296   :  { %2279 = vmatpush1.bf16.msra.mxu1 %v7238_v22  ;;  %v2084_v22 = vsel %vm240_vm9, %v7128_v51, %v2078_v18  ;;  %v7404_v51 = vld [vmem:[#allocation8 + $0x2c4] ss:$8 sps:$4 sm:$0xff]  }
 0x297   :  { %1974 = vmatpush1.bf16.msra.mxu0 %v7341_v50  ;;  %2280 = vmatprep.subr.bf16.mxu1 %v7248_v3  ;;  %v7394_v3 = vld [vmem:[#allocation8 + $0x2b4] ss:$8 sps:$4 sm:$0xff]  }
 0x298   :  { %1975 = vmatprep.subr.bf16.mxu0 %v7344_v34 }
 0x29a   :  { %2281 = vmatpush1.bf16.msra.mxu1 %v7254_v45  ;;  %v2112_v45 = vpop.permute.xlu0 %2111 }
 0x29b   :  { %1976 = vmatpush1.bf16.msra.mxu0 %v7349_v31  ;;  %2282 = vmatprep.subr.bf16.mxu1 %v7262_v39  ;;  %v2097_v39 = vmax.f32 %v6885_v62, %v2084_v22  ;;  %v2118_v42 = vsel %vm464_vm11, %v7133_v46, %v2112_v45  ;;  %v2132_v60 = vmax.f32 %v2098_v5, %v2112_v45  ;;  %v5773_v22 = vld [vmem:[#allocation8 + $0x314] ss:$8 sps:$4 sm:$0xff]   ;;  %v1225_v45 = vld [vmem:[#allocation8 + $0x340] sm:$0xff] }
 0x29c   :  { %1977 = vmatprep.subr.bf16.mxu0 %v7352_v61 }
 0x29d   :  { %v2131_v1 = vmax.f32 %v2097_v39, %v2118_v42  ;;  %v5114_v39 = vcombine.high %v1225_v45, %v1225_v45 }
 0x29e   :  { %2283 = vmatpush1.bf16.msra.mxu1 %v7268_v47 }
 0x29f   :  { %1978 = vmatpush1.bf16.msra.mxu0 %v7357_v20  ;;  %2293 = vmatprep.subr.bf16.mxu1 %v7273_v55  ;;  %v7399_v55 = vld [vmem:[#allocation8 + $0x2b0] ss:$8 sps:$4 sm:$0xff]  }
 0x2a0   :  { %1979 = vmatprep.subr.bf16.mxu0 %v7360_v17 }
 0x2a3   :  { %1980 = vmatpush1.bf16.msra.mxu0 %v7364_v0 }
 0x2a4   :  { %1981 = vmatprep.subr.bf16.mxu0 %v7368_v4 }
 0x2a7   :  { %1982 = vmatpush1.bf16.msra.mxu0 %v7371_v11 }
 0x2a8   :  { %1983 = vmatprep.subr.bf16.mxu0 %v7374_v48 }
 0x2ab   :  { %1984 = vmatpush1.bf16.msra.mxu0 %v7377_v15 }
 0x2ac   :  { %1985 = vmatprep.subr.bf16.mxu0 %v7380_v35 }
 0x2af   :  { %1986 = vmatpush1.bf16.msra.mxu0 %v7383_v33 }
 0x2b0   :  { %1987 = vmatprep.subr.bf16.mxu0 %v7386_v44 }
 0x2b3   :  { %v2188_v47 = vpop.permute.xlu1 %2187  ;;  %1988 = vmatpush1.bf16.msra.mxu0 %v7389_v58 }
 0x2b4   :  { %1989 = vmatprep.subr.bf16.mxu0 %v7394_v3  ;;  %v2198_v37 = vsel %vm2195_vm2, %v7152_v32, %v2188_v47 }
 0x2b7   :  { %v2146_v57 = vpop.permute.xlu1 %2145  ;;  %1990 = vmatpush1.bf16.msra.mxu0 %v7399_v55 }
 0x2b8   :  { %v2152_v62 = vsel %vm576_vm12, %v7150_v21, %v2146_v57  ;;  %v2166_v36 = vmax.f32 %v2132_v60, %v2146_v57  ;;  %1991 = vmatprep.subr.bf16.mxu0 %v7404_v51  ;;  %v7423_v21 = vld [vmem:[#allocation8 + $0x2e0] ss:$8 sps:$4 sm:$0xff]  }
 0x2b9   :  { %v2165_v46 = vmax.f32 %v2131_v1, %v2152_v62 }
 0x2ba   :  { %v2173_v54 = vpack.c.bf16 %v2166_v36, %v2166_v36  ;;  %v7511_v36 = vld [vmem:[%s8126_s3] sm:$0xff]  }
 0x2bb   :  { %v2172_v49 = vpack.c.bf16 %v2165_v46, %v2165_v46  ;;  %1992 = vmatpush1.bf16.msra.mxu0 %v7407_v26  ;;  %v2387_v46 = vld [vmem:[#allocation4 + $0x20] sm:$0xff] }
 0x2bc   :  { %2193 = vrot.lane.b32.xlu0 %v2173_v54, %s5918_s10  ;;  %1993 = vmatprep.subr.bf16.mxu0 %v7412_v41 }
 0x2bd   :  { %2191 = vrot.lane.b32.xlu1 %v2172_v49, %s5918_s10 }
 0x2bf   :  { %1994 = vmatpush1.bf16.msra.mxu0 %v7415_v40 }
 0x2c0   :  { %1995 = vmatprep.subr.bf16.mxu0 %v7419_v14 }
 0x2c3   :  { %1996 = vmatpush1.bf16.msra.mxu0 %v7423_v21 }
 0x2c4   :  { %1997 = vmatprep.subr.bf16.mxu0 %v7426_v10 }
 0x2c7   :  { %1998 = vmatpush1.bf16.msra.mxu0 %v7429_v12 }
 0x2c8   :  { %2008 = vmatprep.subr.bf16.mxu0 %v7432_v16 }
 0x2d3   :  { %v7436_v9 = vpop.permute.xlu0 %2189 }
 0x2d4   :  { %v2199_v53 = vsel %vm2195_vm2, %v2188_v47, %v7436_v9 }
 0x2d5   :  { %2284 = vmatprep.mubr.bf16.mxu1 %v2199_v53 }
 0x2d6   :  { %2285 = vmatmul.mubr.bf16.vlgmr.msra.gmra.mrb[0].mxu1 %v2198_v37 }
 0x2d7   :  { %2294 = vmatpush1.bf16.msra.mxu1 %v7318_v24 }
 0x2d8   :  { %2295 = vmatprep.subr.bf16.mxu1 %v7320_v7 }
 0x2db   :  { %2296 = vmatpush1.bf16.msra.mxu1 %v7325_v8 }
 0x2dc   :  { %2297 = vmatprep.subr.bf16.mxu1 %v7328_v13 }
 0x2df   :  { %2298 = vmatpush1.bf16.msra.mxu1 %v7333_v23 }
 0x2e0   :  { %2299 = vmatprep.subr.bf16.mxu1 %v7336_v27 }
 0x2e3   :  { %2300 = vmatpush1.bf16.msra.mxu1 %v7341_v50 }
 0x2e4   :  { %2301 = vmatprep.subr.bf16.mxu1 %v7344_v34 }
 0x2e7   :  { %2302 = vmatpush1.bf16.msra.mxu1 %v7349_v31 }
 0x2e8   :  { %2303 = vmatprep.subr.bf16.mxu1 %v7352_v61 }
 0x2eb   :  { %v5552_v32 = vpop.permute.xlu0 %5551  ;;  %v5557_v56 = vpop.permute.xlu1 %5556  ;;  %2304 = vmatpush1.bf16.msra.mxu1 %v7357_v20 }
 0x2ec   :  { %v5554_v24 = vunpack.i.h.bf16 %v5552_v32  ;;  %v5553_v7 = vunpack.i.l.bf16 %v5552_v32  ;;  %v5559_v8 = vunpack.i.h.bf16 %v5557_v56  ;;  %v5558_v13 = vunpack.i.l.bf16 %v5557_v56  ;;  %2305 = vmatprep.subr.bf16.mxu1 %v7360_v17 }
 0x2ee   :  { %v1258_v23 = vsel %vm240_vm9, %v5539_v59, %v5553_v7  ;;  %v1259_v27 = vsel %vm240_vm9, %v5553_v7, %v5554_v24  ;;  %v1292_v61 = vsel %vm464_vm11, %v5544_v28, %v5558_v13  ;;  %v1293_v20 = vsel %vm464_vm11, %v5558_v13, %v5559_v8  ;;  %v5768_v28 = vld [vmem:[#allocation8 + $0x300] ss:$8 sps:$4 sm:$0xff]  }
 0x2ef   :  { %v1271_v50 = vmax.f32 %v1094_v29, %v1258_v23  ;;  %v1272_v34 = vmax.f32 %v1095_v38, %v1259_v27  ;;  %v5562_v31 = vpop.permute.xlu0 %5561  ;;  %2306 = vmatpush1.bf16.msra.mxu1 %v7364_v0 }
 0x2f0   :  { %v5564_v19 = vunpack.i.h.bf16 %v5562_v31  ;;  %v5563_v17 = vunpack.i.l.bf16 %v5562_v31  ;;  %2307 = vmatprep.subr.bf16.mxu1 %v7368_v4  ;;  %v5776_v4 = vld [vmem:[#allocation8 + $0x324] ss:$8 sps:$4 sm:$0xff]  }
 0x2f1   :  { %v1305_v59 = vmax.f32 %v1271_v50, %v1292_v61  ;;  %v1306_v18 = vmax.f32 %v1272_v34, %v1293_v20 }
 0x2f2   :  { %v1326_v25 = vsel %vm576_vm12, %v5549_v2, %v5563_v17  ;;  %v1327_v29 = vsel %vm576_vm12, %v5563_v17, %v5564_v19  ;;  %v8218_v2 = vmov 0   ;;  %vm3810_vm12 = vcmask 393216  }
 0x2f3   :  { %v1339_v52 = vmax.f32 %v1305_v59, %v1326_v25  ;;  %v1340_v38 = vmax.f32 %v1306_v18, %v1327_v29  ;;  %2308 = vmatpush1.bf16.msra.mxu1 %v7371_v11  ;;  %v5774_v11 = vld [vmem:[#allocation8 + $0x320] ss:$8 sps:$4 sm:$0xff]  }
 0x2f4   :  { %2309 = vmatprep.subr.bf16.mxu1 %v7374_v48  ;;  %v1273_v48 = vmax.f32 %v1096_v6, %v5554_v24  ;;  %v5784_v59 = vld [vmem:[%s8126_s3 + $0x10] sm:$0xff]  }
 0x2f5   :  { %v1347_v63 = vpack.c.bf16 %v1340_v38, %v1340_v38  ;;  %v1346_v0 = vpack.c.bf16 %v1339_v52, %v1339_v52 }
 0x2f6   :  { %v1307_v5 = vmax.f32 %v1273_v48, %v5559_v8  ;;  %v5783_v8 = vld [vmem:[%s8126_s3 + $0x8] sm:$0xff]   ;;  %v5785_v48 = vld [vmem:[%s8126_s3 + $0x18] sm:$0xff]  }
 0x2f7   :  { %1999 = vmatprep.mubr.bf16.mxu0 %v1347_v63  ;;  %2310 = vmatpush1.bf16.msra.mxu1 %v7377_v15  ;;  %v5779_v15 = vld [vmem:[#allocation8 + $0x334] ss:$8 sps:$4 sm:$0xff]  }
 0x2f8   :  { %2000 = vmatmul.mubr.bf16.vlgmr.msra.gmra.mrb[0].mxu0 %v1346_v0  ;;  %2311 = vmatprep.subr.bf16.mxu1 %v7380_v35  ;;  %v5777_v35 = vld [vmem:[#allocation8 + $0x330] ss:$8 sps:$4 sm:$0xff]   ;;  %v1341_v30 = vmax.f32 %v1307_v5, %v5564_v19 }
 0x2f9   :  { %2009 = vmatpush1.bf16.msra.mxu0 %v5768_v28  ;;  %2040 = vmatprep.mubr.bf16.mxu0 %v8218_v2 }
 0x2fa   :  { %2010 = vmatprep.subr.bf16.mxu0 %v5773_v22 }
 0x2fb   :  { %2312 = vmatpush1.bf16.msra.mxu1 %v7383_v33  ;;  %v5113_v33 = vcombine.low %v1225_v45, %v1225_v45 }
 0x2fc   :  { %2313 = vmatprep.subr.bf16.mxu1 %v7386_v44  ;;  %v1348_v44 = vpack.c.bf16 %v1341_v30, %v1341_v30 }
 0x2fd   :  { %2011 = vmatpush1.bf16.msra.mxu0 %v5771_v43  ;;  %v1880_v6 = vsel %vm1878_vm3, %v5113_v33, 0 }
 0x2fe   :  { %2012 = vmatprep.subr.bf16.mxu0 %v5776_v4 }
 0x2ff   :  { %2314 = vmatpush1.bf16.msra.mxu1 %v7389_v58 }
 0x300   :  { %2315 = vmatprep.subr.bf16.mxu1 %v7394_v3 }
 0x301   :  { %2013 = vmatpush1.bf16.msra.mxu0 %v5774_v11 }
 0x302   :  { %2014 = vmatprep.subr.bf16.mxu0 %v5779_v15 }
 0x303   :  { %2316 = vmatpush1.bf16.msra.mxu1 %v7399_v55 }
 0x304   :  { %2317 = vmatprep.subr.bf16.mxu1 %v7404_v51 }
 0x305   :  { %2015 = vmatpush1.bf16.msra.mxu0 %v5777_v35 }
 0x306   :  { %5115 = vmatprep.subr.msk.bf16.mxu0 %vm1878_vm3, %v5114_v39 }
 0x307   :  { %2318 = vmatpush1.bf16.msra.mxu1 %v7407_v26 }
 0x308   :  { %2319 = vmatprep.subr.bf16.mxu1 %v7412_v41 }
 0x309   :  { %2017 = vmatpush1.bf16.msra.mxu0 %v1880_v6 }
 0x30b   :  { %2320 = vmatpush1.bf16.msra.mxu1 %v7415_v40 }
 0x30c   :  { %5116 = vmatmul.mubr.msk.bf16.vlgmr.msra.gmra.mrb[0].mxu0 %vm1874_vm4, %v1348_v44  ;;  %2321 = vmatprep.subr.bf16.mxu1 %v7419_v14 }
 0x30d   :  { %2570 = vmatprep.mubr.bf16.mxu0 %v8218_v2 }
 0x30f   :  { %2322 = vmatpush1.bf16.msra.mxu1 %v7423_v21 }
 0x310   :  { %2323 = vmatprep.subr.bf16.mxu1 %v7426_v10  ;;  %v2388_v10 = vpack.c.bf16 %v2387_v46, %v2387_v46 }
 0x313   :  { %2324 = vmatpush1.bf16.msra.mxu1 %v7429_v12  ;;  %v3548_v12 = vld [vmem:[%s8127_s4] sm:$0xff] }
 0x314   :  { %2334 = vmatprep.subr.bf16.mxu1 %v7432_v16  ;;  %v3549_v16 = vld [vmem:[%s8127_s4 + $0x8] sm:$0xff] }
 0x32e   :  { %v2194_v58 = vpop.permute.xlu0 %2193 }
 0x32f   :  { %v2192_v3 = vpop.permute.xlu1 %2191 }
 0x330   :  { %v2200_v47 = vsel %vm2195_vm2, %v7436_v9, %v2192_v3  ;;  %v2201_v55 = vsel %vm2195_vm2, %v2192_v3, %v2194_v58  ;;  %vm3887_vm2 = vcmask 1041320  }
 0x331   :  { %2325 = vmatprep.mubr.bf16.mxu1 %v2201_v55  ;;  %v5786_v55 = vld [vmem:[%s8126_s3 + $0x20] sm:$0xff]  }
 0x332   :  { %2326 = vmatmul.mubr.bf16.vlgmr.msra.gmra.mrb[0].mxu1 %v2200_v47 }
 0x333   :  { %2335 = vmatpush1.bf16.msra.mxu1 %v5768_v28  ;;  %2366 = vmatprep.mubr.bf16.mxu1 %v8218_v2 }
 0x334   :  { %2336 = vmatprep.subr.bf16.mxu1 %v5773_v22 }
 0x337   :  { %2337 = vmatpush1.bf16.msra.mxu1 %v5771_v43 }
 0x338   :  { %2338 = vmatprep.subr.bf16.mxu1 %v5776_v4 }
 0x33b   :  { %2339 = vmatpush1.bf16.msra.mxu1 %v5774_v11 }
 0x33c   :  { %2340 = vmatprep.subr.bf16.mxu1 %v5779_v15 }
 0x33f   :  { %2341 = vmatpush1.bf16.msra.mxu1 %v5777_v35 }
 0x340   :  { %5117 = vmatprep.subr.msk.bf16.mxu1 %vm1878_vm3, %v5114_v39 }
 0x343   :  { %2343 = vmatpush1.bf16.msra.mxu1 %v1880_v6 }
 0x346   :  { %5118 = vmatmul.mubr.msk.bf16.vlgmr.msra.gmra.mrb[0].mxu1 %vm1874_vm4, %v2194_v58  ;;  %vm3884_vm4 = vcmask 957440  }
 0x347   :  { %2464 = vmatprep.mubr.bf16.mxu1 %v8218_v2 }
 0x3df   :  { %v2042_v42 = vpop.f32.mrb[0].mxu0 }
 0x3e0   :  { %v2381_v51 = vpack.c.bf16 %v2042_v42, %v2042_v42  ;;  %v2044_v60 = vpop.f32.mrb[1].mxu0 }
 0x3e1   :  { %v2382_v1 = vpack.c.bf16 %v2044_v60, %v2044_v60  ;;  %v2046_v57 = vpop.f32.mrb[2].mxu0 }
 0x3e2   :  { %v2047_v26 = vpop.f32.mrb[3].mxu0  ;;  %2402 = vrot.lane.b32.xlu1 %v2381_v51, %s5910_s1  ;;  %v2527_v62 = vsel %vm1878_vm3, %v2381_v51, 0 }
 0x3e3   :  { %2404 = vrot.lane.b32.xlu0 %v2382_v1, %s5910_s1  ;;  %5127 = vmatprep.subr.msk.bf16.mxu0 %vm1878_vm3, %v2382_v1 }
 0x3e4   :  { %2539 = vmatpush1.bf16.msra.mxu0 %v2527_v62 }
 0x3e7   :  { %5128 = vmatmul.mubr.msk.bf16.vlgmr.msra.gmra.mrb[4].mxu0 %vm1119_vm1, %v7511_v36 }
 0x3e8   :  { %2694 = vmatprep.mubr.bf16.mxu0 %v8218_v2 }
 0x419   :  { %v2368_v41 = vpop.f32.mrb[0].mxu1 }
 0x41a   :  { %v7516_v54 = vpack.c.bf16 %v2368_v41, %v2368_v41  ;;  %v2370_v49 = vpop.f32.mrb[1].mxu1 }
 0x41b   :  { %v7518_v40 = vpack.c.bf16 %v2370_v49, %v2370_v49  ;;  %v2372_v14 = vpop.f32.mrb[2].mxu1 }
 0x41c   :  { %v2373_v21 = vpop.f32.mrb[3].mxu1  ;;  %2406 = vrot.lane.b32.xlu1 %v7516_v54, %s5910_s1  ;;  %v2533_v29 = vsel %vm1878_vm3, %v7516_v54, 0 }
 0x41d   :  { %2408 = vrot.lane.b32.xlu0 %v7518_v40, %s5910_s1 }
 0x420   :  { %2410 = vrot.lane.b32.xlu1 %v2388_v10, %s5910_s1 }
 0x421   :  { %2632 = vrot.lane.b32.xlu0 %v2381_v51, %s5911_s2 }
 0x424   :  { %2634 = vrot.lane.b32.xlu1 %v2382_v1, %s5911_s2 }
 0x425   :  { %2636 = vrot.lane.b32.xlu0 %v7516_v54, %s5911_s2 }
 0x428   :  { %2764 = vrot.lane.b32.xlu1 %v2381_v51, %s5919_s13 }
 0x429   :  { %2640 = vrot.lane.b32.xlu0 %v2388_v10, %s5911_s2 }
 0x42c   :  { %2638 = vrot.lane.b32.xlu1 %v7518_v40, %s5911_s2 }
 0x42d   :  { %2766 = vrot.lane.b32.xlu0 %v2382_v1, %s5919_s13 }
 0x430   :  { %2768 = vrot.lane.b32.xlu1 %v7516_v54, %s5919_s13 }
 0x431   :  { %2896 = vrot.lane.b32.xlu0 %v2381_v51, %s5920_s14 }
 0x434   :  { %2772 = vrot.lane.b32.xlu1 %v2388_v10, %s5919_s13 }
 0x435   :  { %2770 = vrot.lane.b32.xlu0 %v7518_v40, %s5919_s13 }
 0x438   :  { %2898 = vrot.lane.b32.xlu1 %v2382_v1, %s5920_s14 }
 0x439   :  { %2900 = vrot.lane.b32.xlu0 %v7516_v54, %s5920_s14 }
 0x43c   :  { %3028 = vrot.lane.b32.xlu1 %v2381_v51, %s5921_s15 }
 0x43d   :  { %2904 = vrot.lane.b32.xlu0 %v2388_v10, %s5920_s14 }
 0x440   :  { %2902 = vrot.lane.b32.xlu1 %v7518_v40, %s5920_s14 }
 0x441   :  { %3030 = vrot.lane.b32.xlu0 %v2382_v1, %s5921_s15 }
 0x444   :  { %3032 = vrot.lane.b32.xlu1 %v7516_v54, %s5921_s15 }
 0x445   :  { %3160 = vrot.lane.b32.xlu0 %v2381_v51, %s5914_s27 }
 0x448   :  { %3036 = vrot.lane.b32.xlu1 %v2388_v10, %s5921_s15 }
 0x449   :  { %3034 = vrot.lane.b32.xlu0 %v7518_v40, %s5921_s15 }
 0x44c   :  { %3162 = vrot.lane.b32.xlu1 %v2382_v1, %s5914_s27 }
 0x44d   :  { %3164 = vrot.lane.b32.xlu0 %v7516_v54, %s5914_s27 }
 0x450   :  { %3292 = vrot.lane.b32.xlu1 %v2381_v51, %s5922_s16 }
 0x451   :  { %3168 = vrot.lane.b32.xlu0 %v2388_v10, %s5914_s27 }
 0x454   :  { %3166 = vrot.lane.b32.xlu1 %v7518_v40, %s5914_s27  ;;  %v2403_v9 = vpop.permute.xlu1 %2402  ;;  %s5929_s27 = smov 106  }
 0x455   :  { %3294 = vrot.lane.b32.xlu0 %v2382_v1, %s5922_s16  ;;  %v2405_v53 = vpop.permute.xlu0 %2404 }
 0x456   :  { %v2413_v37 = vsel %vm240_vm9, %v2403_v9, %v2405_v53 }
 0x457   :  { %v2421_v7 = vsel %vm1878_vm3, %v2413_v37, 0 }
 0x458   :  { %3296 = vrot.lane.b32.xlu1 %v7516_v54, %s5922_s16 }
 0x459   :  { %3424 = vrot.lane.b32.xlu0 %v2381_v51, %s5923_s17 }
 0x45c   :  { %3300 = vrot.lane.b32.xlu1 %v2388_v10, %s5922_s16 }
 0x45d   :  { %3298 = vrot.lane.b32.xlu0 %v7518_v40, %s5922_s16 }
 0x460   :  { %3426 = vrot.lane.b32.xlu1 %v2382_v1, %s5923_s17 }
 0x461   :  { %3428 = vrot.lane.b32.xlu0 %v7516_v54, %s5923_s17 }
 0x464   :  { %3430 = vrot.lane.b32.xlu1 %v7518_v40, %s5923_s17 }
 0x465   :  { %3432 = vrot.lane.b32.xlu0 %v2388_v10, %s5923_s17 }
 0x468   :  { %3552 = vperm.xlu1 %5474, %v3548_v12  }
 0x469   :  { %3557 = vperm.xlu0 %5473, %v3549_v16  }
 0x48e   :  { %v2407_v32 = vpop.permute.xlu1 %2406 }
 0x48f   :  { %v2414_v56 = vsel %vm240_vm9, %v2405_v53, %v2407_v32  ;;  %v2409_v24 = vpop.permute.xlu0 %2408 }
 0x490   :  { %5122 = vmatprep.subr.msk.bf16.mxu1 %vm1878_vm3, %v2414_v56  ;;  %v2415_v13 = vsel %vm240_vm9, %v2407_v32, %v2409_v24 }
 0x491   :  { %2433 = vmatpush1.bf16.msra.mxu1 %v2421_v7  ;;  %v2427_v34 = vsel %vm1878_vm3, %v2415_v13, 0 }
 0x492   :  { %v2411_v23 = vpop.permute.xlu1 %2410 }
 0x493   :  { %v2416_v27 = vsel %vm240_vm9, %v2409_v24, %v2411_v23  ;;  %v2633_v50 = vpop.permute.xlu0 %2632 }
 0x494   :  { %5123 = vmatmul.mubr.msk.bf16.vlgmr.msra.gmra.mrb[4].mxu1 %vm1119_vm1, %v5783_v8  ;;  %5124 = vmatprep.subr.msk.bf16.mxu1 %vm1878_vm3, %v2416_v27 }
 0x495   :  { %2476 = vmatpush1.bf16.msra.mxu1 %v2427_v34  ;;  %2507 = vmatprep.mubr.bf16.mxu1 %v8218_v2 }
 0x496   :  { %v2635_v31 = vpop.permute.xlu1 %2634  ;;  %5129 = vmatprep.subr.msk.bf16.mxu1 %vm1878_vm3, %v7518_v40  ;;  %v5787_v40 = vld [vmem:[%s8126_s3 + $0x28] sm:$0xff]  }
 0x497   :  { %v2643_v61 = vsel %vm352_vm10, %v2633_v50, %v2635_v31  ;;  %v2637_v20 = vpop.permute.xlu0 %2636 }
 0x498   :  { %v2651_v19 = vsel %vm1878_vm3, %v2643_v61, 0  ;;  %v2644_v17 = vsel %vm352_vm10, %v2635_v31, %v2637_v20 }
 0x499   :  { %5134 = vmatprep.subr.msk.bf16.mxu0 %vm1878_vm3, %v2644_v17 }
 0x49a   :  { %v2765_v18 = vpop.permute.xlu1 %2764  ;;  %2663 = vmatpush1.bf16.msra.mxu0 %v2651_v19 }
 0x49b   :  { %v2641_v25 = vpop.permute.xlu0 %2640 }
 0x49c   :  { %5125 = vmatmul.mubr.msk.bf16.vlgmr.msra.gmra.mrb[8].mxu1 %vm1119_vm1, %v5783_v8  ;;  %v5788_v8 = vld [vmem:[%s8126_s3 + $0x30] sm:$0xff]  }
 0x49d   :  { %2582 = vmatpush1.bf16.msra.mxu1 %v2533_v29  ;;  %5135 = vmatmul.mubr.msk.bf16.vlgmr.msra.gmra.mrb[4].mxu0 %vm1119_vm1, %v5784_v59  ;;  %v5789_v29 = vld [vmem:[%s8126_s3 + $0x38] sm:$0xff]  }
 0x49e   :  { %v2639_v52 = vpop.permute.xlu1 %2638  ;;  %2613 = vmatprep.mubr.bf16.mxu1 %v8218_v2  ;;  %2826 = vmatprep.mubr.bf16.mxu0 %v8218_v2 }
 0x49f   :  { %v2646_v38 = vsel %vm352_vm10, %v2639_v52, %v2641_v25  ;;  %v2767_v63 = vpop.permute.xlu0 %2766  ;;  %v2645_v11 = vsel %vm352_vm10, %v2637_v20, %v2639_v52  ;;  %vm3434_vm10 = vcmask 769024  }
 0x4a0   :  { %5136 = vmatprep.subr.msk.bf16.mxu1 %vm1878_vm3, %v2646_v38  ;;  %v2775_v28 = vsel %vm2774_vm5, %v2765_v18, %v2767_v63  ;;  %v2657_v35 = vsel %vm1878_vm3, %v2645_v11, 0 }
 0x4a1   :  { %v2783_v4 = vsel %vm1878_vm3, %v2775_v28, 0 }
 0x4a2   :  { %v2769_v0 = vpop.permute.xlu1 %2768 }
 0x4a3   :  { %v2776_v22 = vsel %vm2774_vm5, %v2767_v63, %v2769_v0  ;;  %v2897_v43 = vpop.permute.xlu0 %2896 }
 0x4a4   :  { %5141 = vmatprep.subr.msk.bf16.mxu0 %vm1878_vm3, %v2776_v22  ;;  %v5790_v22 = vld [vmem:[%s8126_s3 + $0x40] sm:$0xff]  }
 0x4a5   :  { %2795 = vmatpush1.bf16.msra.mxu0 %v2783_v4 }
 0x4a6   :  { %v2773_v15 = vpop.permute.xlu1 %2772 }
 0x4a7   :  { %v2771_v45 = vpop.permute.xlu0 %2770 }
 0x4a8   :  { %v2778_v5 = vsel %vm2774_vm5, %v2771_v45, %v2773_v15  ;;  %5130 = vmatmul.mubr.msk.bf16.vlgmr.msra.gmra.mrb[8].mxu1 %vm1119_vm1, %v7511_v36  ;;  %v2777_v47 = vsel %vm2774_vm5, %v2769_v0, %v2771_v45 }
 0x4a9   :  { %2706 = vmatpush1.bf16.msra.mxu1 %v2657_v35  ;;  %5142 = vmatmul.mubr.msk.bf16.vlgmr.msra.gmra.mrb[4].mxu0 %vm1119_vm1, %v5785_v48  ;;  %v2789_v1 = vsel %vm1878_vm3, %v2777_v47, 0  ;;  %v5791_v35 = vld [vmem:[%s8129_s6] sm:$0xff]   ;;  %v5796_v47 = vld [vmem:[%s8129_s6 + $0x28] sm:$0xff]  }
 0x4aa   :  { %5143 = vmatprep.subr.msk.bf16.mxu1 %vm1878_vm3, %v2778_v5  ;;  %v2899_v39 = vpop.permute.xlu1 %2898  ;;  %2737 = vmatprep.mubr.bf16.mxu1 %v8218_v2  ;;  %v5792_v5 = vld [vmem:[%s8129_s6 + $0x8] sm:$0xff]  }
 0x4ab   :  { %v2907_v33 = vsel %vm2906_vm6, %v2897_v43, %v2899_v39  ;;  %v2901_v30 = vpop.permute.xlu0 %2900  ;;  %2958 = vmatprep.mubr.bf16.mxu0 %v8218_v2 }
 0x4ac   :  { %v2915_v6 = vsel %vm1878_vm3, %v2907_v33, 0  ;;  %v2908_v44 = vsel %vm2906_vm6, %v2899_v39, %v2901_v30  ;;  %v5793_v33 = vld [vmem:[%s8129_s6 + $0x10] sm:$0xff]  }
 0x4ad   :  { %5148 = vmatprep.subr.msk.bf16.mxu0 %vm1878_vm3, %v2908_v44 }
 0x4ae   :  { %v3029_v58 = vpop.permute.xlu1 %3028  ;;  %2927 = vmatpush1.bf16.msra.mxu0 %v2915_v6 }
 0x4af   :  { %v2905_v3 = vpop.permute.xlu0 %2904 }
 0x4b2   :  { %v2903_v42 = vpop.permute.xlu1 %2902 }
 0x4b3   :  { %v2910_v51 = vsel %vm2906_vm6, %v2903_v42, %v2905_v3  ;;  %v3031_v60 = vpop.permute.xlu0 %3030  ;;  %v2909_v49 = vsel %vm2906_vm6, %v2901_v30, %v2903_v42  ;;  %v5795_v3 = vld [vmem:[%s8129_s6 + $0x20] sm:$0xff]   ;;  %v5798_v42 = vld [vmem:[%s8129_s6 + $0x38] sm:$0xff]  }
 0x4b4   :  { %5137 = vmatmul.mubr.msk.bf16.vlgmr.msra.gmra.mrb[8].mxu1 %vm1119_vm1, %v5784_v59  ;;  %v3039_v57 = vsel %vm3038_vm7, %v3029_v58, %v3031_v60  ;;  %v2921_v12 = vsel %vm1878_vm3, %v2909_v49, 0  ;;  %v5794_v58 = vld [vmem:[%s8129_s6 + $0x18] sm:$0xff]  }
 0x4b5   :  { %2838 = vmatpush1.bf16.msra.mxu1 %v2789_v1  ;;  %5149 = vmatmul.mubr.msk.bf16.vlgmr.msra.gmra.mrb[4].mxu0 %vm1119_vm1, %v5786_v55  ;;  %v3047_v41 = vsel %vm1878_vm3, %v3039_v57, 0 }
 0x4b6   :  { %5150 = vmatprep.subr.msk.bf16.mxu1 %vm1878_vm3, %v2910_v51  ;;  %v3033_v26 = vpop.permute.xlu1 %3032  ;;  %2869 = vmatprep.mubr.bf16.mxu1 %v8218_v2  ;;  %v5799_v51 = vld [vmem:[%s8129_s6 + $0x40] sm:$0xff]  }
 0x4b7   :  { %v3040_v62 = vsel %vm3038_vm7, %v3031_v60, %v3033_v26  ;;  %v3161_v36 = vpop.permute.xlu0 %3160  ;;  %3090 = vmatprep.mubr.bf16.mxu0 %v8218_v2  ;;  %v5800_v60 = vld [vmem:[%s8129_s6 + $0x48] sm:$0xff]  }
 0x4b8   :  { %5155 = vmatprep.subr.msk.bf16.mxu0 %vm1878_vm3, %v3040_v62 }
 0x4b9   :  { %3059 = vmatpush1.bf16.msra.mxu0 %v3047_v41 }
 0x4ba   :  { %v3037_v46 = vpop.permute.xlu1 %3036 }
 0x4bb   :  { %v3035_v54 = vpop.permute.xlu0 %3034 }
 0x4bc   :  { %v3042_v53 = vsel %vm3038_vm7, %v3035_v54, %v3037_v46  ;;  %v3041_v7 = vsel %vm3038_vm7, %v3033_v26, %v3035_v54  ;;  %v5801_v46 = vld [vmem:[%s8129_s6 + $0x50] sm:$0xff]   ;;  %vm3920_vm7 = vcmask 1041080  }
 0x4bd   :  { %v3053_v34 = vsel %vm1878_vm3, %v3041_v7, 0 }
 0x4be   :  { %v3163_v14 = vpop.permute.xlu1 %3162 }
 0x4bf   :  { %v3171_v21 = vsel %vm688_vm13, %v3161_v36, %v3163_v14  ;;  %v3165_v10 = vpop.permute.xlu0 %3164 }
 0x4c0   :  { %v3179_v16 = vsel %vm1878_vm3, %v3171_v21, 0  ;;  %v3172_v9 = vsel %vm688_vm13, %v3163_v14, %v3165_v10  ;;  %5144 = vmatmul.mubr.msk.bf16.vlgmr.msra.gmra.mrb[8].mxu1 %vm1119_vm1, %v5785_v48 }
 0x4c1   :  { %2970 = vmatpush1.bf16.msra.mxu1 %v2921_v12  ;;  %5156 = vmatmul.mubr.msk.bf16.vlgmr.msra.gmra.mrb[4].mxu0 %vm1119_vm1, %v5787_v40 }
 0x4c2   :  { %5157 = vmatprep.subr.msk.bf16.mxu1 %vm1878_vm3, %v3042_v53  ;;  %5162 = vmatprep.subr.msk.bf16.mxu0 %vm1878_vm3, %v3172_v9  ;;  %v3293_v37 = vpop.permute.xlu1 %3292 }
 0x4c3   :  { %3191 = vmatpush1.bf16.msra.mxu0 %v3179_v16  ;;  %v3169_v32 = vpop.permute.xlu0 %3168  ;;  %3001 = vmatprep.mubr.bf16.mxu1 %v8218_v2 }
 0x4c4   :  { %3222 = vmatprep.mubr.bf16.mxu0 %v8218_v2 }
 0x4c6   :  { %v3167_v56 = vpop.permute.xlu1 %3166 }
 0x4c7   :  { %v3295_v24 = vpop.permute.xlu0 %3294  ;;  %v3174_v31 = vsel %vm688_vm13, %v3167_v56, %v3169_v32  ;;  %v3173_v25 = vsel %vm688_vm13, %v3165_v10, %v3167_v56 }
 0x4c8   :  { %v3303_v13 = vsel %vm3302_vm8, %v3293_v37, %v3295_v24  ;;  %v3185_v38 = vsel %vm1878_vm3, %v3173_v25, 0  ;;  %v5802_v37 = vld [vmem:[%s8129_s6 + $0x58] sm:$0xff]  }
 0x4c9   :  { %v3311_v61 = vsel %vm1878_vm3, %v3303_v13, 0  ;;  %v5804_v13 = vld [vmem:[%s8129_s6 + $0x68] sm:$0xff]  }
 0x4ca   :  { %v3297_v23 = vpop.permute.xlu1 %3296 }
 0x4cb   :  { %v3304_v27 = vsel %vm3302_vm8, %v3295_v24, %v3297_v23  ;;  %v3425_v50 = vpop.permute.xlu0 %3424 }
 0x4cc   :  { %5151 = vmatmul.mubr.msk.bf16.vlgmr.msra.gmra.mrb[8].mxu1 %vm1119_vm1, %v5786_v55  ;;  %5169 = vmatprep.subr.msk.bf16.mxu0 %vm1878_vm3, %v3304_v27  ;;  %v5797_v55 = vld [vmem:[%s8129_s6 + $0x30] sm:$0xff]  }
 0x4cd   :  { %3102 = vmatpush1.bf16.msra.mxu1 %v3053_v34  ;;  %5163 = vmatmul.mubr.msk.bf16.vlgmr.msra.gmra.mrb[4].mxu0 %vm1119_vm1, %v5788_v8 }
 0x4ce   :  { %5164 = vmatprep.subr.msk.bf16.mxu1 %vm1878_vm3, %v3174_v31  ;;  %3323 = vmatpush1.bf16.msra.mxu0 %v3311_v61  ;;  %v3301_v20 = vpop.permute.xlu1 %3300 }
 0x4cf   :  { %v3299_v19 = vpop.permute.xlu0 %3298  ;;  %3133 = vmatprep.mubr.bf16.mxu1 %v8218_v2  ;;  %3354 = vmatprep.mubr.bf16.mxu0 %v8218_v2 }
 0x4d0   :  { %v3306_v63 = vsel %vm3302_vm8, %v3299_v19, %v3301_v20  ;;  %v3305_v0 = vsel %vm3302_vm8, %v3297_v23, %v3299_v19 }
 0x4d1   :  { %v3317_v11 = vsel %vm1878_vm3, %v3305_v0, 0 }
 0x4d2   :  { %v3427_v17 = vpop.permute.xlu1 %3426 }
 0x4d3   :  { %v3429_v59 = vpop.permute.xlu0 %3428  ;;  %v3435_v52 = vsel %vm3434_vm10, %v3425_v50, %v3427_v17 }
 0x4d4   :  { %v3436_v18 = vsel %vm3434_vm10, %v3427_v17, %v3429_v59  ;;  %v3443_v28 = vsel %vm1878_vm3, %v3435_v52, 0 }
 0x4d5   :  { %5176 = vmatprep.subr.msk.bf16.mxu0 %vm1878_vm3, %v3436_v18 }
 0x4d6   :  { %v3431_v43 = vpop.permute.xlu1 %3430 }
 0x4d7   :  { %v3433_v4 = vpop.permute.xlu0 %3432  ;;  %v3437_v15 = vsel %vm3434_vm10, %v3429_v59, %v3431_v43 }
 0x4d8   :  { %5158 = vmatmul.mubr.msk.bf16.vlgmr.msra.gmra.mrb[8].mxu1 %vm1119_vm1, %v5787_v40  ;;  %v3438_v48 = vsel %vm3434_vm10, %v3431_v43, %v3433_v4  ;;  %v3449_v45 = vsel %vm1878_vm3, %v3437_v15, 0  ;;  %vm3921_vm10 = vcmask 59394  }
 0x4d9   :  { %3234 = vmatpush1.bf16.msra.mxu1 %v3185_v38  ;;  %5170 = vmatmul.mubr.msk.bf16.vlgmr.msra.gmra.mrb[4].mxu0 %vm1119_vm1, %v5789_v29 }
 0x4da   :  { %5171 = vmatprep.subr.msk.bf16.mxu1 %vm1878_vm3, %v3306_v63  ;;  %3455 = vmatpush1.bf16.msra.mxu0 %v3443_v28 }
 0x4db   :  { %3265 = vmatprep.mubr.bf16.mxu1 %v8218_v2  ;;  %3486 = vmatprep.mubr.bf16.mxu0 %v8218_v2 }
 0x4dc   :  { %3765 = vmatprep.subr.bf16.mxu0 %v8218_v2 }
 0x4e4   :  { %5165 = vmatmul.mubr.msk.bf16.vlgmr.msra.gmra.mrb[8].mxu1 %vm1119_vm1, %v5788_v8  ;;  %v5803_v8 = vld [vmem:[%s8129_s6 + $0x60] sm:$0xff]   ;;  %s5924_s6 = smov 87  }
 0x4e5   :  { %3366 = vmatpush1.bf16.msra.mxu1 %v3317_v11  ;;  %5177 = vmatmul.mubr.msk.bf16.vlgmr.msra.gmra.mrb[4].mxu0 %vm1119_vm1, %v5790_v22 }
 0x4e6   :  { %5178 = vmatprep.subr.msk.bf16.mxu1 %vm1878_vm3, %v3438_v48  ;;  %3397 = vmatprep.mubr.bf16.mxu1 %v8218_v2  ;;  %vm3888_vm3 = vcmask 305154  }
 0x4e7   :  { %3766 = vmatpush1.bf16.msra.mxu0 %v5791_v35  ;;  %v3553_v62 = vpop.permute.xlu1 %3552 }
 0x4e8   :  { %3767 = vmatprep.subr.bf16.mxu0 %v8218_v2  ;;  %v3558_v14 = vpop.permute.xlu0 %3557 }
 0x4eb   :  { %3768 = vmatpush1.bf16.msra.mxu0 %v5792_v5 }
 0x4ec   :  { %3769 = vmatprep.subr.bf16.mxu0 %v8218_v2 }
 0x4ef   :  { %3770 = vmatpush1.bf16.msra.mxu0 %v5793_v33 }
 0x4f0   :  { %5172 = vmatmul.mubr.msk.bf16.vlgmr.msra.gmra.mrb[8].mxu1 %vm1119_vm1, %v5789_v29  ;;  %3771 = vmatprep.subr.bf16.mxu0 %v8218_v2 }
 0x4f1   :  { %3498 = vmatpush1.bf16.msra.mxu1 %v3449_v45  ;;  %3529 = vmatprep.mubr.bf16.mxu1 %v8218_v2 }
 0x4f2   :  { %4118 = vmatprep.subr.bf16.mxu1 %v8218_v2 }
 0x4f3   :  { %3772 = vmatpush1.bf16.msra.mxu0 %v5794_v58 }
 0x4f4   :  { %3773 = vmatprep.subr.bf16.mxu0 %v8218_v2 }
 0x4f7   :  { %3774 = vmatpush1.bf16.msra.mxu0 %v5795_v3 }
 0x4f8   :  { %3775 = vmatprep.subr.bf16.mxu0 %v8218_v2 }
 0x4fb   :  { %3776 = vmatpush1.bf16.msra.mxu0 %v5796_v47 }
 0x4fc   :  { %5179 = vmatmul.mubr.msk.bf16.vlgmr.msra.gmra.mrb[8].mxu1 %vm1119_vm1, %v5790_v22  ;;  %3777 = vmatprep.subr.bf16.mxu0 %v8218_v2  ;;  %vm3856_vm1 = vcmask 549016  }
 0x4fd   :  { %4119 = vmatpush1.bf16.msra.mxu1 %v5791_v35 }
 0x4fe   :  { %4120 = vmatprep.subr.bf16.mxu1 %v8218_v2 }
 0x4ff   :  { %3778 = vmatpush1.bf16.msra.mxu0 %v5797_v55 }
 0x500   :  { %3779 = vmatprep.subr.bf16.mxu0 %v8218_v2 }
 0x501   :  { %4121 = vmatpush1.bf16.msra.mxu1 %v5792_v5 }
 0x502   :  { %4122 = vmatprep.subr.bf16.mxu1 %v8218_v2 }
 0x503   :  { %3780 = vmatpush1.bf16.msra.mxu0 %v5798_v42 }
 0x504   :  { %3781 = vmatprep.subr.bf16.mxu0 %v8218_v2 }
 0x505   :  { %4123 = vmatpush1.bf16.msra.mxu1 %v5793_v33 }
 0x506   :  { %4124 = vmatprep.subr.bf16.mxu1 %v8218_v2 }
 0x507   :  { %3782 = vmatpush1.bf16.msra.mxu0 %v5799_v51 }
 0x508   :  { %3783 = vmatprep.subr.bf16.mxu0 %v8218_v2 }
 0x509   :  { %4125 = vmatpush1.bf16.msra.mxu1 %v5794_v58 }
 0x50a   :  { %4126 = vmatprep.subr.bf16.mxu1 %v8218_v2 }
 0x50b   :  { %3784 = vmatpush1.bf16.msra.mxu0 %v5800_v60 }
 0x50c   :  { %3785 = vmatprep.subr.bf16.mxu0 %v8218_v2 }
 0x50d   :  { %4127 = vmatpush1.bf16.msra.mxu1 %v5795_v3 }
 0x50e   :  { %4128 = vmatprep.subr.bf16.mxu1 %v8218_v2 }
 0x50f   :  { %3786 = vmatpush1.bf16.msra.mxu0 %v5801_v46 }
 0x510   :  { %3787 = vmatprep.subr.bf16.mxu0 %v8218_v2 }
 0x511   :  { %4129 = vmatpush1.bf16.msra.mxu1 %v5796_v47 }
 0x512   :  { %4130 = vmatprep.subr.bf16.mxu1 %v8218_v2 }
 0x513   :  { %3788 = vmatpush1.bf16.msra.mxu0 %v5802_v37 }
 0x514   :  { %3789 = vmatprep.subr.bf16.mxu0 %v8218_v2 }
 0x515   :  { %4131 = vmatpush1.bf16.msra.mxu1 %v5797_v55 }
 0x516   :  { %4132 = vmatprep.subr.bf16.mxu1 %v8218_v2 }
 0x517   :  { %3790 = vmatpush1.bf16.msra.mxu0 %v5803_v8 }
 0x518   :  { %3791 = vmatprep.subr.bf16.mxu0 %v8218_v2 }
 0x519   :  { %4133 = vmatpush1.bf16.msra.mxu1 %v5798_v42 }
 0x51a   :  { %4134 = vmatprep.subr.bf16.mxu1 %v8218_v2 }
 0x51b   :  { %3792 = vmatpush1.bf16.msra.mxu0 %v5804_v13 }
 0x51d   :  { %4135 = vmatpush1.bf16.msra.mxu1 %v5799_v51 }
 0x51e   :  { %4136 = vmatprep.subr.bf16.mxu1 %v8218_v2 }
 0x521   :  { %4137 = vmatpush1.bf16.msra.mxu1 %v5800_v60 }
 0x522   :  { %4138 = vmatprep.subr.bf16.mxu1 %v8218_v2 }
 0x525   :  { %4139 = vmatpush1.bf16.msra.mxu1 %v5801_v46 }
 0x526   :  { %4140 = vmatprep.subr.bf16.mxu1 %v8218_v2 }
 0x529   :  { %4141 = vmatpush1.bf16.msra.mxu1 %v5802_v37 }
 0x52a   :  { %4142 = vmatprep.subr.bf16.mxu1 %v8218_v2 }
 0x52d   :  { %4143 = vmatpush1.bf16.msra.mxu1 %v5803_v8 }
 0x52e   :  { %4144 = vmatprep.subr.bf16.mxu1 %v8218_v2 }
 0x531   :  { %4145 = vmatpush1.bf16.msra.mxu1 %v5804_v13 }
 0x567   :  { %v2466_v39 = vpop.f32.mrb[4].mxu1 }
 0x568   :  { %v2468_v30 = vpop.f32.mrb[5].mxu1 }
 0x569   :  { %v2470_v6 = vpop.f32.mrb[6].mxu1 }
 0x56a   :  { %v2472_v44 = vpop.f32.mrb[7].mxu1 }
 0x5b8   :  { %v3488_v1 = vpop.f32.mrb[4].mxu0 }
 0x5b9   :  { %v5351_v57 = vadd.f32 %v3488_v1, %v2466_v39  ;;  %v3490_v26 = vpop.f32.mrb[5].mxu0 }
 0x5ba   :  { %v5352_v36 = vadd.f32 %v3490_v26, %v2468_v30  ;;  %v3492_v41 = vpop.f32.mrb[6].mxu0 }
 0x5bb   :  { %v7750_v54 = vadd.f32 %v5351_v57, %v3553_v62  ;;  %v5353_v49 = vadd.f32 %v3492_v41, %v2470_v6  ;;  %v3494_v40 = vpop.f32.mrb[7].mxu0 }
 0x5bc   :  { %v7752_v21 = vadd.f32 %v5352_v36, %v3553_v62  ;;  %v5354_v10 = vadd.f32 %v3494_v40, %v2472_v44 }
 0x5bd   :  { %v3568_v12 = vmax.f32 %v7750_v54, 0.0  ;;  %v7755_v16 = vadd.f32 %v5353_v49, %v3558_v14 }
 0x5be   :  { %v3569_v9 = vmax.f32 %v7752_v21, 0.0  ;;  %v3565_v53 = vadd.f32 %v5354_v10, %v3558_v14 }
 0x5bf   :  { %v3572_v32 = vmax.f32 %v7755_v16, 0.0 }
 0x5c0   :  { %v3573_v56 = vmax.f32 %v3565_v53, 0.0  ;;  %v5565_v24 = vpack.i.bf16 %v3569_v9, %v3568_v12 }
 0x5c2   :  { %5566 = vrot.lane.b32.xlu1 %v5565_v24, %s5910_s1  ;;  %v5580_v7 = vpack.i.bf16 %v3573_v56, %v3572_v32 }
 0x5c4   :  { %5581 = vrot.lane.b32.xlu0 %v5580_v7, %s5910_s1 }
 0x5c6   :  { %5571 = vrot.lane.b32.xlu1 %v5565_v24, %s5919_s13 }
 0x5c8   :  { %5586 = vrot.lane.b32.xlu0 %v5580_v7, %s5919_s13 }
 0x5ca   :  { %5576 = vrot.lane.b32.xlu1 %v5565_v24, %s5920_s14 }
 0x5cc   :  { %5591 = vrot.lane.b32.xlu0 %v5580_v7, %s5920_s14 }
 0x5cf   :  { %v3531_v23 = vpop.f32.mrb[8].mxu1 }
 0x5d0   :  { %v7784_v27 = vadd.f32 %v3553_v62, %v3531_v23  ;;  %v3533_v50 = vpop.f32.mrb[9].mxu1 }
 0x5d1   :  { %v7786_v34 = vadd.f32 %v3553_v62, %v3533_v50  ;;  %v3535_v31 = vpop.f32.mrb[10].mxu1 }
 0x5d2   :  { %v3570_v61 = vmax.f32 %v7784_v27, 0.0  ;;  %v7789_v20 = vadd.f32 %v3558_v14, %v3535_v31  ;;  %v3537_v2 = vpop.f32.mrb[11].mxu1 }
 0x5d3   :  { %v3571_v19 = vmax.f32 %v7786_v34, 0.0  ;;  %v7792_v17 = vadd.f32 %v3558_v14, %v3537_v2 }
 0x5d4   :  { %v3574_v59 = vmax.f32 %v7789_v20, 0.0 }
 0x5d5   :  { %v3575_v18 = vmax.f32 %v7792_v17, 0.0  ;;  %v5595_v25 = vpack.i.bf16 %v3571_v19, %v3570_v61 }
 0x5d7   :  { %5596 = vrot.lane.b32.xlu1 %v5595_v25, %s5910_s1  ;;  %v5610_v29 = vpack.i.bf16 %v3575_v18, %v3574_v59 }
 0x5d9   :  { %5611 = vrot.lane.b32.xlu0 %v5610_v29, %s5910_s1  ;;  %s5925_s1 = smov 49  }
 0x5db   :  { %5601 = vrot.lane.b32.xlu1 %v5595_v25, %s5919_s13 }
 0x5dd   :  { %5616 = vrot.lane.b32.xlu0 %v5610_v29, %s5919_s13  ;;  %s5926_s13 = smov 117  }
 0x5df   :  { %5606 = vrot.lane.b32.xlu1 %v5595_v25, %s5920_s14 }
 0x5e1   :  { %5621 = vrot.lane.b32.xlu0 %v5610_v29, %s5920_s14  ;;  %s5927_s14 = smov 19  }
 0x634   :  { %v5567_v52 = vpop.permute.xlu1 %5566 }
 0x635   :  { %v5569_v63 = vunpack.i.h.bf16 %v5567_v52  ;;  %v5568_v28 = vunpack.i.l.bf16 %v5567_v52 }
 0x636   :  { %v5582_v38 = vpop.permute.xlu0 %5581 }
 0x637   :  { %v5584_v0 = vunpack.i.h.bf16 %v5582_v38  ;;  %v5583_v22 = vunpack.i.l.bf16 %v5582_v38  ;;  %v3628_v15 = vsel %vm240_vm9, %v5568_v28, %v5569_v63  ;;  %v3635_v39 = vmax.f32 %v3569_v9, %v5569_v63 }
 0x638   :  { %v5572_v43 = vpop.permute.xlu1 %5571  ;;  %v3634_v47 = vmax.f32 %v3568_v12, %v3628_v15 }
 0x639   :  { %v5574_v4 = vunpack.i.h.bf16 %v5572_v43  ;;  %v5573_v11 = vunpack.i.l.bf16 %v5572_v43  ;;  %v3629_v45 = vsel %vm240_vm9, %v5583_v22, %v5584_v0  ;;  %v3637_v33 = vmax.f32 %v3573_v56, %v5584_v0 }
 0x63a   :  { %v5587_v48 = vpop.permute.xlu0 %5586  ;;  %v3636_v55 = vmax.f32 %v3572_v32, %v3629_v45 }
 0x63b   :  { %v5589_v35 = vunpack.i.h.bf16 %v5587_v48  ;;  %v5588_v5 = vunpack.i.l.bf16 %v5587_v48  ;;  %v3647_v6 = vsel %vm2774_vm5, %v5573_v11, %v5574_v4  ;;  %v3654_v42 = vmax.f32 %v3635_v39, %v5574_v4 }
 0x63c   :  { %v5577_v30 = vpop.permute.xlu1 %5576  ;;  %v3653_v62 = vmax.f32 %v3634_v47, %v3647_v6 }
 0x63d   :  { %v3648_v44 = vsel %vm2774_vm5, %v5588_v5, %v5589_v35  ;;  %v5579_v58 = vunpack.i.h.bf16 %v5577_v30  ;;  %v5578_v3 = vunpack.i.l.bf16 %v5577_v30  ;;  %v3656_v60 = vmax.f32 %v3637_v33, %v5589_v35 }
 0x63e   :  { %v5592_v51 = vpop.permute.xlu0 %5591  ;;  %v3655_v36 = vmax.f32 %v3636_v55, %v3648_v44 }
 0x63f   :  { %v3666_v1 = vsel %vm2906_vm6, %v5578_v3, %v5579_v58  ;;  %v5594_v57 = vunpack.i.h.bf16 %v5592_v51  ;;  %v5593_v26 = vunpack.i.l.bf16 %v5592_v51  ;;  %v3673_v41 = vmax.f32 %v3654_v42, %v5579_v58 }
 0x640   :  { %v3672_v40 = vmax.f32 %v3653_v62, %v3666_v1 }
 0x641   :  { %v3667_v46 = vsel %vm2906_vm6, %v5593_v26, %v5594_v57  ;;  %v3675_v49 = vmax.f32 %v3656_v60, %v5594_v57 }
 0x642   :  { %v3674_v14 = vmax.f32 %v3655_v36, %v3667_v46 }
 0x643   :  { %v3677_v54 = vpack.c.bf16 %v3675_v49, %v3673_v41 }
 0x644   :  { %v3676_v21 = vpack.c.bf16 %v3674_v14, %v3672_v40 }
 0x645   :  { %5194 = vmatprep.mubr.msk.bf16.mxu0 %vm688_vm13, %v3677_v54 }
 0x646   :  { %3798 = vmatmul.mubr.bf16.vlgmr.msra.gmra.mrb[8].mxu0 %v3676_v21 }
 0x649   :  { %v5597_v10 = vpop.permute.xlu1 %5596 }
 0x64a   :  { %v5599_v16 = vunpack.i.h.bf16 %v5597_v10  ;;  %v5598_v9 = vunpack.i.l.bf16 %v5597_v10 }
 0x64b   :  { %v5612_v12 = vpop.permute.xlu0 %5611 }
 0x64c   :  { %v5614_v53 = vunpack.i.h.bf16 %v5612_v12  ;;  %v5613_v37 = vunpack.i.l.bf16 %v5612_v12  ;;  %v4067_v8 = vsel %vm240_vm9, %v5598_v9, %v5599_v16  ;;  %v4074_v31 = vmax.f32 %v3571_v19, %v5599_v16  ;;  %v5805_v12 = vld [vmem:[%s8130_s7 + $0x40] sm:$0xff]  }
 0x64d   :  { %v5602_v32 = vpop.permute.xlu1 %5601  ;;  %v4073_v28 = vmax.f32 %v3570_v61, %v4067_v8  ;;  %5277 = vmatprep.subr.bf16.mxu0 %v5805_v12  ;;  %v5806_v16 = vld [vmem:[%s8130_s7] sm:$0xff]  }
 0x64e   :  { %v5604_v56 = vunpack.i.h.bf16 %v5602_v32  ;;  %v5603_v24 = vunpack.i.l.bf16 %v5602_v32  ;;  %v4068_v13 = vsel %vm240_vm9, %v5613_v37, %v5614_v53  ;;  %v4076_v2 = vmax.f32 %v3575_v18, %v5614_v53  ;;  %v5807_v9 = vld [vmem:[%s8130_s7 + $0xc0] sm:$0xff]   ;;  %5278 = vmatpush3.bf16.msra.mxu0 %v5806_v16  ;;  %v5808_v32 = vld [vmem:[%s8130_s7 + $0x48] sm:$0xff]  }
 0x64f   :  { %v5617_v7 = vpop.permute.xlu0 %5616  ;;  %v4075_v0 = vmax.f32 %v3574_v59, %v4068_v13  ;;  %vm3806_vm9 = vcmask 400384   ;;  %5299 = vmatprep.subr.bf16.mxu1 %v5807_v9  ;;  %5279 = vmatprep.subr.bf16.mxu0 %v5808_v32  ;;  %v5812_v13 = vld [vmem:[%s8130_s7 + $0x50] sm:$0xff]  }
 0x650   :  { %v5619_v23 = vunpack.i.h.bf16 %v5617_v7  ;;  %v5618_v50 = vunpack.i.l.bf16 %v5617_v7  ;;  %v4085_v29 = vsel %vm2774_vm5, %v5603_v24, %v5604_v56  ;;  %v4092_v22 = vmax.f32 %v4074_v31, %v5604_v56  ;;  %v5809_v56 = vld [vmem:[%s8130_s7 + $0x80] sm:$0xff]   ;;  %v5810_v24 = vld [vmem:[%s8130_s7 + $0x8] sm:$0xff]   ;;  %v5815_v31 = vld [vmem:[%s8130_s7 + $0xd0] sm:$0xff]  }
 0x651   :  { %v5607_v25 = vpop.permute.xlu1 %5606  ;;  %v4091_v4 = vmax.f32 %v4073_v28, %v4085_v29  ;;  %v5811_v7 = vld [vmem:[%s8130_s7 + $0xc8] sm:$0xff]   ;;  %v5817_v29 = vld [vmem:[%s8130_s7 + $0x90] sm:$0xff]  }
 0x652   :  { %v4086_v52 = vsel %vm2774_vm5, %v5618_v50, %v5619_v23  ;;  %v5609_v38 = vunpack.i.h.bf16 %v5607_v25  ;;  %v5608_v63 = vunpack.i.l.bf16 %v5607_v25  ;;  %v4094_v34 = vmax.f32 %v4076_v2, %v5619_v23  ;;  %5280 = vmatpush3.bf16.msra.mxu0 %v5810_v24  ;;  %v5813_v23 = vld [vmem:[%s8130_s7 + $0x88] sm:$0xff]   ;;  %v5814_v50 = vld [vmem:[%s8130_s7 + $0x10] sm:$0xff]   ;;  %v5816_v25 = vld [vmem:[%s8130_s7 + $0x58] sm:$0xff]  }
 0x653   :  { %v5622_v43 = vpop.permute.xlu0 %5621  ;;  %v4093_v11 = vmax.f32 %v4075_v0, %v4086_v52  ;;  %5281 = vmatprep.subr.bf16.mxu0 %v5812_v13  ;;  %v5818_v52 = vld [vmem:[%s8130_s7 + $0x18] sm:$0xff]   ;;  %vm3870_vm5 = vcmask 950816  }
 0x654   :  { %v4103_v19 = vsel %vm2906_vm6, %v5608_v63, %v5609_v38  ;;  %v5624_v17 = vunpack.i.h.bf16 %v5622_v43  ;;  %v5623_v18 = vunpack.i.l.bf16 %v5622_v43  ;;  %v4110_v48 = vmax.f32 %v4092_v22, %v5609_v38  ;;  %v5819_v38 = vld [vmem:[%s8130_s7 + $0xd8] sm:$0xff]   ;;  %v5820_v63 = vld [vmem:[%s8130_s7 + $0x60] sm:$0xff]  }
 0x655   :  { %v4109_v35 = vmax.f32 %v4091_v4, %v4103_v19  ;;  %v5821_v0 = vld [vmem:[%s8130_s7 + $0x98] sm:$0xff]   ;;  %v5822_v22 = vld [vmem:[%s8130_s7 + $0x20] sm:$0xff]   ;;  %v5824_v19 = vld [vmem:[%s8130_s7 + $0x68] sm:$0xff]  }
 0x656   :  { %v4104_v15 = vsel %vm2906_vm6, %v5623_v18, %v5624_v17  ;;  %v4112_v45 = vmax.f32 %v4094_v34, %v5624_v17  ;;  %5282 = vmatpush3.bf16.msra.mxu0 %v5814_v50  ;;  %v5823_v43 = vld [vmem:[%s8130_s7 + $0xe0] sm:$0xff]   ;;  %v5826_v18 = vld [vmem:[%s8130_s7 + $0x28] sm:$0xff]   ;;  %vm7989_vm6 = vmor %vm3888_vm3, %vm3887_vm2  ;;  %vm3967_vm2 = vcmask 1041232   ;;  %vm3968_vm3 = vcmask 215042  }
 0x657   :  { %v4111_v5 = vmax.f32 %v4093_v11, %v4104_v15  ;;  %5283 = vmatprep.subr.bf16.mxu0 %v5816_v25  ;;  %v5825_v17 = vld [vmem:[%s8130_s7 + $0xa0] sm:$0xff]   ;;  %v5827_v4 = vld [vmem:[%s8130_s7 + $0xe8] sm:$0xff]   ;;  %v5828_v11 = vld [vmem:[%s8130_s7 + $0x70] sm:$0xff]  }
 0x658   :  { %v4114_v27 = vpack.c.bf16 %v4112_v45, %v4110_v48  ;;  %v5829_v15 = vld [vmem:[%s8130_s7 + $0xa8] sm:$0xff]   ;;  %v5830_v45 = vld [vmem:[%s8130_s7 + $0x30] sm:$0xff]  }
 0x659   :  { %v4113_v61 = vpack.c.bf16 %v4111_v5, %v4109_v35  ;;  %v5831_v35 = vld [vmem:[%s8130_s7 + $0xf0] sm:$0xff]  }
 0x65a   :  { %5210 = vmatprep.mubr.msk.bf16.mxu1 %vm688_vm13, %v4114_v27  ;;  %5284 = vmatpush3.bf16.msra.mxu0 %v5818_v52  ;;  %v5832_v27 = vld [vmem:[%s8130_s7 + $0x78] sm:$0xff]   ;;  %vm3840_vm13 = vcmask 1041168  }
 0x65b   :  { %4151 = vmatmul.mubr.bf16.vlgmr.msra.gmra.mrb[12].mxu1 %v4113_v61  ;;  %5285 = vmatprep.subr.bf16.mxu0 %v5820_v63  ;;  %vm7980_vm0 = vmor %vm3841_vm14, %vm3840_vm13  ;;  %vm3936_vm14 = vcmask 458816  }
 0x65c   :  { %5300 = vmatpush3.bf16.msra.mxu1 %v5809_v56  ;;  %vm7997_vm13 = vmor %vm3921_vm10, %vm3920_vm7  ;;  %vm3964_vm7 = vcmask 867328  }
 0x65d   :  { %5301 = vmatprep.subr.bf16.mxu1 %v5811_v7 }
 0x65e   :  { %5286 = vmatpush3.bf16.msra.mxu0 %v5822_v22 }
 0x65f   :  { %5287 = vmatprep.subr.bf16.mxu0 %v5824_v19 }
 0x660   :  { %5302 = vmatpush3.bf16.msra.mxu1 %v5813_v23 }
 0x661   :  { %5303 = vmatprep.subr.bf16.mxu1 %v5815_v31 }
 0x662   :  { %5288 = vmatpush3.bf16.msra.mxu0 %v5826_v18  ;;  %v5935_v18 = vmov 1983009808  }
 0x663   :  { %5289 = vmatprep.subr.bf16.mxu0 %v5828_v11 }
 0x664   :  { %5304 = vmatpush3.bf16.msra.mxu1 %v5817_v29 }
 0x665   :  { %5305 = vmatprep.subr.bf16.mxu1 %v5819_v38 }
 0x666   :  { %5290 = vmatpush3.bf16.msra.mxu0 %v5830_v45 }
 0x667   :  { %5291 = vmatprep.subr.bf16.mxu0 %v5832_v27 }
 0x668   :  { %5306 = vmatpush3.bf16.msra.mxu1 %v5821_v0 }
 0x669   :  { %5307 = vmatprep.subr.bf16.mxu1 %v5823_v43 }
 0x66c   :  { %5308 = vmatpush3.bf16.msra.mxu1 %v5825_v17 }
 0x66d   :  { %5309 = vmatprep.subr.bf16.mxu1 %v5827_v4  ;;  %v4376_v4 = vunpack.c.l.s4 %v5935_v18 }
 0x66f   :  { %v4377_v45 = vunpack.c.0.s8 %v4376_v4 }
 0x670   :  { %5310 = vmatpush3.bf16.msra.mxu1 %v5829_v15 }
 0x671   :  { %5311 = vmatprep.subr.bf16.mxu1 %v5831_v35 }
 0x719   :  { %v3799_v20 = vpop.f32.mrb[8].mxu0 }
 0x71a   :  { %3807 = vst.msk [vmem:[#allocation6] sm:$0xff] %vm3806_vm9, %v3799_v20  ;;  %v3801_v59 = vpop.f32.mrb[9].mxu0  ;;  %v5833_v20 = vld [vmem:[%s8130_s7 + $0xb0] sm:$0xff]  }
 0x71b   :  { %v3802_v39 = vpop.f32.mrb[10].mxu0  ;;  %v5834_v59 = vld [vmem:[%s8130_s7 + $0x38] sm:$0xff]   ;;  %5312 = vmatpush3.bf16.msra.mxu1 %v5833_v20 }
 0x71c   :  { %3808 = vst.msk [vmem:[#allocation6 + $0x8] sm:$0xff] %vm3806_vm9, %v3802_v39  ;;  %v3804_v33 = vpop.f32.mrb[11].mxu0  ;;  %v5835_v39 = vld [vmem:[%s8130_s7 + $0xf8] sm:$0xff]   ;;  %5292 = vmatpush3.bf16.msra.mxu0 %v5834_v59 }
 0x71d   :  { %v5837_v33 = vld [vmem:[%s8130_s7 + $0x140] sm:$0xff]   ;;  %5313 = vmatprep.subr.bf16.mxu1 %v5835_v39 }
 0x71e   :  { %5321 = vmatprep.subr.bf16.mxu0 %v5837_v33  ;;  %v8232_v20 = vld [vmem:[#allocation14_spill] sm:$0xff] }
 0x71f   :  { %v4380_v59 = vsub.s32 %v4377_v45, %v8232_v20 }
 0x721   :  { %v3809_v30 = vld [vmem:[#allocation6] sm:$0x1]  ;;  %v5201_v6 = vld.sshfl [vmem:[#allocation6 + $0x7] sm:$0x1 pattern:$0x76325410] }
 0x722   :  { %3914 = vrot.lane.b32.xlu0 %v5201_v6, %s5924_s6  ;;  %v5196_v44 = vld.sshfl [vmem:[#allocation6 + $0x2] sm:$0x1 pattern:$0x76325410]  ;;  %3811 = vst.msk [vmem:[#allocation7] sm:$0x1] %vm3810_vm12, %v3809_v30 }
 0x723   :  { %3835 = vrot.lane.b32.xlu1 %v5196_v44, %s5912_s25  ;;  %v5195_v58 = vld.sshfl [vmem:[#allocation6 + $0x1] sm:$0x1 pattern:$0x76325410]  ;;  %v8219_v44 = vmov 0.0  }
 0x724   :  { %v5199_v3 = vld.sshfl [vmem:[#allocation6 + $0x5] sm:$0x1 pattern:$0x76325410] }
 0x725   :  { %v5197_v47 = vld.sshfl [vmem:[#allocation6 + $0x3] sm:$0x1 pattern:$0x76325410] }
 0x726   :  { %v5198_v55 = vld.sshfl [vmem:[#allocation6 + $0x4] sm:$0x1 pattern:$0x76325410] }
 0x727   :  { %3821 = vrot.lane.b32.xlu1 %v5195_v58, %s5925_s1  ;;  %v5200_v42 = vld.sshfl [vmem:[#allocation6 + $0x6] sm:$0x1 pattern:$0x76325410] }
 0x728   :  { %v7843_v51 = vld.sshfl [vmem:[#allocation6 + $0xc] sm:$0x1 pattern:$0x76325410]  ;;  %v5836_v30 = vld [vmem:[%s8130_s7 + $0xb8] sm:$0xff]  }
 0x729   :  { %v7845_v60 = vld.sshfl [vmem:[#allocation6 + $0xe] sm:$0x1 pattern:$0x76325410]  ;;  %5314 = vmatpush3.bf16.msra.mxu1 %v5836_v30 }
 0x72a   :  { %v7847_v1 = vld.sshfl [vmem:[#allocation6 + $0xf] sm:$0x1 pattern:$0x76325410]  ;;  %5345 = vmatprep.subr.bf16.mxu1 %v8219_v44 }
 0x72b   :  { %3881 = vrot.lane.b32.xlu1 %v5199_v3, %s5926_s13  ;;  %v5204_v26 = vld.sshfl [vmem:[#allocation6 + $0xa] sm:$0x1 pattern:$0x76325410] }
 0x72c   :  { %v5202_v62 = vld.sshfl [vmem:[#allocation6 + $0x8] sm:$0x1 pattern:$0x76325410] }
 0x72d   :  { %v5203_v36 = vld.sshfl [vmem:[#allocation6 + $0x9] sm:$0x1 pattern:$0x76325410] }
 0x72e   :  { %v4152_v57 = vpop.f32.mrb[12].mxu1  ;;  %v5207_v46 = vld.sshfl [vmem:[#allocation6 + $0xd] sm:$0x1 pattern:$0x76325410] }
 0x72f   :  { %3853 = vrot.lane.b32.xlu1 %v5197_v47, %s5927_s14  ;;  %v4154_v41 = vpop.f32.mrb[13].mxu1  ;;  %4159 = vst.msk [vmem:[#allocation6] sm:$0xff] %vm3806_vm9, %v4152_v57  ;;  %v7851_v40 = vld.sshfl [vmem:[#allocation6 + $0xb] sm:$0x1 pattern:$0x76325410] }
 0x730   :  { %v4155_v49 = vpop.f32.mrb[14].mxu1 }
 0x731   :  { %v4157_v14 = vpop.f32.mrb[15].mxu1  ;;  %4160 = vst.msk [vmem:[#allocation6 + $0x8] sm:$0xff] %vm3806_vm9, %v4155_v49  ;;  %vm3917_vm9 = vcmask 711680  }
 0x732   :  { %v5841_v14 = vld [vmem:[%s8130_s7 + $0x108] sm:$0xff]  }
 0x733   :  { %3867 = vrot.lane.b32.xlu1 %v5198_v55, %s5915_s28 }
 0x736   :  { %v5212_v54 = vld.sshfl [vmem:[#allocation6 + $0x2] sm:$0x1 pattern:$0x76325410]  ;;  %v4161_v21 = vld [vmem:[#allocation6] sm:$0x1] }
 0x737   :  { %3900 = vrot.lane.b32.xlu1 %v5200_v42, %s5928_s5  ;;  %4185 = vrot.lane.b32.xlu0 %v5212_v54, %s5912_s25  ;;  %4162 = vst.msk [vmem:[#allocation7 + $0x1] sm:$0x1] %vm3810_vm12, %v4161_v21  ;;  %v5211_v10 = vld.sshfl [vmem:[#allocation6 + $0x1] sm:$0x1 pattern:$0x76325410] }
 0x738   :  { %v5214_v53 = vld.sshfl [vmem:[#allocation6 + $0x4] sm:$0x1 pattern:$0x76325410]  ;;  %vm3903_vm12 = vcmask 704816  }
 0x739   :  { %v5215_v37 = vld.sshfl [vmem:[#allocation6 + $0x5] sm:$0x1 pattern:$0x76325410] }
 0x73a   :  { %v5213_v8 = vld.sshfl [vmem:[#allocation6 + $0x3] sm:$0x1 pattern:$0x76325410] }
 0x73b   :  { %3961 = vrot.lane.b32.xlu1 %v5204_v26, %s5929_s27  ;;  %4172 = vrot.lane.b32.xlu0 %v5211_v10, %s5925_s1  ;;  %v5217_v2 = vld.sshfl [vmem:[#allocation6 + $0x7] sm:$0x1 pattern:$0x76325410] }
 0x73c   :  { %v5216_v28 = vld.sshfl [vmem:[#allocation6 + $0x6] sm:$0x1 pattern:$0x76325410] }
 0x73d   :  { %v5220_v34 = vld.sshfl [vmem:[#allocation6 + $0xa] sm:$0x1 pattern:$0x76325410] }
 0x73e   :  { %v5218_v48 = vld.sshfl [vmem:[#allocation6 + $0x8] sm:$0x1 pattern:$0x76325410] }
 0x73f   :  { %4213 = vrot.lane.b32.xlu1 %v5214_v53, %s5915_s28  ;;  %4226 = vrot.lane.b32.xlu0 %v5215_v37, %s5926_s13  ;;  %v5222_v5 = vld.sshfl [vmem:[#allocation6 + $0xc] sm:$0x1 pattern:$0x76325410] }
 0x740   :  { %v5219_v61 = vld.sshfl [vmem:[#allocation6 + $0x9] sm:$0x1 pattern:$0x76325410] }
 0x741   :  { %v5223_v6 = vld.sshfl [vmem:[#allocation6 + $0xd] sm:$0x1 pattern:$0x76325410] }
 0x742   :  { %v5221_v58 = vld.sshfl [vmem:[#allocation6 + $0xb] sm:$0x1 pattern:$0x76325410] }
 0x743   :  { %3933 = vrot.lane.b32.xlu1 %v5202_v62, %s5906_s20  ;;  %4200 = vrot.lane.b32.xlu0 %v5213_v8, %s5927_s14  ;;  %v5225_v3 = vld.sshfl [vmem:[#allocation6 + $0xf] sm:$0x1 pattern:$0x76325410] }
 0x744   :  { %v5224_v47 = vld.sshfl [vmem:[#allocation6 + $0xe] sm:$0x1 pattern:$0x76325410] }
 0x747   :  { %3947 = vrot.lane.b32.xlu1 %v5203_v36, %s5930_s30  ;;  %4254 = vrot.lane.b32.xlu0 %v5217_v2, %s5924_s6  ;;  %s5931_s6 = smov 125  }
 0x74b   :  { %4008 = vrot.lane.b32.xlu1 %v5207_v46, %s5931_s6  ;;  %4241 = vrot.lane.b32.xlu0 %v5216_v28, %s5928_s5  ;;  %s5932_s5 = smov 27  }
 0x74f   :  { %3980 = vrot.lane.b32.xlu1 %v7851_v40, %s5932_s5  ;;  %4295 = vrot.lane.b32.xlu0 %v5220_v34, %s5929_s27  ;;  %s5933_s27 = smov 76  }
 0x753   :  { %3994 = vrot.lane.b32.xlu1 %v7843_v51, %s5933_s27  ;;  %4269 = vrot.lane.b32.xlu0 %v5218_v48, %s5906_s20 }
 0x757   :  { %4323 = vrot.lane.b32.xlu1 %v5222_v5, %s5933_s27  ;;  %4282 = vrot.lane.b32.xlu0 %v5219_v61, %s5930_s30  ;;  %s5934_s30 = smov 46  }
 0x75b   :  { %4027 = vrot.lane.b32.xlu1 %v7845_v60, %s5934_s30  ;;  %4041 = vrot.lane.b32.xlu0 %v7847_v1, %s5922_s16 }
 0x75f   :  { %4336 = vrot.lane.b32.xlu0 %v5223_v6, %s5931_s6 }
 0x763   :  { %4310 = vrot.lane.b32.xlu0 %v5221_v58, %s5932_s5 }
 0x767   :  { %4364 = vrot.lane.b32.xlu0 %v5225_v3, %s5922_s16 }
 0x76b   :  { %4351 = vrot.lane.b32.xlu0 %v5224_v47, %s5934_s30 }
 0x794   :  { %v3915_v36 = vpop.permute.xlu0 %3914 }
 0x795   :  { %v3836_v55 = vpop.permute.xlu1 %3835  ;;  %v3916_v49 = vrot.slane %v3915_v36, 6 }
 0x796   :  { %v3837_v42 = vrot.slane %v3836_v55, 6 }
 0x797   :  { %v3918_v10 = vsel %vm3917_vm9, %v3916_v49, %v3915_v36 }
 0x798   :  { %v3838_v1 = vsel %vm464_vm11, %v3837_v42, %v3836_v55 }
 0x799   :  { %v3822_v60 = vpop.permute.xlu1 %3821 }
 0x79a   :  { %3825 = vst.msk [vmem:[#allocation7] sm:$0x1] %vm3824_vm15, %v3822_v60 }
 0x79b   :  { %3843 = vst.msk [vmem:[#allocation7] sm:$0x5] %vm7980_vm0, %v3838_v1  ;;  %v5838_v1 = vld [vmem:[%s8130_s7 + $0x100] sm:$0xff]  }
 0x79d   :  { %v3882_v57 = vpop.permute.xlu1 %3881 }
 0x79e   :  { %v3883_v62 = vrot.slane %v3882_v57, 6 }
 0x7a0   :  { %v3885_v40 = vsel %vm3884_vm4, %v3883_v62, %v3882_v57  ;;  %v5840_v62 = vld [vmem:[%s8130_s7 + $0x148] sm:$0xff]  }
 0x7a1   :  { %v3854_v26 = vpop.permute.xlu1 %3853 }
 0x7a2   :  { %3857 = vst.msk [vmem:[#allocation7 + $0x2] sm:$0x1] %vm3856_vm1, %v3854_v26 }
 0x7a5   :  { %v3868_v46 = vpop.permute.xlu1 %3867 }
 0x7a6   :  { %3871 = vst.msk [vmem:[#allocation7 + $0x2] sm:$0x1] %vm3870_vm5, %v3868_v46  ;;  %v5848_v46 = vld [vmem:[%s8130_s7 + $0x180] sm:$0xff]  }
 0x7a7   :  { %3890 = vst.msk [vmem:[#allocation7 + $0x2] sm:$0x5] %vm7989_vm6, %v3885_v40 }
 0x7a9   :  { %v3901_v54 = vpop.permute.xlu1 %3900  ;;  %v4186_v21 = vpop.permute.xlu0 %4185 }
 0x7aa   :  { %3904 = vst.msk [vmem:[#allocation7 + $0x4] sm:$0x1] %vm3903_vm12, %v3901_v54  ;;  %v4187_v12 = vrot.slane %v4186_v21, 6  ;;  %v5842_v54 = vld [vmem:[%s8130_s7 + $0x150] sm:$0xff]  }
 0x7ab   :  { %3923 = vst.msk [vmem:[#allocation7 + $0x4] sm:$0x5] %vm7997_vm13, %v3918_v10 }
 0x7ac   :  { %v4188_v53 = vsel %vm464_vm11, %v4187_v12, %v4186_v21  ;;  %vm3950_vm11 = vcmask 860616   ;;  %v5843_v12 = vld [vmem:[%s8130_s7 + $0x110] sm:$0xff]  }
 0x7ad   :  { %v3962_v16 = vpop.permute.xlu1 %3961  ;;  %v4173_v9 = vpop.permute.xlu0 %4172 }
 0x7ae   :  { %4175 = vst.msk [vmem:[#allocation7 + $0x1] sm:$0x1] %vm3824_vm15, %v4173_v9  ;;  %v3963_v8 = vrot.slane %v3962_v16, 6  ;;  %vm8015_vm15 = vmor %vm3968_vm3, %vm3967_vm2  ;;  %vm5936_vm2 = vmmov 0   ;;  %v5846_v9 = vld [vmem:[%s8130_s7 + $0x160] sm:$0xff]  }
 0x7af   :  { %4190 = vst.msk [vmem:[#allocation7 + $0x1] sm:$0x5] %vm7980_vm0, %v4188_v53  ;;  %vm3983_vm0 = vcmask 614616  }
 0x7b0   :  { %v3965_v2 = vsel %vm3964_vm7, %v3963_v8, %v3962_v16  ;;  %v5844_v16 = vld [vmem:[%s8130_s7 + $0x158] sm:$0xff]  }
 0x7b1   :  { %v4214_v37 = vpop.permute.xlu1 %4213  ;;  %v4227_v32 = vpop.permute.xlu0 %4226 }
 0x7b2   :  { %v4228_v56 = vrot.slane %v4227_v32, 6 }
 0x7b4   :  { %v4229_v13 = vsel %vm3884_vm4, %v4228_v56, %v4227_v32  ;;  %vm4015_vm4 = vcmask 370690  }
 0x7b5   :  { %v3934_v24 = vpop.permute.xlu1 %3933  ;;  %v4201_v7 = vpop.permute.xlu0 %4200 }
 0x7b6   :  { %3937 = vst.msk [vmem:[#allocation7 + $0x6] sm:$0x1] %vm3936_vm14, %v3934_v24  ;;  %v5849_v24 = vld [vmem:[%s8130_s7 + $0x168] sm:$0xff]  }
 0x7b7   :  { %4203 = vst.msk [vmem:[#allocation7 + $0x3] sm:$0x1] %vm3856_vm1, %v4201_v7  ;;  %vm4014_vm1 = vcmask 1041384  }
 0x7b8   :  { %4216 = vst.msk [vmem:[#allocation7 + $0x3] sm:$0x1] %vm3870_vm5, %v4214_v37  ;;  %vm4011_vm5 = vcmask 1022976   ;;  %vm8028_vm10 = vmor %vm4015_vm4, %vm4014_vm1  ;;  %v5847_v37 = vld [vmem:[%s8130_s7 + $0x120] sm:$0xff]  }
 0x7b9   :  { %4231 = vst.msk [vmem:[#allocation7 + $0x3] sm:$0x5] %vm7989_vm6, %v4229_v13  ;;  %v3948_v50 = vpop.permute.xlu1 %3947  ;;  %v4255_v31 = vpop.permute.xlu0 %4254  ;;  %vm3997_vm6 = vcmask 1016416  }
 0x7ba   :  { %3951 = vst.msk [vmem:[#allocation7 + $0x6] sm:$0x1] %vm3950_vm11, %v3948_v50  ;;  %v4256_v25 = vrot.slane %v4255_v31, 6  ;;  %v5851_v50 = vld [vmem:[%s8130_s7 + $0x128] sm:$0xff]  }
 0x7bb   :  { %3970 = vst.msk [vmem:[#allocation7 + $0x6] sm:$0x5] %vm8015_vm15, %v3965_v2  ;;  %v5853_v2 = vld [vmem:[%s8130_s7 + $0x130] sm:$0xff]  }
 0x7bc   :  { %v4257_v38 = vsel %vm3917_vm9, %v4256_v25, %v4255_v31  ;;  %vm4030_vm9 = vcmask 770416   ;;  %v5852_v31 = vld [vmem:[%s8130_s7 + $0x170] sm:$0xff]   ;;  %v5854_v25 = vld [vmem:[%s8130_s7 + $0x178] sm:$0xff]  }
 0x7bd   :  { %v4009_v29 = vpop.permute.xlu1 %4008  ;;  %v4242_v52 = vpop.permute.xlu0 %4241 }
 0x7be   :  { %4244 = vst.msk [vmem:[#allocation7 + $0x5] sm:$0x1] %vm3903_vm12, %v4242_v52  ;;  %v4010_v0 = vrot.slane %v4009_v29, 6  ;;  %vm4047_vm12 = vcmask 1041144  }
 0x7bf   :  { %4259 = vst.msk [vmem:[#allocation7 + $0x5] sm:$0x5] %vm7997_vm13, %v4257_v38  ;;  %vm4048_vm13 = vcmask 124930  }
 0x7c0   :  { %v4012_v19 = vsel %vm4011_vm5, %v4010_v0, %v4009_v29  ;;  %v5855_v29 = vld [vmem:[%s8130_s7 + $0x138] sm:$0xff]  }
 0x7c1   :  { %v3981_v63 = vpop.permute.xlu1 %3980  ;;  %v4296_v28 = vpop.permute.xlu0 %4295 }
 0x7c2   :  { %3984 = vst.msk [vmem:[#allocation7 + $0x8] sm:$0x1] %vm3983_vm0, %v3981_v63  ;;  %v4297_v17 = vrot.slane %v4296_v28, 6  ;;  %v5226_v63 = vld [vmem:[%s8131_s8] ss:$0 sm:$0xff] }
 0x7c4   :  { %v4298_v15 = vsel %vm3964_vm7, %v4297_v17, %v4296_v28 }
 0x7c5   :  { %v3995_v43 = vpop.permute.xlu1 %3994  ;;  %v4270_v34 = vpop.permute.xlu0 %4269 }
 0x7c6   :  { %3998 = vst.msk [vmem:[#allocation7 + $0x8] sm:$0x1] %vm3997_vm6, %v3995_v43 }
 0x7c7   :  { %4272 = vst.msk [vmem:[#allocation7 + $0x7] sm:$0x1] %vm3936_vm14, %v4270_v34  ;;  %vm8042_vm14 = vmor %vm4048_vm13, %vm4047_vm12 }
 0x7c8   :  { %4017 = vst.msk [vmem:[#allocation7 + $0x8] sm:$0x5] %vm8028_vm10, %v4012_v19 }
 0x7c9   :  { %v4324_v11 = vpop.permute.xlu1 %4323  ;;  %v4283_v48 = vpop.permute.xlu0 %4282 }
 0x7ca   :  { %4285 = vst.msk [vmem:[#allocation7 + $0x7] sm:$0x1] %vm3950_vm11, %v4283_v48 }
 0x7cb   :  { %4300 = vst.msk [vmem:[#allocation7 + $0x7] sm:$0x5] %vm8015_vm15, %v4298_v15 }
 0x7cd   :  { %v4028_v35 = vpop.permute.xlu1 %4027  ;;  %v4042_v5 = vpop.permute.xlu0 %4041 }
 0x7ce   :  { %4031 = vst.msk [vmem:[#allocation7 + $0xa] sm:$0x1] %vm4030_vm9, %v4028_v35  ;;  %v4043_v61 = vrot.slane %v4042_v5, 6 }
 0x7d0   :  { %v4045_v39 = vsel %vm3302_vm8, %v4043_v61, %v4042_v5 }
 0x7d1   :  { %4050 = vst.msk [vmem:[#allocation7 + $0xa] sm:$0x5] %vm8042_vm14, %v4045_v39  ;;  %v4337_v33 = vpop.permute.xlu0 %4336 }
 0x7d2   :  { %v4370_v30 = vld [vmem:[#allocation7] sm:$0xff]  ;;  %v4338_v6 = vrot.slane %v4337_v33, 6 }
 0x7d3   :  { %v4381_v58 = vrot.slane %v4370_v30, %v4380_v59  ;;  %v4374_v3 = vcombine.high %v4370_v30, %v4370_v30 }
 0x7d4   :  { %v4339_v51 = vsel %vm4011_vm5, %v4338_v6, %v4337_v33 }
 0x7d5   :  { %v4311_v47 = vpop.permute.xlu0 %4310  ;;  %v4389_v55 = vcombine.high %v4381_v58, %v4381_v58  ;;  %v4388_v42 = vrot.slane %v4374_v3, %v4380_v59  ;;  %v4414_v26 = vpack.c.bf16 %v4381_v58, %v4381_v58 }
 0x7d6   :  { %4313 = vst.msk [vmem:[#allocation7 + $0x9] sm:$0x1] %vm3983_vm0, %v4311_v47 }
 0x7d7   :  { %4326 = vst.msk [vmem:[#allocation7 + $0x9] sm:$0x1] %vm3997_vm6, %v4324_v11  ;;  %v4415_v60 = vpack.c.bf16 %v4389_v55, %v4389_v55  ;;  %v4390_v57 = vcombine.high %v4388_v42, %v4388_v42  ;;  %v4416_v40 = vpack.c.bf16 %v4388_v42, %v4388_v42 }
 0x7d8   :  { %4341 = vst.msk [vmem:[#allocation7 + $0x9] sm:$0x5] %vm8028_vm10, %v4339_v51 }
 0x7d9   :  { %4856 = vmatprep.mubr.bf16.mxu0 %v4415_v60  ;;  %v4365_v36 = vpop.permute.xlu0 %4364  ;;  %v4417_v41 = vpack.c.bf16 %v4390_v57, %v4390_v57 }
 0x7da   :  { %v4366_v49 = vrot.slane %v4365_v36, 6  ;;  %4857 = vmatmul.mubr.bf16.vlgmr.msra.gmra.mrb[12].mxu0 %v4414_v26 }
 0x7db   :  { %5322 = vmatpush3.bf16.msra.mxu0 %v5838_v1  ;;  %4896 = vmatprep.mubr.bf16.mxu1 %v4417_v41 }
 0x7dc   :  { %4897 = vmatmul.mubr.bf16.vlgmr.msra.gmra.mrb[16].mxu1 %v4416_v40  ;;  %5323 = vmatprep.subr.bf16.mxu0 %v5840_v62  ;;  %v4367_v10 = vsel %vm3302_vm8, %v4366_v49, %v4365_v36  ;;  %vm4820_vm8 = vcmask 130048  }
 0x7dd   :  { %v4352_v21 = vpop.permute.xlu0 %4351  ;;  %5346 = vmatpush3.bf16.msra.mxu1 %v5848_v46  ;;  %5347 = vmatprep.mubr.msk.bf16.mxu1 %vm5936_vm2, %v8219_v44  ;;  %v5845_v44 = vld [vmem:[%s8130_s7 + $0x118] sm:$0xff]   ;;  %s5937_s7 = smov [#allocation11]  }
 0x7de   :  { %4354 = vst.msk [vmem:[#allocation7 + $0xb] sm:$0x1] %vm4030_vm9, %v4352_v21  ;;  %s4991_s8 = sshll.u32 %s5937_s7, 4  ;;  %s4992_s8 = int_to_ptr.vmem [resolvable:$true] %s4991_s8 }
 0x7df   :  { %4369 = vst.msk [vmem:[#allocation7 + $0xb] sm:$0x5] %vm8042_vm14, %v4367_v10  ;;  %5324 = vmatpush3.bf16.msra.mxu0 %v5841_v14  ;;  %s5878_s26 = scalar_lea.vmem %s4992_s8, 32  ;;  %p5883_p9 = scmp.lt.s32.totalorder %s4992_s8, %s4992_s8 }
 0x7e0   :  { %5325 = vmatprep.subr.bf16.mxu0 %v5842_v54  ;;  %p5879_p8 = scmp.ne.s32.totalorder %s4992_s8, %s5878_s26  ;;  %p5884_p10 = scmp.lt.s32.totalorder %s5878_s26, %s5878_s26 }
 0x7e2   :  { %p5885_p11 = por %p5884_p10, %p5883_p9 }
 0x7e3   :  { %5326 = vmatpush3.bf16.msra.mxu0 %v5843_v12 }
 0x7e4   :  { %5327 = vmatprep.subr.bf16.mxu0 %v5844_v16  ;;  %p5886_p12 = pnand %p5885_p11, %p5879_p8 }
 0x7e6   :  { %v4371_v53 = vld [vmem:[#allocation7 + $0x8] sm:$0x3f] }
 0x7e7   :  { %5328 = vmatpush3.bf16.msra.mxu0 %v5845_v44  ;;  %v4391_v32 = vcombine.high %v4371_v53, %v4371_v53  ;;  %v4398_v56 = vrot.slane %v4371_v53, %v4380_v59 }
 0x7e8   :  { %5329 = vmatprep.subr.bf16.mxu0 %v5846_v9 }
 0x7e9   :  { %v4405_v7 = vrot.slane %v4391_v32, %v4380_v59  ;;  %v4406_v8 = vcombine.high %v4398_v56, %v4398_v56  ;;  %v4418_v52 = vpack.c.bf16 %v4398_v56, %v4398_v56 }
 0x7eb   :  { %5330 = vmatpush3.bf16.msra.mxu0 %v5847_v37  ;;  %v4419_v13 = vpack.c.bf16 %v4406_v8, %v4406_v8  ;;  %v4420_v23 = vpack.c.bf16 %v4405_v7, %v4405_v7 }
 0x7ec   :  { %5331 = vmatprep.subr.bf16.mxu0 %v5849_v24 }
 0x7ed   :  { %4936 = vmatprep.mubr.bf16.mxu0 %v4419_v13  ;;  %5348 = vmatmul.mubr.msk.bf16.vlgmr.msra.gmra.mrb[20].mxu1 %vm4820_vm8, %v4420_v23 }
 0x7ef   :  { %5332 = vmatpush3.bf16.msra.mxu0 %v5851_v50 }
 0x7f0   :  { %5333 = vmatprep.subr.bf16.mxu0 %v5852_v31 }
 0x7f3   :  { %5334 = vmatpush3.bf16.msra.mxu0 %v5853_v2 }
 0x7f4   :  { %5335 = vmatprep.subr.bf16.mxu0 %v5854_v25 }
 0x7f7   :  { %5336 = vmatpush3.bf16.msra.mxu0 %v5855_v29 }
 0x7fa   :  { %4937 = vmatmul.mubr.bf16.vlgmr.msra.gmra.mrb[16].mxu0 %v4418_v52 }
 0x8ad   :  { %v5293_v38 = vpop.f32.mrb[12].mxu0 }
 0x8ae   :  { %v5294_v28 = vpop.f32.mrb[13].mxu0 }
 0x8af   :  { %v5295_v0 = vadd.f32 %v5294_v28, %v5293_v38  ;;  %v5296_v22 = vpop.f32.mrb[14].mxu0  ;;  %v5315_v43 = vpop.f32.mrb[16].mxu1 }
 0x8b0   :  { %v5297_v34 = vpop.f32.mrb[15].mxu0  ;;  %v5316_v19 = vpop.f32.mrb[17].mxu1 }
 0x8b1   :  { %v4859_v17 = vadd.f32 %v5295_v0, %v5226_v63  ;;  %v5317_v18 = vadd.f32 %v5316_v19, %v5315_v43  ;;  %v5318_v4 = vpop.f32.mrb[18].mxu1 }
 0x8b2   :  { %v5319_v11 = vpop.f32.mrb[19].mxu1 }
 0x8b3   :  { %v4899_v48 = vadd.f32 %v5317_v18, %v4859_v17 }
 0x8c0   :  { %v4978_v15 = vpop.f32.mrb[20].mxu1 }
 0x8c1   :  { %v5349_v45 = vpop.f32.mrb[21].mxu1 }
 0x8c2   :  { %v4981_v35 = vpop.f32.mrb[22].mxu1 }
 0x8c3   :  { %v5350_v5 = vpop.f32.mrb[23].mxu1 }
 0x8cd   :  { %v5337_v27 = vpop.f32.mrb[16].mxu0 }
 0x8ce   :  { %v5338_v61 = vpop.f32.mrb[17].mxu0 }
 0x8cf   :  { %v5339_v20 = vadd.f32 %v5338_v61, %v5337_v27  ;;  %v5340_v59 = vpop.f32.mrb[18].mxu0 }
 0x8d0   :  { %v5341_v39 = vpop.f32.mrb[19].mxu0 }
 0x8d1   :  { %v4939_v33 = vadd.f32 %v5339_v20, %v4899_v48 }
 0x8d3   :  { %v4979_v30 = vadd.f32 %v4978_v15, %v4939_v33 }
 0x8d5   :  { %4984 = vst [vmem:[#allocation11] sm:$0x3] %v4979_v30 }
 0x8d6   :  { %5889 = shalt.err (!%p5886_p12)
}
 0x8d7   :  { %s5890_s11 = scalar_lea.hbm %s8132_s9, 32 }
 0x8d8   :  { %p5891_p13 = scmp.ne.s32.totalorder %s8132_s9, %s5890_s11  ;;  %p5894_p0 = scmp.lt.u32.totalorder %s5890_s11, %s8132_s9 }
 0x8da   :  { %p5896_p1 = pnand %p5894_p0, %p5891_p13 }
 0x8dc   :  { %5899 = shalt.err (!%p5896_p1)
}
 0x8dd   :  { %4994 = dma.vmem_to_hbm [thread:$0]  %s4992_s8, 32, %s8132_s9, [#allocation10]  }
 0x8de   :  { %5902 = dma.done.wait [#allocation10], 32  }
 0x8df   :  { %5903 = vsyncadd [#allocation10], 4294967264 }
 0x8e0   :  { %4998 = vsyncpa [#allocation9], 1 }
 0x8e1   :  { %4999 = vsyncpa [#allocation10], 1 }

</bundles_post_ra>
